<compile_context>
chip_gen: v7x
topology: tpu7x:2x2x1
jax: 0.10.0
libtpu: 0.0.40
codegen_flags: <defaults>
</compile_context>

<pallas_src>
import jax
import jax.numpy as jnp
from jax.experimental import pallas as pl
from jax.experimental.pallas import tpu as pltpu


# ----------------------------- Pallas kernel --------------------------------
def downsample_inout_kernel(xa_ref, xh_ref, ma_ref, mh_ref, rep_ref, w_ref, b_ref, o_ref):
    """One (batch image, TOH output rows) tile.

    xa_ref : (TOH, 4*Cin, Ws)  phase-split padded x, rows [i*TOH, (i+1)*TOH)
    xh_ref : (1,   4*Cin, Ws)  halo row (i+1)*TOH (always in bounds, Hs = Ho+1)
    ma_ref : (TOH, 4, Ws)      phase-split padded mask
    mh_ref : (1,   4, Ws)      mask halo row
    rep_ref: (4*Cin, 4)        0/1 matrix replicating the 4 mask phases over Cin
    w_ref  : (Cout, 16*Cin)    conv weight, K index = tap*4*Cin + c*4 + phase
    b_ref  : (Cout, 1)         conv bias
    o_ref  : (Cout, TOH, Wo)   output rows of this tile (NCHW layout)
    """
    toh, c4, ws = xa_ref.shape
    wo = ws - 1
    cout = o_ref.shape[0]
    f32 = jnp.float32

    w = w_ref[...].astype(f32)                            # resident, tiny
    b = b_ref[...]                                        # (Cout, 1)
    w_taps = [w[:, t * c4:(t + 1) * c4] for t in range(4)]
    rep_cols = [rep_ref[:, p:p + 1] for p in range(4)]    # (C4, 1) each

    # Static unroll over the TOH output rows of this tile (TOH is small, <= ~64).
    for r in range(toh):
        # Output row oh needs phase-split rows oh (lo) and oh+1 (hi).
        x_lo = xa_ref[r]                                           # (C4, Ws)
        x_hi = xa_ref[r + 1] if r + 1 < toh else xh_ref[0]         # (C4, Ws)
        m_lo = ma_ref[r].astype(f32)                               # (4, Ws)
        m_hi = (ma_ref[r + 1] if r + 1 < toh else mh_ref[0]).astype(f32)

        # leak = (conv2d(mask, ones(4,4), stride=2, pad=1) > 0): sum of all 16 taps.
        msum = m_lo[:, 0:wo] + m_lo[:, 1:ws] + m_hi[:, 0:wo] + m_hi[:, 1:ws]     # (4, Wo)
        leak = jnp.where(jnp.sum(msum, axis=0, keepdims=True) > 0.0, 1.0, 0.0)   # (1, Wo)

        # max_pool2d(mask, 2, 2) == max over the central 2x2 of the 4x4 pad=1 patch:
        # patch offsets (dy,dx) in {1,2}^2  ->  (phase, tap) pairs below (exact).
        mpool = jnp.maximum(jnp.maximum(m_lo[3:4, 0:wo], m_lo[2:3, 1:ws]),
                            jnp.maximum(m_hi[1:2, 0:wo], m_hi[0:1, 1:ws]))       # (1, Wo)
        leak = jnp.clip(leak - mpool, 0.0, 1.0)                                  # (1, Wo)

        # Mask phases replicated over Cin (channel order c*4 + phase) -- pure VPU work.
        mrep_lo = sum(rep_cols[p] * m_lo[p:p + 1, :] for p in range(4))          # (C4, Ws)
        mrep_hi = sum(rep_cols[p] * m_hi[p:p + 1, :] for p in range(4))          # (C4, Ws)

        # Fused single-pass conv:
        #   out = f1*(1-leak) + f2*leak + b = W @ (patch * (1 - leak*mask_patch)) + b
        # (bit-exact for binary leak; bias added exactly once).
        acc = jnp.zeros((cout, wo), f32)
        for qy in range(2):
            xr = x_hi if qy else x_lo
            mr = mrep_hi if qy else mrep_lo
            for qx in range(2):
                t = qy * 2 + qx
                xt = xr[:, qx:qx + wo].astype(f32)                # (C4, Wo) patch slice
                ft = 1.0 - leak * mr[:, qx:qx + wo]               # (C4, Wo) fused factor
                acc = acc + jnp.dot(w_taps[t], xt * ft,
                                    preferred_element_type=jnp.float32)
        o_ref[:, r, :] = (acc + b).astype(o_ref.dtype)


# ------------------------------ JAX glue -------------------------------------
def _phase_split(a_padded, hs, ws):
    """(N, C, 2*hs, 2*ws) zero-padded NCHW -> (N, hs, C*4, ws).

    channel index = c*4 + (ry*2 + rx), where padded (h, w) = (2*i + ry, 2*j + rx).
    One cheap ~1x-traffic copy; replaces the old 4x im2col materialization.
    """
    n, c = a_padded.shape[0], a_padded.shape[1]
    a = a_padded.reshape(n, c, hs, 2, ws, 2)      # (n, c, i, ry, j, rx)
    a = a.transpose(0, 2, 1, 3, 5, 4)             # (n, i, c, ry, rx, j)
    return a.reshape(n, hs, c * 4, ws)


def _choose_row_tile(ho, row_bytes, budget_bytes, toh_cap=64):
    """Largest TOH with TOH | Ho and (TOH % 8 == 0 or TOH == Ho) fitting the VMEM budget."""
    cands = sorted({d for d in range(8, min(ho, toh_cap) + 1, 8) if ho % d == 0} | {ho})
    toh = cands[0]
    for d in cands:
        if (d + 1) * row_bytes * 2 <= budget_bytes:   # x2 for double buffering
            toh = d
    return toh


def downsample_inout(x, mask, weight, bias, *, stream_dtype=None, core_parallel=False,
                     vmem_budget_bytes=8 * 1024 * 1024):
    """Forward pass of Downsample_inout.  x: (N, C_in, H, W) NCHW; mask: (N, 1, H, W)."""
    n, cin, h, w = x.shape
    cout = weight.shape[0]
    assert h % 2 == 0 and w % 2 == 0, "stride-2 downsample expects even H, W"
    ho, wo = h // 2, w // 2
    hs, ws = ho + 1, wo + 1
    c4 = 4 * cin
    k = 4 * c4

    # Cheap wrapper-side layout transforms (each ~1x of the raw x / mask bytes).
    xp = jnp.pad(x, ((0, 0), (0, 0), (1, 1), (1, 1)))
    mp = jnp.pad(mask, ((0, 0), (0, 0), (1, 1), (1, 1)))
    xs = _phase_split(xp, hs, ws)                              # (N, Hs, 4*Cin, Ws)
    ms = _phase_split(mp, hs, ws).astype(jnp.float32)          # (N, Hs, 4,      Ws)
    if stream_dtype is not None:
        # Halves the dominant HBM stream on v6e/v7x; accumulation stays f32 in-kernel.
        xs = xs.astype(stream_dtype)

    # Conv weight -> fused matmul matrix: K = tap*4*Cin + c*4 + phase,
    # tap = qy*2+qx, phase = ry*2+rx, kernel offset (dy, dx) = (2*qy+ry, 2*qx+rx).
    w6 = weight.reshape(cout, cin, 2, 2, 2, 2)                 # (o, c, qy, ry, qx, rx)
    w_mat = w6.transpose(0, 2, 4, 1, 3, 5).reshape(cout, k).astype(jnp.float32)
    b_mat = bias.reshape(cout, 1).astype(jnp.float32)
    rep = jnp.tile(jnp.eye(4, dtype=jnp.float32), (cin, 1))    # (4*Cin, 4)

    row_bytes = (c4 * xs.dtype.itemsize + 4 * 4) * ws
    toh = _choose_row_tile(ho, row_bytes, vmem_budget_bytes)
    grid = (n, ho // toh)

    if core_parallel:   # v7x: split the batch axis across the 2 TensorCores.
        dims = (pltpu.CORE_PARALLEL, pltpu.ARBITRARY)
    else:
        dims = ("parallel", "arbitrary")

    return pl.pallas_call(
        downsample_inout_kernel,
        out_shape=jax.ShapeDtypeStruct((n, cout, ho, wo), x.dtype),
        grid_spec=pltpu.PrefetchScalarGridSpec(
            num_scalar_prefetch=0,
            grid=grid,
            in_specs=[
                # main rows [i*TOH, (i+1)*TOH) of the phase-split input
                pl.BlockSpec((None, toh, c4, ws), lambda b_, i: (b_, i, 0, 0)),
                # single halo row (i+1)*TOH (re-read; always in bounds since Hs = Ho+1)
                pl.BlockSpec((None, 1, c4, ws), lambda b_, i: (b_, (i + 1) * toh, 0, 0)),
                pl.BlockSpec((None, toh, 4, ws), lambda b_, i: (b_, i, 0, 0)),
                pl.BlockSpec((None, 1, 4, ws), lambda b_, i: (b_, (i + 1) * toh, 0, 0)),
                pl.BlockSpec((c4, 4), lambda b_, i: (0, 0)),      # rep    (resident)
                pl.BlockSpec((cout, k), lambda b_, i: (0, 0)),    # weight (resident)
                pl.BlockSpec((cout, 1), lambda b_, i: (0, 0)),    # bias   (resident)
            ],
            # Output written directly in NCHW: no pad / slice / transpose pass outside.
            out_specs=pl.BlockSpec((None, cout, toh, wo), lambda b_, i: (b_, 0, i, 0)),
        ),
        compiler_params=pltpu.CompilerParams(
            dimension_semantics=dims,
            vmem_limit_bytes=32 * 1024 * 1024,
        ),
    )(xs, xs, ms, ms, rep, w_mat, b_mat)


# --------------------------- pure-JAX reference -------------------------------
def downsample_inout_ref(x, mask, weight, bias):
    def conv(inp, wgt, b=None):
        out = jax.lax.conv_general_dilated(
            inp, wgt, window_strides=(2, 2), padding=((1, 1), (1, 1)),
            dimension_numbers=("NCHW", "OIHW", "NCHW"))
        if b is not None:
            out = out + b[None, :, None, None]
        return out

    f1 = conv(x, weight, bias)
    f2 = conv(x * (1.0 - mask), weight, bias)
    ones_k = jnp.ones((1, 1, 4, 4), x.dtype)
    leak = conv(mask, ones_k)
    mpool = jax.lax.reduce_window(mask, -jnp.inf, jax.lax.max,
                                  (1, 1, 2, 2), (1, 1, 2, 2), "VALID")
    leak = jnp.where(leak > 0.0, 1.0, 0.0)
    leak = jnp.clip(leak - mpool, 0.0, 1.0)
    return f1 * (1.0 - leak) + f2 * leak


# --------------------------------- main ---------------------------------------
if __name__ == "__main__":
    key = jax.random.PRNGKey(0)
    k_x, k_m, k_w, k_b = jax.random.split(key, 4)

    N, Cin, Cout, H, W = 2, 4, 8, 16, 16

    x = jax.random.normal(k_x, (N, Cin, H, W), dtype=jnp.float32)
    mask = (jax.random.uniform(k_m, (N, 1, H, W)) > 0.5).astype(jnp.float32)

    # Deterministic synthetic Conv2d(Cin, Cout, 4, stride=2, padding=1) parameters.
    fan_in = Cin * 4 * 4
    bound = 1.0 / (fan_in ** 0.5)
    weight = jax.random.uniform(k_w, (Cout, Cin, 4, 4), minval=-bound, maxval=bound,
                                dtype=jnp.float32)
    bias = jax.random.uniform(k_b, (Cout,), minval=-bound, maxval=bound, dtype=jnp.float32)

    out = jax.block_until_ready(jax.jit(downsample_inout)(x, mask, weight, bias))
    ref = jax.block_until_ready(downsample_inout_ref(x, mask, weight, bias))

    assert out.shape == (N, Cout, H // 2, W // 2)
    max_err = float(jnp.max(jnp.abs(out - ref)))
    assert jnp.allclose(out, ref, atol=1e-4, rtol=1e-4), max_err
    print("KERNEL_OK")
</pallas_src>

<mosaic_0001>
module attributes {stable_mosaic.version = 11 : i64} {
  func.func @downsample_inout_kernel(%arg0: i32, %arg1: i32, %arg2: memref<1x8x16x9xf32, #tpu.memory_space<vmem>>, %arg3: memref<1x1x16x9xf32, #tpu.memory_space<vmem>>, %arg4: memref<1x8x4x9xf32, #tpu.memory_space<vmem>>, %arg5: memref<1x1x4x9xf32, #tpu.memory_space<vmem>>, %arg6: memref<16x4xf32, #tpu.memory_space<vmem>>, %arg7: memref<8x64xf32, #tpu.memory_space<vmem>>, %arg8: memref<8x1xf32, #tpu.memory_space<vmem>>, %arg9: memref<1x8x8x8xf32, #tpu.memory_space<vmem>>) attributes {dimension_semantics = [#tpu.dimension_semantics<parallel>, #tpu.dimension_semantics<arbitrary>], iteration_bounds = array<i64: 2, 1>, scalar_prefetch = 0 : i64, scratch_operands = 0 : i64, tpu.core_type = #tpu.core_type<tc>, window_params = [{transform_indices = @transform_0, window_bounds = array<i64: 1, 8, 16, 9>}, {transform_indices = @transform_1, window_bounds = array<i64: 1, 1, 16, 9>}, {transform_indices = @transform_2, window_bounds = array<i64: 1, 8, 4, 9>}, {transform_indices = @transform_3, window_bounds = array<i64: 1, 1, 4, 9>}, {pipeline_mode = #tpu.pipeline_mode<synchronous>, transform_indices = @transform_4, window_bounds = array<i64: 16, 4>}, {pipeline_mode = #tpu.pipeline_mode<synchronous>, transform_indices = @transform_5, window_bounds = array<i64: 8, 64>}, {pipeline_mode = #tpu.pipeline_mode<synchronous>, transform_indices = @transform_6, window_bounds = array<i64: 8, 1>}, {transform_indices = @transform_7, window_bounds = array<i64: 1, 8, 8, 8>}]} {
    %c0 = arith.constant 0 : index
    %c0_0 = arith.constant 0 : index
    %0 = vector.load %arg7[%c0, %c0_0] : memref<8x64xf32, #tpu.memory_space<vmem>>, vector<8x64xf32>
    %c0_1 = arith.constant 0 : index
    %c0_2 = arith.constant 0 : index
    %1 = vector.load %arg8[%c0_1, %c0_2] : memref<8x1xf32, #tpu.memory_space<vmem>>, vector<8x1xf32>
    %2 = vector.extract_strided_slice %0 {offsets = [0, 0], sizes = [8, 16], strides = [1, 1]} : vector<8x64xf32> to vector<8x16xf32>
    %3 = vector.extract_strided_slice %0 {offsets = [0, 16], sizes = [8, 16], strides = [1, 1]} : vector<8x64xf32> to vector<8x16xf32>
    %4 = vector.extract_strided_slice %0 {offsets = [0, 32], sizes = [8, 16], strides = [1, 1]} : vector<8x64xf32> to vector<8x16xf32>
    %5 = vector.extract_strided_slice %0 {offsets = [0, 48], sizes = [8, 16], strides = [1, 1]} : vector<8x64xf32> to vector<8x16xf32>
    %c0_3 = arith.constant 0 : index
    %c0_4 = arith.constant 0 : index
    %6 = vector.load %arg6[%c0_3, %c0_4] : memref<16x4xf32, #tpu.memory_space<vmem>>, vector<16x1xf32>
    %c0_5 = arith.constant 0 : index
    %c1 = arith.constant 1 : index
    %7 = vector.load %arg6[%c0_5, %c1] : memref<16x4xf32, #tpu.memory_space<vmem>>, vector<16x1xf32>
    %c0_6 = arith.constant 0 : index
    %c2 = arith.constant 2 : index
    %8 = vector.load %arg6[%c0_6, %c2] : memref<16x4xf32, #tpu.memory_space<vmem>>, vector<16x1xf32>
    %c0_7 = arith.constant 0 : index
    %c3 = arith.constant 3 : index
    %9 = vector.load %arg6[%c0_7, %c3] : memref<16x4xf32, #tpu.memory_space<vmem>>, vector<16x1xf32>
    %c0_8 = arith.constant 0 : index
    %c0_9 = arith.constant 0 : index
    %c0_10 = arith.constant 0 : index
    %c0_11 = arith.constant 0 : index
    %10 = vector.load %arg2[%c0_8, %c0_9, %c0_10, %c0_11] : memref<1x8x16x9xf32, #tpu.memory_space<vmem>>, vector<1x1x16x9xf32>
    %11 = vector.shape_cast %10 : vector<1x1x16x9xf32> to vector<16x9xf32>
    %c0_12 = arith.constant 0 : index
    %c1_13 = arith.constant 1 : index
    %c0_14 = arith.constant 0 : index
    %c0_15 = arith.constant 0 : index
    %12 = vector.load %arg2[%c0_12, %c1_13, %c0_14, %c0_15] : memref<1x8x16x9xf32, #tpu.memory_space<vmem>>, vector<1x1x16x9xf32>
    %13 = vector.shape_cast %12 : vector<1x1x16x9xf32> to vector<16x9xf32>
    %c0_16 = arith.constant 0 : index
    %c0_17 = arith.constant 0 : index
    %c0_18 = arith.constant 0 : index
    %c0_19 = arith.constant 0 : index
    %14 = vector.load %arg4[%c0_16, %c0_17, %c0_18, %c0_19] : memref<1x8x4x9xf32, #tpu.memory_space<vmem>>, vector<1x1x4x9xf32>
    %15 = vector.shape_cast %14 : vector<1x1x4x9xf32> to vector<4x9xf32>
    %c0_20 = arith.constant 0 : index
    %c1_21 = arith.constant 1 : index
    %c0_22 = arith.constant 0 : index
    %c0_23 = arith.constant 0 : index
    %16 = vector.load %arg4[%c0_20, %c1_21, %c0_22, %c0_23] : memref<1x8x4x9xf32, #tpu.memory_space<vmem>>, vector<1x1x4x9xf32>
    %17 = vector.shape_cast %16 : vector<1x1x4x9xf32> to vector<4x9xf32>
    %18 = vector.extract_strided_slice %15 {offsets = [0, 0], sizes = [4, 8], strides = [1, 1]} : vector<4x9xf32> to vector<4x8xf32>
    %19 = vector.extract_strided_slice %15 {offsets = [0, 1], sizes = [4, 8], strides = [1, 1]} : vector<4x9xf32> to vector<4x8xf32>
    %20 = arith.addf %18, %19 : vector<4x8xf32>
    %21 = vector.extract_strided_slice %17 {offsets = [0, 0], sizes = [4, 8], strides = [1, 1]} : vector<4x9xf32> to vector<4x8xf32>
    %22 = arith.addf %20, %21 : vector<4x8xf32>
    %23 = vector.extract_strided_slice %17 {offsets = [0, 1], sizes = [4, 8], strides = [1, 1]} : vector<4x9xf32> to vector<4x8xf32>
    %24 = arith.addf %22, %23 : vector<4x8xf32>
    %cst = arith.constant dense<0.000000e+00> : vector<8xf32>
    %25 = vector.multi_reduction <add>, %24, %cst [0] : vector<4x8xf32> to vector<8xf32>
    %26 = vector.shape_cast %25 : vector<8xf32> to vector<1x8xf32>
    %cst_24 = arith.constant 0.000000e+00 : f32
    %27 = vector.broadcast %cst_24 : f32 to vector<1x8xf32>
    %28 = arith.cmpf ogt, %26, %27 : vector<1x8xf32>
    %cst_25 = arith.constant 1.000000e+00 : f32
    %cst_26 = arith.constant 0.000000e+00 : f32
    %29 = vector.broadcast %cst_25 : f32 to vector<1x8xf32>
    %30 = vector.broadcast %cst_26 : f32 to vector<1x8xf32>
    %31 = arith.select %28, %29, %30 : vector<1x8xi1>, vector<1x8xf32>
    %32 = vector.extract_strided_slice %15 {offsets = [3, 0], sizes = [1, 8], strides = [1, 1]} : vector<4x9xf32> to vector<1x8xf32>
    %33 = vector.extract_strided_slice %15 {offsets = [2, 1], sizes = [1, 8], strides = [1, 1]} : vector<4x9xf32> to vector<1x8xf32>
    %34 = arith.maximumf %32, %33 : vector<1x8xf32>
    %35 = vector.extract_strided_slice %17 {offsets = [1, 0], sizes = [1, 8], strides = [1, 1]} : vector<4x9xf32> to vector<1x8xf32>
    %36 = vector.extract_strided_slice %17 {offsets = [0, 1], sizes = [1, 8], strides = [1, 1]} : vector<4x9xf32> to vector<1x8xf32>
    %37 = arith.maximumf %35, %36 : vector<1x8xf32>
    %38 = arith.maximumf %34, %37 : vector<1x8xf32>
    %39 = arith.subf %31, %38 : vector<1x8xf32>
    %cst_27 = arith.constant 0.000000e+00 : f32
    %cst_28 = arith.constant 1.000000e+00 : f32
    %40 = vector.broadcast %cst_27 : f32 to vector<1x8xf32>
    %41 = arith.maximumf %40, %39 : vector<1x8xf32>
    %42 = vector.broadcast %cst_28 : f32 to vector<1x8xf32>
    %43 = arith.minimumf %42, %41 : vector<1x8xf32>
    %44 = vector.extract_strided_slice %15 {offsets = [0, 0], sizes = [1, 9], strides = [1, 1]} : vector<4x9xf32> to vector<1x9xf32>
    %45 = vector.broadcast %6 : vector<16x1xf32> to vector<16x9xf32>
    %46 = vector.broadcast %44 : vector<1x9xf32> to vector<16x9xf32>
    %47 = arith.mulf %45, %46 : vector<16x9xf32>
    %cst_29 = arith.constant 0.000000e+00 : f32
    %48 = vector.broadcast %cst_29 : f32 to vector<16x9xf32>
    %49 = arith.addf %48, %47 : vector<16x9xf32>
    %50 = vector.extract_strided_slice %15 {offsets = [1, 0], sizes = [1, 9], strides = [1, 1]} : vector<4x9xf32> to vector<1x9xf32>
    %51 = vector.broadcast %7 : vector<16x1xf32> to vector<16x9xf32>
    %52 = vector.broadcast %50 : vector<1x9xf32> to vector<16x9xf32>
    %53 = arith.mulf %51, %52 : vector<16x9xf32>
    %54 = arith.addf %49, %53 : vector<16x9xf32>
    %55 = vector.extract_strided_slice %15 {offsets = [2, 0], sizes = [1, 9], strides = [1, 1]} : vector<4x9xf32> to vector<1x9xf32>
    %56 = vector.broadcast %8 : vector<16x1xf32> to vector<16x9xf32>
    %57 = vector.broadcast %55 : vector<1x9xf32> to vector<16x9xf32>
    %58 = arith.mulf %56, %57 : vector<16x9xf32>
    %59 = arith.addf %54, %58 : vector<16x9xf32>
    %60 = vector.extract_strided_slice %15 {offsets = [3, 0], sizes = [1, 9], strides = [1, 1]} : vector<4x9xf32> to vector<1x9xf32>
    %61 = vector.broadcast %9 : vector<16x1xf32> to vector<16x9xf32>
    %62 = vector.broadcast %60 : vector<1x9xf32> to vector<16x9xf32>
    %63 = arith.mulf %61, %62 : vector<16x9xf32>
    %64 = arith.addf %59, %63 : vector<16x9xf32>
    %65 = vector.extract_strided_slice %17 {offsets = [0, 0], sizes = [1, 9], strides = [1, 1]} : vector<4x9xf32> to vector<1x9xf32>
    %66 = vector.broadcast %6 : vector<16x1xf32> to vector<16x9xf32>
    %67 = vector.broadcast %65 : vector<1x9xf32> to vector<16x9xf32>
    %68 = arith.mulf %66, %67 : vector<16x9xf32>
    %cst_30 = arith.constant 0.000000e+00 : f32
    %69 = vector.broadcast %cst_30 : f32 to vector<16x9xf32>
    %70 = arith.addf %69, %68 : vector<16x9xf32>
    %71 = vector.extract_strided_slice %17 {offsets = [1, 0], sizes = [1, 9], strides = [1, 1]} : vector<4x9xf32> to vector<1x9xf32>
    %72 = vector.broadcast %7 : vector<16x1xf32> to vector<16x9xf32>
    %73 = vector.broadcast %71 : vector<1x9xf32> to vector<16x9xf32>
    %74 = arith.mulf %72, %73 : vector<16x9xf32>
    %75 = arith.addf %70, %74 : vector<16x9xf32>
    %76 = vector.extract_strided_slice %17 {offsets = [2, 0], sizes = [1, 9], strides = [1, 1]} : vector<4x9xf32> to vector<1x9xf32>
    %77 = vector.broadcast %8 : vector<16x1xf32> to vector<16x9xf32>
    %78 = vector.broadcast %76 : vector<1x9xf32> to vector<16x9xf32>
    %79 = arith.mulf %77, %78 : vector<16x9xf32>
    %80 = arith.addf %75, %79 : vector<16x9xf32>
    %81 = vector.extract_strided_slice %17 {offsets = [3, 0], sizes = [1, 9], strides = [1, 1]} : vector<4x9xf32> to vector<1x9xf32>
    %82 = vector.broadcast %9 : vector<16x1xf32> to vector<16x9xf32>
    %83 = vector.broadcast %81 : vector<1x9xf32> to vector<16x9xf32>
    %84 = arith.mulf %82, %83 : vector<16x9xf32>
    %85 = arith.addf %80, %84 : vector<16x9xf32>
    %cst_31 = arith.constant 0.000000e+00 : f32
    %86 = vector.broadcast %cst_31 : f32 to vector<8x8xf32>
    %87 = vector.extract_strided_slice %11 {offsets = [0, 0], sizes = [16, 8], strides = [1, 1]} : vector<16x9xf32> to vector<16x8xf32>
    %88 = vector.extract_strided_slice %64 {offsets = [0, 0], sizes = [16, 8], strides = [1, 1]} : vector<16x9xf32> to vector<16x8xf32>
    %89 = vector.broadcast %43 : vector<1x8xf32> to vector<16x8xf32>
    %90 = arith.mulf %89, %88 : vector<16x8xf32>
    %cst_32 = arith.constant 1.000000e+00 : f32
    %91 = vector.broadcast %cst_32 : f32 to vector<16x8xf32>
    %92 = arith.subf %91, %90 : vector<16x8xf32>
    %93 = arith.mulf %87, %92 : vector<16x8xf32>
    %cst_33 = arith.constant dense<0.000000e+00> : vector<8x8xf32>
    %94 = tpu.matmul %2, %93, %cst_33 {dimension_numbers = #tpu.dot_dimension_numbers<[1], [0], [0], [1], [0, 0, 1, 1], [], []>} : vector<8x16xf32>, vector<16x8xf32>, vector<8x8xf32> -> vector<8x8xf32>
    %95 = arith.addf %86, %94 : vector<8x8xf32>
    %96 = vector.extract_strided_slice %11 {offsets = [0, 1], sizes = [16, 8], strides = [1, 1]} : vector<16x9xf32> to vector<16x8xf32>
    %97 = vector.extract_strided_slice %64 {offsets = [0, 1], sizes = [16, 8], strides = [1, 1]} : vector<16x9xf32> to vector<16x8xf32>
    %98 = vector.broadcast %43 : vector<1x8xf32> to vector<16x8xf32>
    %99 = arith.mulf %98, %97 : vector<16x8xf32>
    %cst_34 = arith.constant 1.000000e+00 : f32
    %100 = vector.broadcast %cst_34 : f32 to vector<16x8xf32>
    %101 = arith.subf %100, %99 : vector<16x8xf32>
    %102 = arith.mulf %96, %101 : vector<16x8xf32>
    %cst_35 = arith.constant dense<0.000000e+00> : vector<8x8xf32>
    %103 = tpu.matmul %3, %102, %cst_35 {dimension_numbers = #tpu.dot_dimension_numbers<[1], [0], [0], [1], [0, 0, 1, 1], [], []>} : vector<8x16xf32>, vector<16x8xf32>, vector<8x8xf32> -> vector<8x8xf32>
    %104 = arith.addf %95, %103 : vector<8x8xf32>
    %105 = vector.extract_strided_slice %13 {offsets = [0, 0], sizes = [16, 8], strides = [1, 1]} : vector<16x9xf32> to vector<16x8xf32>
    %106 = vector.extract_strided_slice %85 {offsets = [0, 0], sizes = [16, 8], strides = [1, 1]} : vector<16x9xf32> to vector<16x8xf32>
    %107 = vector.broadcast %43 : vector<1x8xf32> to vector<16x8xf32>
    %108 = arith.mulf %107, %106 : vector<16x8xf32>
    %cst_36 = arith.constant 1.000000e+00 : f32
    %109 = vector.broadcast %cst_36 : f32 to vector<16x8xf32>
    %110 = arith.subf %109, %108 : vector<16x8xf32>
    %111 = arith.mulf %105, %110 : vector<16x8xf32>
    %cst_37 = arith.constant dense<0.000000e+00> : vector<8x8xf32>
    %112 = tpu.matmul %4, %111, %cst_37 {dimension_numbers = #tpu.dot_dimension_numbers<[1], [0], [0], [1], [0, 0, 1, 1], [], []>} : vector<8x16xf32>, vector<16x8xf32>, vector<8x8xf32> -> vector<8x8xf32>
    %113 = arith.addf %104, %112 : vector<8x8xf32>
    %114 = vector.extract_strided_slice %13 {offsets = [0, 1], sizes = [16, 8], strides = [1, 1]} : vector<16x9xf32> to vector<16x8xf32>
    %115 = vector.extract_strided_slice %85 {offsets = [0, 1], sizes = [16, 8], strides = [1, 1]} : vector<16x9xf32> to vector<16x8xf32>
    %116 = vector.broadcast %43 : vector<1x8xf32> to vector<16x8xf32>
    %117 = arith.mulf %116, %115 : vector<16x8xf32>
    %cst_38 = arith.constant 1.000000e+00 : f32
    %118 = vector.broadcast %cst_38 : f32 to vector<16x8xf32>
    %119 = arith.subf %118, %117 : vector<16x8xf32>
    %120 = arith.mulf %114, %119 : vector<16x8xf32>
    %cst_39 = arith.constant dense<0.000000e+00> : vector<8x8xf32>
    %121 = tpu.matmul %5, %120, %cst_39 {dimension_numbers = #tpu.dot_dimension_numbers<[1], [0], [0], [1], [0, 0, 1, 1], [], []>} : vector<8x16xf32>, vector<16x8xf32>, vector<8x8xf32> -> vector<8x8xf32>
    %122 = arith.addf %113, %121 : vector<8x8xf32>
    %123 = vector.broadcast %1 : vector<8x1xf32> to vector<8x8xf32>
    %124 = arith.addf %122, %123 : vector<8x8xf32>
    %c0_40 = arith.constant 0 : index
    %c0_41 = arith.constant 0 : index
    %c0_42 = arith.constant 0 : index
    %c0_43 = arith.constant 0 : index
    %125 = vector.load %arg9[%c0_40, %c0_41, %c0_42, %c0_43] : memref<1x8x8x8xf32, #tpu.memory_space<vmem>>, vector<1x8x1x8xf32>
    %126 = vector.shape_cast %125 : vector<1x8x1x8xf32> to vector<8x8xf32>
    %127 = vector.shape_cast %124 : vector<8x8xf32> to vector<1x8x1x8xf32>
    tpu.vector_store %arg9[%c0_40, %c0_41, %c0_42, %c0_43], %127 {strides = array<i32>} : memref<1x8x8x8xf32, #tpu.memory_space<vmem>>, vector<1x8x1x8xf32>,
    %c0_44 = arith.constant 0 : index
    %c1_45 = arith.constant 1 : index
    %c0_46 = arith.constant 0 : index
    %c0_47 = arith.constant 0 : index
    %128 = vector.load %arg2[%c0_44, %c1_45, %c0_46, %c0_47] : memref<1x8x16x9xf32, #tpu.memory_space<vmem>>, vector<1x1x16x9xf32>
    %129 = vector.shape_cast %128 : vector<1x1x16x9xf32> to vector<16x9xf32>
    %c0_48 = arith.constant 0 : index
    %c2_49 = arith.constant 2 : index
    %c0_50 = arith.constant 0 : index
    %c0_51 = arith.constant 0 : index
    %130 = vector.load %arg2[%c0_48, %c2_49, %c0_50, %c0_51] : memref<1x8x16x9xf32, #tpu.memory_space<vmem>>, vector<1x1x16x9xf32>
    %131 = vector.shape_cast %130 : vector<1x1x16x9xf32> to vector<16x9xf32>
    %c0_52 = arith.constant 0 : index
    %c1_53 = arith.constant 1 : index
    %c0_54 = arith.constant 0 : index
    %c0_55 = arith.constant 0 : index
    %132 = vector.load %arg4[%c0_52, %c1_53, %c0_54, %c0_55] : memref<1x8x4x9xf32, #tpu.memory_space<vmem>>, vector<1x1x4x9xf32>
    %133 = vector.shape_cast %132 : vector<1x1x4x9xf32> to vector<4x9xf32>
    %c0_56 = arith.constant 0 : index
    %c2_57 = arith.constant 2 : index
    %c0_58 = arith.constant 0 : index
    %c0_59 = arith.constant 0 : index
    %134 = vector.load %arg4[%c0_56, %c2_57, %c0_58, %c0_59] : memref<1x8x4x9xf32, #tpu.memory_space<vmem>>, vector<1x1x4x9xf32>
    %135 = vector.shape_cast %134 : vector<1x1x4x9xf32> to vector<4x9xf32>
    %136 = vector.extract_strided_slice %133 {offsets = [0, 0], sizes = [4, 8], strides = [1, 1]} : vector<4x9xf32> to vector<4x8xf32>
    %137 = vector.extract_strided_slice %133 {offsets = [0, 1], sizes = [4, 8], strides = [1, 1]} : vector<4x9xf32> to vector<4x8xf32>
    %138 = arith.addf %136, %137 : vector<4x8xf32>
    %139 = vector.extract_strided_slice %135 {offsets = [0, 0], sizes = [4, 8], strides = [1, 1]} : vector<4x9xf32> to vector<4x8xf32>
    %140 = arith.addf %138, %139 : vector<4x8xf32>
    %141 = vector.extract_strided_slice %135 {offsets = [0, 1], sizes = [4, 8], strides = [1, 1]} : vector<4x9xf32> to vector<4x8xf32>
    %142 = arith.addf %140, %141 : vector<4x8xf32>
    %cst_60 = arith.constant dense<0.000000e+00> : vector<8xf32>
    %143 = vector.multi_reduction <add>, %142, %cst_60 [0] : vector<4x8xf32> to vector<8xf32>
    %144 = vector.shape_cast %143 : vector<8xf32> to vector<1x8xf32>
    %cst_61 = arith.constant 0.000000e+00 : f32
    %145 = vector.broadcast %cst_61 : f32 to vector<1x8xf32>
    %146 = arith.cmpf ogt, %144, %145 : vector<1x8xf32>
    %cst_62 = arith.constant 1.000000e+00 : f32
    %cst_63 = arith.constant 0.000000e+00 : f32
    %147 = vector.broadcast %cst_62 : f32 to vector<1x8xf32>
    %148 = vector.broadcast %cst_63 : f32 to vector<1x8xf32>
    %149 = arith.select %146, %147, %148 : vector<1x8xi1>, vector<1x8xf32>
    %150 = vector.extract_strided_slice %133 {offsets = [3, 0], sizes = [1, 8], strides = [1, 1]} : vector<4x9xf32> to vector<1x8xf32>
    %151 = vector.extract_strided_slice %133 {offsets = [2, 1], sizes = [1, 8], strides = [1, 1]} : vector<4x9xf32> to vector<1x8xf32>
    %152 = arith.maximumf %150, %151 : vector<1x8xf32>
    %153 = vector.extract_strided_slice %135 {offsets = [1, 0], sizes = [1, 8], strides = [1, 1]} : vector<4x9xf32> to vector<1x8xf32>
    %154 = vector.extract_strided_slice %135 {offsets = [0, 1], sizes = [1, 8], strides = [1, 1]} : vector<4x9xf32> to vector<1x8xf32>
    %155 = arith.maximumf %153, %154 : vector<1x8xf32>
    %156 = arith.maximumf %152, %155 : vector<1x8xf32>
    %157 = arith.subf %149, %156 : vector<1x8xf32>
    %cst_64 = arith.constant 0.000000e+00 : f32
    %cst_65 = arith.constant 1.000000e+00 : f32
    %158 = vector.broadcast %cst_64 : f32 to vector<1x8xf32>
    %159 = arith.maximumf %158, %157 : vector<1x8xf32>
    %160 = vector.broadcast %cst_65 : f32 to vector<1x8xf32>
    %161 = arith.minimumf %160, %159 : vector<1x8xf32>
    %162 = vector.extract_strided_slice %133 {offsets = [0, 0], sizes = [1, 9], strides = [1, 1]} : vector<4x9xf32> to vector<1x9xf32>
    %163 = vector.broadcast %6 : vector<16x1xf32> to vector<16x9xf32>
    %164 = vector.broadcast %162 : vector<1x9xf32> to vector<16x9xf32>
    %165 = arith.mulf %163, %164 : vector<16x9xf32>
    %cst_66 = arith.constant 0.000000e+00 : f32
    %166 = vector.broadcast %cst_66 : f32 to vector<16x9xf32>
    %167 = arith.addf %166, %165 : vector<16x9xf32>
    %168 = vector.extract_strided_slice %133 {offsets = [1, 0], sizes = [1, 9], strides = [1, 1]} : vector<4x9xf32> to vector<1x9xf32>
    %169 = vector.broadcast %7 : vector<16x1xf32> to vector<16x9xf32>
    %170 = vector.broadcast %168 : vector<1x9xf32> to vector<16x9xf32>
    %171 = arith.mulf %169, %170 : vector<16x9xf32>
    %172 = arith.addf %167, %171 : vector<16x9xf32>
    %173 = vector.extract_strided_slice %133 {offsets = [2, 0], sizes = [1, 9], strides = [1, 1]} : vector<4x9xf32> to vector<1x9xf32>
    %174 = vector.broadcast %8 : vector<16x1xf32> to vector<16x9xf32>
    %175 = vector.broadcast %173 : vector<1x9xf32> to vector<16x9xf32>
    %176 = arith.mulf %174, %175 : vector<16x9xf32>
    %177 = arith.addf %172, %176 : vector<16x9xf32>
    %178 = vector.extract_strided_slice %133 {offsets = [3, 0], sizes = [1, 9], strides = [1, 1]} : vector<4x9xf32> to vector<1x9xf32>
    %179 = vector.broadcast %9 : vector<16x1xf32> to vector<16x9xf32>
    %180 = vector.broadcast %178 : vector<1x9xf32> to vector<16x9xf32>
    %181 = arith.mulf %179, %180 : vector<16x9xf32>
    %182 = arith.addf %177, %181 : vector<16x9xf32>
    %183 = vector.extract_strided_slice %135 {offsets = [0, 0], sizes = [1, 9], strides = [1, 1]} : vector<4x9xf32> to vector<1x9xf32>
    %184 = vector.broadcast %6 : vector<16x1xf32> to vector<16x9xf32>
    %185 = vector.broadcast %183 : vector<1x9xf32> to vector<16x9xf32>
    %186 = arith.mulf %184, %185 : vector<16x9xf32>
    %cst_67 = arith.constant 0.000000e+00 : f32
    %187 = vector.broadcast %cst_67 : f32 to vector<16x9xf32>
    %188 = arith.addf %187, %186 : vector<16x9xf32>
    %189 = vector.extract_strided_slice %135 {offsets = [1, 0], sizes = [1, 9], strides = [1, 1]} : vector<4x9xf32> to vector<1x9xf32>
    %190 = vector.broadcast %7 : vector<16x1xf32> to vector<16x9xf32>
    %191 = vector.broadcast %189 : vector<1x9xf32> to vector<16x9xf32>
    %192 = arith.mulf %190, %191 : vector<16x9xf32>
    %193 = arith.addf %188, %192 : vector<16x9xf32>
    %194 = vector.extract_strided_slice %135 {offsets = [2, 0], sizes = [1, 9], strides = [1, 1]} : vector<4x9xf32> to vector<1x9xf32>
    %195 = vector.broadcast %8 : vector<16x1xf32> to vector<16x9xf32>
    %196 = vector.broadcast %194 : vector<1x9xf32> to vector<16x9xf32>
    %197 = arith.mulf %195, %196 : vector<16x9xf32>
    %198 = arith.addf %193, %197 : vector<16x9xf32>
    %199 = vector.extract_strided_slice %135 {offsets = [3, 0], sizes = [1, 9], strides = [1, 1]} : vector<4x9xf32> to vector<1x9xf32>
    %200 = vector.broadcast %9 : vector<16x1xf32> to vector<16x9xf32>
    %201 = vector.broadcast %199 : vector<1x9xf32> to vector<16x9xf32>
    %202 = arith.mulf %200, %201 : vector<16x9xf32>
    %203 = arith.addf %198, %202 : vector<16x9xf32>
    %cst_68 = arith.constant 0.000000e+00 : f32
    %204 = vector.broadcast %cst_68 : f32 to vector<8x8xf32>
    %205 = vector.extract_strided_slice %129 {offsets = [0, 0], sizes = [16, 8], strides = [1, 1]} : vector<16x9xf32> to vector<16x8xf32>
    %206 = vector.extract_strided_slice %182 {offsets = [0, 0], sizes = [16, 8], strides = [1, 1]} : vector<16x9xf32> to vector<16x8xf32>
    %207 = vector.broadcast %161 : vector<1x8xf32> to vector<16x8xf32>
    %208 = arith.mulf %207, %206 : vector<16x8xf32>
    %cst_69 = arith.constant 1.000000e+00 : f32
    %209 = vector.broadcast %cst_69 : f32 to vector<16x8xf32>
    %210 = arith.subf %209, %208 : vector<16x8xf32>
    %211 = arith.mulf %205, %210 : vector<16x8xf32>
    %cst_70 = arith.constant dense<0.000000e+00> : vector<8x8xf32>
    %212 = tpu.matmul %2, %211, %cst_70 {dimension_numbers = #tpu.dot_dimension_numbers<[1], [0], [0], [1], [0, 0, 1, 1], [], []>} : vector<8x16xf32>, vector<16x8xf32>, vector<8x8xf32> -> vector<8x8xf32>
    %213 = arith.addf %204, %212 : vector<8x8xf32>
    %214 = vector.extract_strided_slice %129 {offsets = [0, 1], sizes = [16, 8], strides = [1, 1]} : vector<16x9xf32> to vector<16x8xf32>
    %215 = vector.extract_strided_slice %182 {offsets = [0, 1], sizes = [16, 8], strides = [1, 1]} : vector<16x9xf32> to vector<16x8xf32>
    %216 = vector.broadcast %161 : vector<1x8xf32> to vector<16x8xf32>
    %217 = arith.mulf %216, %215 : vector<16x8xf32>
    %cst_71 = arith.constant 1.000000e+00 : f32
    %218 = vector.broadcast %cst_71 : f32 to vector<16x8xf32>
    %219 = arith.subf %218, %217 : vector<16x8xf32>
    %220 = arith.mulf %214, %219 : vector<16x8xf32>
    %cst_72 = arith.constant dense<0.000000e+00> : vector<8x8xf32>
    %221 = tpu.matmul %3, %220, %cst_72 {dimension_numbers = #tpu.dot_dimension_numbers<[1], [0], [0], [1], [0, 0, 1, 1], [], []>} : vector<8x16xf32>, vector<16x8xf32>, vector<8x8xf32> -> vector<8x8xf32>
    %222 = arith.addf %213, %221 : vector<8x8xf32>
    %223 = vector.extract_strided_slice %131 {offsets = [0, 0], sizes = [16, 8], strides = [1, 1]} : vector<16x9xf32> to vector<16x8xf32>
    %224 = vector.extract_strided_slice %203 {offsets = [0, 0], sizes = [16, 8], strides = [1, 1]} : vector<16x9xf32> to vector<16x8xf32>
    %225 = vector.broadcast %161 : vector<1x8xf32> to vector<16x8xf32>
    %226 = arith.mulf %225, %224 : vector<16x8xf32>
    %cst_73 = arith.constant 1.000000e+00 : f32
    %227 = vector.broadcast %cst_73 : f32 to vector<16x8xf32>
    %228 = arith.subf %227, %226 : vector<16x8xf32>
    %229 = arith.mulf %223, %228 : vector<16x8xf32>
    %cst_74 = arith.constant dense<0.000000e+00> : vector<8x8xf32>
    %230 = tpu.matmul %4, %229, %cst_74 {dimension_numbers = #tpu.dot_dimension_numbers<[1], [0], [0], [1], [0, 0, 1, 1], [], []>} : vector<8x16xf32>, vector<16x8xf32>, vector<8x8xf32> -> vector<8x8xf32>
    %231 = arith.addf %222, %230 : vector<8x8xf32>
    %232 = vector.extract_strided_slice %131 {offsets = [0, 1], sizes = [16, 8], strides = [1, 1]} : vector<16x9xf32> to vector<16x8xf32>
    %233 = vector.extract_strided_slice %203 {offsets = [0, 1], sizes = [16, 8], strides = [1, 1]} : vector<16x9xf32> to vector<16x8xf32>
    %234 = vector.broadcast %161 : vector<1x8xf32> to vector<16x8xf32>
    %235 = arith.mulf %234, %233 : vector<16x8xf32>
    %cst_75 = arith.constant 1.000000e+00 : f32
    %236 = vector.broadcast %cst_75 : f32 to vector<16x8xf32>
    %237 = arith.subf %236, %235 : vector<16x8xf32>
    %238 = arith.mulf %232, %237 : vector<16x8xf32>
    %cst_76 = arith.constant dense<0.000000e+00> : vector<8x8xf32>
    %239 = tpu.matmul %5, %238, %cst_76 {dimension_numbers = #tpu.dot_dimension_numbers<[1], [0], [0], [1], [0, 0, 1, 1], [], []>} : vector<8x16xf32>, vector<16x8xf32>, vector<8x8xf32> -> vector<8x8xf32>
    %240 = arith.addf %231, %239 : vector<8x8xf32>
    %241 = vector.broadcast %1 : vector<8x1xf32> to vector<8x8xf32>
    %242 = arith.addf %240, %241 : vector<8x8xf32>
    %c0_77 = arith.constant 0 : index
    %c0_78 = arith.constant 0 : index
    %c1_79 = arith.constant 1 : index
    %c0_80 = arith.constant 0 : index
    %243 = vector.load %arg9[%c0_77, %c0_78, %c1_79, %c0_80] : memref<1x8x8x8xf32, #tpu.memory_space<vmem>>, vector<1x8x1x8xf32>
    %244 = vector.shape_cast %243 : vector<1x8x1x8xf32> to vector<8x8xf32>
    %245 = vector.shape_cast %242 : vector<8x8xf32> to vector<1x8x1x8xf32>
    tpu.vector_store %arg9[%c0_77, %c0_78, %c1_79, %c0_80], %245 {strides = array<i32>} : memref<1x8x8x8xf32, #tpu.memory_space<vmem>>, vector<1x8x1x8xf32>,
    %c0_81 = arith.constant 0 : index
    %c2_82 = arith.constant 2 : index
    %c0_83 = arith.constant 0 : index
    %c0_84 = arith.constant 0 : index
    %246 = vector.load %arg2[%c0_81, %c2_82, %c0_83, %c0_84] : memref<1x8x16x9xf32, #tpu.memory_space<vmem>>, vector<1x1x16x9xf32>
    %247 = vector.shape_cast %246 : vector<1x1x16x9xf32> to vector<16x9xf32>
    %c0_85 = arith.constant 0 : index
    %c3_86 = arith.constant 3 : index
    %c0_87 = arith.constant 0 : index
    %c0_88 = arith.constant 0 : index
    %248 = vector.load %arg2[%c0_85, %c3_86, %c0_87, %c0_88] : memref<1x8x16x9xf32, #tpu.memory_space<vmem>>, vector<1x1x16x9xf32>
    %249 = vector.shape_cast %248 : vector<1x1x16x9xf32> to vector<16x9xf32>
    %c0_89 = arith.constant 0 : index
    %c2_90 = arith.constant 2 : index
    %c0_91 = arith.constant 0 : index
    %c0_92 = arith.constant 0 : index
    %250 = vector.load %arg4[%c0_89, %c2_90, %c0_91, %c0_92] : memref<1x8x4x9xf32, #tpu.memory_space<vmem>>, vector<1x1x4x9xf32>
    %251 = vector.shape_cast %250 : vector<1x1x4x9xf32> to vector<4x9xf32>
    %c0_93 = arith.constant 0 : index
    %c3_94 = arith.constant 3 : index
    %c0_95 = arith.constant 0 : index
    %c0_96 = arith.constant 0 : index
    %252 = vector.load %arg4[%c0_93, %c3_94, %c0_95, %c0_96] : memref<1x8x4x9xf32, #tpu.memory_space<vmem>>, vector<1x1x4x9xf32>
    %253 = vector.shape_cast %252 : vector<1x1x4x9xf32> to vector<4x9xf32>
    %254 = vector.extract_strided_slice %251 {offsets = [0, 0], sizes = [4, 8], strides = [1, 1]} : vector<4x9xf32> to vector<4x8xf32>
    %255 = vector.extract_strided_slice %251 {offsets = [0, 1], sizes = [4, 8], strides = [1, 1]} : vector<4x9xf32> to vector<4x8xf32>
    %256 = arith.addf %254, %255 : vector<4x8xf32>
    %257 = vector.extract_strided_slice %253 {offsets = [0, 0], sizes = [4, 8], strides = [1, 1]} : vector<4x9xf32> to vector<4x8xf32>
    %258 = arith.addf %256, %257 : vector<4x8xf32>
    %259 = vector.extract_strided_slice %253 {offsets = [0, 1], sizes = [4, 8], strides = [1, 1]} : vector<4x9xf32> to vector<4x8xf32>
    %260 = arith.addf %258, %259 : vector<4x8xf32>
    %cst_97 = arith.constant dense<0.000000e+00> : vector<8xf32>
    %261 = vector.multi_reduction <add>, %260, %cst_97 [0] : vector<4x8xf32> to vector<8xf32>
    %262 = vector.shape_cast %261 : vector<8xf32> to vector<1x8xf32>
    %cst_98 = arith.constant 0.000000e+00 : f32
    %263 = vector.broadcast %cst_98 : f32 to vector<1x8xf32>
    %264 = arith.cmpf ogt, %262, %263 : vector<1x8xf32>
    %cst_99 = arith.constant 1.000000e+00 : f32
    %cst_100 = arith.constant 0.000000e+00 : f32
    %265 = vector.broadcast %cst_99 : f32 to vector<1x8xf32>
    %266 = vector.broadcast %cst_100 : f32 to vector<1x8xf32>
    %267 = arith.select %264, %265, %266 : vector<1x8xi1>, vector<1x8xf32>
    %268 = vector.extract_strided_slice %251 {offsets = [3, 0], sizes = [1, 8], strides = [1, 1]} : vector<4x9xf32> to vector<1x8xf32>
    %269 = vector.extract_strided_slice %251 {offsets = [2, 1], sizes = [1, 8], strides = [1, 1]} : vector<4x9xf32> to vector<1x8xf32>
    %270 = arith.maximumf %268, %269 : vector<1x8xf32>
    %271 = vector.extract_strided_slice %253 {offsets = [1, 0], sizes = [1, 8], strides = [1, 1]} : vector<4x9xf32> to vector<1x8xf32>
    %272 = vector.extract_strided_slice %253 {offsets = [0, 1], sizes = [1, 8], strides = [1, 1]} : vector<4x9xf32> to vector<1x8xf32>
    %273 = arith.maximumf %271, %272 : vector<1x8xf32>
    %274 = arith.maximumf %270, %273 : vector<1x8xf32>
    %275 = arith.subf %267, %274 : vector<1x8xf32>
    %cst_101 = arith.constant 0.000000e+00 : f32
    %cst_102 = arith.constant 1.000000e+00 : f32
    %276 = vector.broadcast %cst_101 : f32 to vector<1x8xf32>
    %277 = arith.maximumf %276, %275 : vector<1x8xf32>
    %278 = vector.broadcast %cst_102 : f32 to vector<1x8xf32>
    %279 = arith.minimumf %278, %277 : vector<1x8xf32>
    %280 = vector.extract_strided_slice %251 {offsets = [0, 0], sizes = [1, 9], strides = [1, 1]} : vector<4x9xf32> to vector<1x9xf32>
    %281 = vector.broadcast %6 : vector<16x1xf32> to vector<16x9xf32>
    %282 = vector.broadcast %280 : vector<1x9xf32> to vector<16x9xf32>
    %283 = arith.mulf %281, %282 : vector<16x9xf32>
    %cst_103 = arith.constant 0.000000e+00 : f32
    %284 = vector.broadcast %cst_103 : f32 to vector<16x9xf32>
    %285 = arith.addf %284, %283 : vector<16x9xf32>
    %286 = vector.extract_strided_slice %251 {offsets = [1, 0], sizes = [1, 9], strides = [1, 1]} : vector<4x9xf32> to vector<1x9xf32>
    %287 = vector.broadcast %7 : vector<16x1xf32> to vector<16x9xf32>
    %288 = vector.broadcast %286 : vector<1x9xf32> to vector<16x9xf32>
    %289 = arith.mulf %287, %288 : vector<16x9xf32>
    %290 = arith.addf %285, %289 : vector<16x9xf32>
    %291 = vector.extract_strided_slice %251 {offsets = [2, 0], sizes = [1, 9], strides = [1, 1]} : vector<4x9xf32> to vector<1x9xf32>
    %292 = vector.broadcast %8 : vector<16x1xf32> to vector<16x9xf32>
    %293 = vector.broadcast %291 : vector<1x9xf32> to vector<16x9xf32>
    %294 = arith.mulf %292, %293 : vector<16x9xf32>
    %295 = arith.addf %290, %294 : vector<16x9xf32>
    %296 = vector.extract_strided_slice %251 {offsets = [3, 0], sizes = [1, 9], strides = [1, 1]} : vector<4x9xf32> to vector<1x9xf32>
    %297 = vector.broadcast %9 : vector<16x1xf32> to vector<16x9xf32>
    %298 = vector.broadcast %296 : vector<1x9xf32> to vector<16x9xf32>
    %299 = arith.mulf %297, %298 : vector<16x9xf32>
    %300 = arith.addf %295, %299 : vector<16x9xf32>
    %301 = vector.extract_strided_slice %253 {offsets = [0, 0], sizes = [1, 9], strides = [1, 1]} : vector<4x9xf32> to vector<1x9xf32>
    %302 = vector.broadcast %6 : vector<16x1xf32> to vector<16x9xf32>
    %303 = vector.broadcast %301 : vector<1x9xf32> to vector<16x9xf32>
    %304 = arith.mulf %302, %303 : vector<16x9xf32>
    %cst_104 = arith.constant 0.000000e+00 : f32
    %305 = vector.broadcast %cst_104 : f32 to vector<16x9xf32>
    %306 = arith.addf %305, %304 : vector<16x9xf32>
    %307 = vector.extract_strided_slice %253 {offsets = [1, 0], sizes = [1, 9], strides = [1, 1]} : vector<4x9xf32> to vector<1x9xf32>
    %308 = vector.broadcast %7 : vector<16x1xf32> to vector<16x9xf32>
    %309 = vector.broadcast %307 : vector<1x9xf32> to vector<16x9xf32>
    %310 = arith.mulf %308, %309 : vector<16x9xf32>
    %311 = arith.addf %306, %310 : vector<16x9xf32>
    %312 = vector.extract_strided_slice %253 {offsets = [2, 0], sizes = [1, 9], strides = [1, 1]} : vector<4x9xf32> to vector<1x9xf32>
    %313 = vector.broadcast %8 : vector<16x1xf32> to vector<16x9xf32>
    %314 = vector.broadcast %312 : vector<1x9xf32> to vector<16x9xf32>
    %315 = arith.mulf %313, %314 : vector<16x9xf32>
    %316 = arith.addf %311, %315 : vector<16x9xf32>
    %317 = vector.extract_strided_slice %253 {offsets = [3, 0], sizes = [1, 9], strides = [1, 1]} : vector<4x9xf32> to vector<1x9xf32>
    %318 = vector.broadcast %9 : vector<16x1xf32> to vector<16x9xf32>
    %319 = vector.broadcast %317 : vector<1x9xf32> to vector<16x9xf32>
    %320 = arith.mulf %318, %319 : vector<16x9xf32>
    %321 = arith.addf %316, %320 : vector<16x9xf32>
    %cst_105 = arith.constant 0.000000e+00 : f32
    %322 = vector.broadcast %cst_105 : f32 to vector<8x8xf32>
    %323 = vector.extract_strided_slice %247 {offsets = [0, 0], sizes = [16, 8], strides = [1, 1]} : vector<16x9xf32> to vector<16x8xf32>
    %324 = vector.extract_strided_slice %300 {offsets = [0, 0], sizes = [16, 8], strides = [1, 1]} : vector<16x9xf32> to vector<16x8xf32>
    %325 = vector.broadcast %279 : vector<1x8xf32> to vector<16x8xf32>
    %326 = arith.mulf %325, %324 : vector<16x8xf32>
    %cst_106 = arith.constant 1.000000e+00 : f32
    %327 = vector.broadcast %cst_106 : f32 to vector<16x8xf32>
    %328 = arith.subf %327, %326 : vector<16x8xf32>
    %329 = arith.mulf %323, %328 : vector<16x8xf32>
    %cst_107 = arith.constant dense<0.000000e+00> : vector<8x8xf32>
    %330 = tpu.matmul %2, %329, %cst_107 {dimension_numbers = #tpu.dot_dimension_numbers<[1], [0], [0], [1], [0, 0, 1, 1], [], []>} : vector<8x16xf32>, vector<16x8xf32>, vector<8x8xf32> -> vector<8x8xf32>
    %331 = arith.addf %322, %330 : vector<8x8xf32>
    %332 = vector.extract_strided_slice %247 {offsets = [0, 1], sizes = [16, 8], strides = [1, 1]} : vector<16x9xf32> to vector<16x8xf32>
    %333 = vector.extract_strided_slice %300 {offsets = [0, 1], sizes = [16, 8], strides = [1, 1]} : vector<16x9xf32> to vector<16x8xf32>
    %334 = vector.broadcast %279 : vector<1x8xf32> to vector<16x8xf32>
    %335 = arith.mulf %334, %333 : vector<16x8xf32>
    %cst_108 = arith.constant 1.000000e+00 : f32
    %336 = vector.broadcast %cst_108 : f32 to vector<16x8xf32>
    %337 = arith.subf %336, %335 : vector<16x8xf32>
    %338 = arith.mulf %332, %337 : vector<16x8xf32>
    %cst_109 = arith.constant dense<0.000000e+00> : vector<8x8xf32>
    %339 = tpu.matmul %3, %338, %cst_109 {dimension_numbers = #tpu.dot_dimension_numbers<[1], [0], [0], [1], [0, 0, 1, 1], [], []>} : vector<8x16xf32>, vector<16x8xf32>, vector<8x8xf32> -> vector<8x8xf32>
    %340 = arith.addf %331, %339 : vector<8x8xf32>
    %341 = vector.extract_strided_slice %249 {offsets = [0, 0], sizes = [16, 8], strides = [1, 1]} : vector<16x9xf32> to vector<16x8xf32>
    %342 = vector.extract_strided_slice %321 {offsets = [0, 0], sizes = [16, 8], strides = [1, 1]} : vector<16x9xf32> to vector<16x8xf32>
    %343 = vector.broadcast %279 : vector<1x8xf32> to vector<16x8xf32>
    %344 = arith.mulf %343, %342 : vector<16x8xf32>
    %cst_110 = arith.constant 1.000000e+00 : f32
    %345 = vector.broadcast %cst_110 : f32 to vector<16x8xf32>
    %346 = arith.subf %345, %344 : vector<16x8xf32>
    %347 = arith.mulf %341, %346 : vector<16x8xf32>
    %cst_111 = arith.constant dense<0.000000e+00> : vector<8x8xf32>
    %348 = tpu.matmul %4, %347, %cst_111 {dimension_numbers = #tpu.dot_dimension_numbers<[1], [0], [0], [1], [0, 0, 1, 1], [], []>} : vector<8x16xf32>, vector<16x8xf32>, vector<8x8xf32> -> vector<8x8xf32>
    %349 = arith.addf %340, %348 : vector<8x8xf32>
    %350 = vector.extract_strided_slice %249 {offsets = [0, 1], sizes = [16, 8], strides = [1, 1]} : vector<16x9xf32> to vector<16x8xf32>
    %351 = vector.extract_strided_slice %321 {offsets = [0, 1], sizes = [16, 8], strides = [1, 1]} : vector<16x9xf32> to vector<16x8xf32>
    %352 = vector.broadcast %279 : vector<1x8xf32> to vector<16x8xf32>
    %353 = arith.mulf %352, %351 : vector<16x8xf32>
    %cst_112 = arith.constant 1.000000e+00 : f32
    %354 = vector.broadcast %cst_112 : f32 to vector<16x8xf32>
    %355 = arith.subf %354, %353 : vector<16x8xf32>
    %356 = arith.mulf %350, %355 : vector<16x8xf32>
    %cst_113 = arith.constant dense<0.000000e+00> : vector<8x8xf32>
    %357 = tpu.matmul %5, %356, %cst_113 {dimension_numbers = #tpu.dot_dimension_numbers<[1], [0], [0], [1], [0, 0, 1, 1], [], []>} : vector<8x16xf32>, vector<16x8xf32>, vector<8x8xf32> -> vector<8x8xf32>
    %358 = arith.addf %349, %357 : vector<8x8xf32>
    %359 = vector.broadcast %1 : vector<8x1xf32> to vector<8x8xf32>
    %360 = arith.addf %358, %359 : vector<8x8xf32>
    %c0_114 = arith.constant 0 : index
    %c0_115 = arith.constant 0 : index
    %c2_116 = arith.constant 2 : index
    %c0_117 = arith.constant 0 : index
    %361 = vector.load %arg9[%c0_114, %c0_115, %c2_116, %c0_117] : memref<1x8x8x8xf32, #tpu.memory_space<vmem>>, vector<1x8x1x8xf32>
    %362 = vector.shape_cast %361 : vector<1x8x1x8xf32> to vector<8x8xf32>
    %363 = vector.shape_cast %360 : vector<8x8xf32> to vector<1x8x1x8xf32>
    tpu.vector_store %arg9[%c0_114, %c0_115, %c2_116, %c0_117], %363 {strides = array<i32>} : memref<1x8x8x8xf32, #tpu.memory_space<vmem>>, vector<1x8x1x8xf32>,
    %c0_118 = arith.constant 0 : index
    %c3_119 = arith.constant 3 : index
    %c0_120 = arith.constant 0 : index
    %c0_121 = arith.constant 0 : index
    %364 = vector.load %arg2[%c0_118, %c3_119, %c0_120, %c0_121] : memref<1x8x16x9xf32, #tpu.memory_space<vmem>>, vector<1x1x16x9xf32>
    %365 = vector.shape_cast %364 : vector<1x1x16x9xf32> to vector<16x9xf32>
    %c0_122 = arith.constant 0 : index
    %c4 = arith.constant 4 : index
    %c0_123 = arith.constant 0 : index
    %c0_124 = arith.constant 0 : index
    %366 = vector.load %arg2[%c0_122, %c4, %c0_123, %c0_124] : memref<1x8x16x9xf32, #tpu.memory_space<vmem>>, vector<1x1x16x9xf32>
    %367 = vector.shape_cast %366 : vector<1x1x16x9xf32> to vector<16x9xf32>
    %c0_125 = arith.constant 0 : index
    %c3_126 = arith.constant 3 : index
    %c0_127 = arith.constant 0 : index
    %c0_128 = arith.constant 0 : index
    %368 = vector.load %arg4[%c0_125, %c3_126, %c0_127, %c0_128] : memref<1x8x4x9xf32, #tpu.memory_space<vmem>>, vector<1x1x4x9xf32>
    %369 = vector.shape_cast %368 : vector<1x1x4x9xf32> to vector<4x9xf32>
    %c0_129 = arith.constant 0 : index
    %c4_130 = arith.constant 4 : index
    %c0_131 = arith.constant 0 : index
    %c0_132 = arith.constant 0 : index
    %370 = vector.load %arg4[%c0_129, %c4_130, %c0_131, %c0_132] : memref<1x8x4x9xf32, #tpu.memory_space<vmem>>, vector<1x1x4x9xf32>
    %371 = vector.shape_cast %370 : vector<1x1x4x9xf32> to vector<4x9xf32>
    %372 = vector.extract_strided_slice %369 {offsets = [0, 0], sizes = [4, 8], strides = [1, 1]} : vector<4x9xf32> to vector<4x8xf32>
    %373 = vector.extract_strided_slice %369 {offsets = [0, 1], sizes = [4, 8], strides = [1, 1]} : vector<4x9xf32> to vector<4x8xf32>
    %374 = arith.addf %372, %373 : vector<4x8xf32>
    %375 = vector.extract_strided_slice %371 {offsets = [0, 0], sizes = [4, 8], strides = [1, 1]} : vector<4x9xf32> to vector<4x8xf32>
    %376 = arith.addf %374, %375 : vector<4x8xf32>
    %377 = vector.extract_strided_slice %371 {offsets = [0, 1], sizes = [4, 8], strides = [1, 1]} : vector<4x9xf32> to vector<4x8xf32>
    %378 = arith.addf %376, %377 : vector<4x8xf32>
    %cst_133 = arith.constant dense<0.000000e+00> : vector<8xf32>
    %379 = vector.multi_reduction <add>, %378, %cst_133 [0] : vector<4x8xf32> to vector<8xf32>
    %380 = vector.shape_cast %379 : vector<8xf32> to vector<1x8xf32>
    %cst_134 = arith.constant 0.000000e+00 : f32
    %381 = vector.broadcast %cst_134 : f32 to vector<1x8xf32>
    %382 = arith.cmpf ogt, %380, %381 : vector<1x8xf32>
    %cst_135 = arith.constant 1.000000e+00 : f32
    %cst_136 = arith.constant 0.000000e+00 : f32
    %383 = vector.broadcast %cst_135 : f32 to vector<1x8xf32>
    %384 = vector.broadcast %cst_136 : f32 to vector<1x8xf32>
    %385 = arith.select %382, %383, %384 : vector<1x8xi1>, vector<1x8xf32>
    %386 = vector.extract_strided_slice %369 {offsets = [3, 0], sizes = [1, 8], strides = [1, 1]} : vector<4x9xf32> to vector<1x8xf32>
    %387 = vector.extract_strided_slice %369 {offsets = [2, 1], sizes = [1, 8], strides = [1, 1]} : vector<4x9xf32> to vector<1x8xf32>
    %388 = arith.maximumf %386, %387 : vector<1x8xf32>
    %389 = vector.extract_strided_slice %371 {offsets = [1, 0], sizes = [1, 8], strides = [1, 1]} : vector<4x9xf32> to vector<1x8xf32>
    %390 = vector.extract_strided_slice %371 {offsets = [0, 1], sizes = [1, 8], strides = [1, 1]} : vector<4x9xf32> to vector<1x8xf32>
    %391 = arith.maximumf %389, %390 : vector<1x8xf32>
    %392 = arith.maximumf %388, %391 : vector<1x8xf32>
    %393 = arith.subf %385, %392 : vector<1x8xf32>
    %cst_137 = arith.constant 0.000000e+00 : f32
    %cst_138 = arith.constant 1.000000e+00 : f32
    %394 = vector.broadcast %cst_137 : f32 to vector<1x8xf32>
    %395 = arith.maximumf %394, %393 : vector<1x8xf32>
    %396 = vector.broadcast %cst_138 : f32 to vector<1x8xf32>
    %397 = arith.minimumf %396, %395 : vector<1x8xf32>
    %398 = vector.extract_strided_slice %369 {offsets = [0, 0], sizes = [1, 9], strides = [1, 1]} : vector<4x9xf32> to vector<1x9xf32>
    %399 = vector.broadcast %6 : vector<16x1xf32> to vector<16x9xf32>
    %400 = vector.broadcast %398 : vector<1x9xf32> to vector<16x9xf32>
    %401 = arith.mulf %399, %400 : vector<16x9xf32>
    %cst_139 = arith.constant 0.000000e+00 : f32
    %402 = vector.broadcast %cst_139 : f32 to vector<16x9xf32>
    %403 = arith.addf %402, %401 : vector<16x9xf32>
    %404 = vector.extract_strided_slice %369 {offsets = [1, 0], sizes = [1, 9], strides = [1, 1]} : vector<4x9xf32> to vector<1x9xf32>
    %405 = vector.broadcast %7 : vector<16x1xf32> to vector<16x9xf32>
    %406 = vector.broadcast %404 : vector<1x9xf32> to vector<16x9xf32>
    %407 = arith.mulf %405, %406 : vector<16x9xf32>
    %408 = arith.addf %403, %407 : vector<16x9xf32>
    %409 = vector.extract_strided_slice %369 {offsets = [2, 0], sizes = [1, 9], strides = [1, 1]} : vector<4x9xf32> to vector<1x9xf32>
    %410 = vector.broadcast %8 : vector<16x1xf32> to vector<16x9xf32>
    %411 = vector.broadcast %409 : vector<1x9xf32> to vector<16x9xf32>
    %412 = arith.mulf %410, %411 : vector<16x9xf32>
    %413 = arith.addf %408, %412 : vector<16x9xf32>
    %414 = vector.extract_strided_slice %369 {offsets = [3, 0], sizes = [1, 9], strides = [1, 1]} : vector<4x9xf32> to vector<1x9xf32>
    %415 = vector.broadcast %9 : vector<16x1xf32> to vector<16x9xf32>
    %416 = vector.broadcast %414 : vector<1x9xf32> to vector<16x9xf32>
    %417 = arith.mulf %415, %416 : vector<16x9xf32>
    %418 = arith.addf %413, %417 : vector<16x9xf32>
    %419 = vector.extract_strided_slice %371 {offsets = [0, 0], sizes = [1, 9], strides = [1, 1]} : vector<4x9xf32> to vector<1x9xf32>
    %420 = vector.broadcast %6 : vector<16x1xf32> to vector<16x9xf32>
    %421 = vector.broadcast %419 : vector<1x9xf32> to vector<16x9xf32>
    %422 = arith.mulf %420, %421 : vector<16x9xf32>
    %cst_140 = arith.constant 0.000000e+00 : f32
    %423 = vector.broadcast %cst_140 : f32 to vector<16x9xf32>
    %424 = arith.addf %423, %422 : vector<16x9xf32>
    %425 = vector.extract_strided_slice %371 {offsets = [1, 0], sizes = [1, 9], strides = [1, 1]} : vector<4x9xf32> to vector<1x9xf32>
    %426 = vector.broadcast %7 : vector<16x1xf32> to vector<16x9xf32>
    %427 = vector.broadcast %425 : vector<1x9xf32> to vector<16x9xf32>
    %428 = arith.mulf %426, %427 : vector<16x9xf32>
    %429 = arith.addf %424, %428 : vector<16x9xf32>
    %430 = vector.extract_strided_slice %371 {offsets = [2, 0], sizes = [1, 9], strides = [1, 1]} : vector<4x9xf32> to vector<1x9xf32>
    %431 = vector.broadcast %8 : vector<16x1xf32> to vector<16x9xf32>
    %432 = vector.broadcast %430 : vector<1x9xf32> to vector<16x9xf32>
    %433 = arith.mulf %431, %432 : vector<16x9xf32>
    %434 = arith.addf %429, %433 : vector<16x9xf32>
    %435 = vector.extract_strided_slice %371 {offsets = [3, 0], sizes = [1, 9], strides = [1, 1]} : vector<4x9xf32> to vector<1x9xf32>
    %436 = vector.broadcast %9 : vector<16x1xf32> to vector<16x9xf32>
    %437 = vector.broadcast %435 : vector<1x9xf32> to vector<16x9xf32>
    %438 = arith.mulf %436, %437 : vector<16x9xf32>
    %439 = arith.addf %434, %438 : vector<16x9xf32>
    %cst_141 = arith.constant 0.000000e+00 : f32
    %440 = vector.broadcast %cst_141 : f32 to vector<8x8xf32>
    %441 = vector.extract_strided_slice %365 {offsets = [0, 0], sizes = [16, 8], strides = [1, 1]} : vector<16x9xf32> to vector<16x8xf32>
    %442 = vector.extract_strided_slice %418 {offsets = [0, 0], sizes = [16, 8], strides = [1, 1]} : vector<16x9xf32> to vector<16x8xf32>
    %443 = vector.broadcast %397 : vector<1x8xf32> to vector<16x8xf32>
    %444 = arith.mulf %443, %442 : vector<16x8xf32>
    %cst_142 = arith.constant 1.000000e+00 : f32
    %445 = vector.broadcast %cst_142 : f32 to vector<16x8xf32>
    %446 = arith.subf %445, %444 : vector<16x8xf32>
    %447 = arith.mulf %441, %446 : vector<16x8xf32>
    %cst_143 = arith.constant dense<0.000000e+00> : vector<8x8xf32>
    %448 = tpu.matmul %2, %447, %cst_143 {dimension_numbers = #tpu.dot_dimension_numbers<[1], [0], [0], [1], [0, 0, 1, 1], [], []>} : vector<8x16xf32>, vector<16x8xf32>, vector<8x8xf32> -> vector<8x8xf32>
    %449 = arith.addf %440, %448 : vector<8x8xf32>
    %450 = vector.extract_strided_slice %365 {offsets = [0, 1], sizes = [16, 8], strides = [1, 1]} : vector<16x9xf32> to vector<16x8xf32>
    %451 = vector.extract_strided_slice %418 {offsets = [0, 1], sizes = [16, 8], strides = [1, 1]} : vector<16x9xf32> to vector<16x8xf32>
    %452 = vector.broadcast %397 : vector<1x8xf32> to vector<16x8xf32>
    %453 = arith.mulf %452, %451 : vector<16x8xf32>
    %cst_144 = arith.constant 1.000000e+00 : f32
    %454 = vector.broadcast %cst_144 : f32 to vector<16x8xf32>
    %455 = arith.subf %454, %453 : vector<16x8xf32>
    %456 = arith.mulf %450, %455 : vector<16x8xf32>
    %cst_145 = arith.constant dense<0.000000e+00> : vector<8x8xf32>
    %457 = tpu.matmul %3, %456, %cst_145 {dimension_numbers = #tpu.dot_dimension_numbers<[1], [0], [0], [1], [0, 0, 1, 1], [], []>} : vector<8x16xf32>, vector<16x8xf32>, vector<8x8xf32> -> vector<8x8xf32>
    %458 = arith.addf %449, %457 : vector<8x8xf32>
    %459 = vector.extract_strided_slice %367 {offsets = [0, 0], sizes = [16, 8], strides = [1, 1]} : vector<16x9xf32> to vector<16x8xf32>
    %460 = vector.extract_strided_slice %439 {offsets = [0, 0], sizes = [16, 8], strides = [1, 1]} : vector<16x9xf32> to vector<16x8xf32>
    %461 = vector.broadcast %397 : vector<1x8xf32> to vector<16x8xf32>
    %462 = arith.mulf %461, %460 : vector<16x8xf32>
    %cst_146 = arith.constant 1.000000e+00 : f32
    %463 = vector.broadcast %cst_146 : f32 to vector<16x8xf32>
    %464 = arith.subf %463, %462 : vector<16x8xf32>
    %465 = arith.mulf %459, %464 : vector<16x8xf32>
    %cst_147 = arith.constant dense<0.000000e+00> : vector<8x8xf32>
    %466 = tpu.matmul %4, %465, %cst_147 {dimension_numbers = #tpu.dot_dimension_numbers<[1], [0], [0], [1], [0, 0, 1, 1], [], []>} : vector<8x16xf32>, vector<16x8xf32>, vector<8x8xf32> -> vector<8x8xf32>
    %467 = arith.addf %458, %466 : vector<8x8xf32>
    %468 = vector.extract_strided_slice %367 {offsets = [0, 1], sizes = [16, 8], strides = [1, 1]} : vector<16x9xf32> to vector<16x8xf32>
    %469 = vector.extract_strided_slice %439 {offsets = [0, 1], sizes = [16, 8], strides = [1, 1]} : vector<16x9xf32> to vector<16x8xf32>
    %470 = vector.broadcast %397 : vector<1x8xf32> to vector<16x8xf32>
    %471 = arith.mulf %470, %469 : vector<16x8xf32>
    %cst_148 = arith.constant 1.000000e+00 : f32
    %472 = vector.broadcast %cst_148 : f32 to vector<16x8xf32>
    %473 = arith.subf %472, %471 : vector<16x8xf32>
    %474 = arith.mulf %468, %473 : vector<16x8xf32>
    %cst_149 = arith.constant dense<0.000000e+00> : vector<8x8xf32>
    %475 = tpu.matmul %5, %474, %cst_149 {dimension_numbers = #tpu.dot_dimension_numbers<[1], [0], [0], [1], [0, 0, 1, 1], [], []>} : vector<8x16xf32>, vector<16x8xf32>, vector<8x8xf32> -> vector<8x8xf32>
    %476 = arith.addf %467, %475 : vector<8x8xf32>
    %477 = vector.broadcast %1 : vector<8x1xf32> to vector<8x8xf32>
    %478 = arith.addf %476, %477 : vector<8x8xf32>
    %c0_150 = arith.constant 0 : index
    %c0_151 = arith.constant 0 : index
    %c3_152 = arith.constant 3 : index
    %c0_153 = arith.constant 0 : index
    %479 = vector.load %arg9[%c0_150, %c0_151, %c3_152, %c0_153] : memref<1x8x8x8xf32, #tpu.memory_space<vmem>>, vector<1x8x1x8xf32>
    %480 = vector.shape_cast %479 : vector<1x8x1x8xf32> to vector<8x8xf32>
    %481 = vector.shape_cast %478 : vector<8x8xf32> to vector<1x8x1x8xf32>
    tpu.vector_store %arg9[%c0_150, %c0_151, %c3_152, %c0_153], %481 {strides = array<i32>} : memref<1x8x8x8xf32, #tpu.memory_space<vmem>>, vector<1x8x1x8xf32>,
    %c0_154 = arith.constant 0 : index
    %c4_155 = arith.constant 4 : index
    %c0_156 = arith.constant 0 : index
    %c0_157 = arith.constant 0 : index
    %482 = vector.load %arg2[%c0_154, %c4_155, %c0_156, %c0_157] : memref<1x8x16x9xf32, #tpu.memory_space<vmem>>, vector<1x1x16x9xf32>
    %483 = vector.shape_cast %482 : vector<1x1x16x9xf32> to vector<16x9xf32>
    %c0_158 = arith.constant 0 : index
    %c5 = arith.constant 5 : index
    %c0_159 = arith.constant 0 : index
    %c0_160 = arith.constant 0 : index
    %484 = vector.load %arg2[%c0_158, %c5, %c0_159, %c0_160] : memref<1x8x16x9xf32, #tpu.memory_space<vmem>>, vector<1x1x16x9xf32>
    %485 = vector.shape_cast %484 : vector<1x1x16x9xf32> to vector<16x9xf32>
    %c0_161 = arith.constant 0 : index
    %c4_162 = arith.constant 4 : index
    %c0_163 = arith.constant 0 : index
    %c0_164 = arith.constant 0 : index
    %486 = vector.load %arg4[%c0_161, %c4_162, %c0_163, %c0_164] : memref<1x8x4x9xf32, #tpu.memory_space<vmem>>, vector<1x1x4x9xf32>
    %487 = vector.shape_cast %486 : vector<1x1x4x9xf32> to vector<4x9xf32>
    %c0_165 = arith.constant 0 : index
    %c5_166 = arith.constant 5 : index
    %c0_167 = arith.constant 0 : index
    %c0_168 = arith.constant 0 : index
    %488 = vector.load %arg4[%c0_165, %c5_166, %c0_167, %c0_168] : memref<1x8x4x9xf32, #tpu.memory_space<vmem>>, vector<1x1x4x9xf32>
    %489 = vector.shape_cast %488 : vector<1x1x4x9xf32> to vector<4x9xf32>
    %490 = vector.extract_strided_slice %487 {offsets = [0, 0], sizes = [4, 8], strides = [1, 1]} : vector<4x9xf32> to vector<4x8xf32>
    %491 = vector.extract_strided_slice %487 {offsets = [0, 1], sizes = [4, 8], strides = [1, 1]} : vector<4x9xf32> to vector<4x8xf32>
    %492 = arith.addf %490, %491 : vector<4x8xf32>
    %493 = vector.extract_strided_slice %489 {offsets = [0, 0], sizes = [4, 8], strides = [1, 1]} : vector<4x9xf32> to vector<4x8xf32>
    %494 = arith.addf %492, %493 : vector<4x8xf32>
    %495 = vector.extract_strided_slice %489 {offsets = [0, 1], sizes = [4, 8], strides = [1, 1]} : vector<4x9xf32> to vector<4x8xf32>
    %496 = arith.addf %494, %495 : vector<4x8xf32>
    %cst_169 = arith.constant dense<0.000000e+00> : vector<8xf32>
    %497 = vector.multi_reduction <add>, %496, %cst_169 [0] : vector<4x8xf32> to vector<8xf32>
    %498 = vector.shape_cast %497 : vector<8xf32> to vector<1x8xf32>
    %cst_170 = arith.constant 0.000000e+00 : f32
    %499 = vector.broadcast %cst_170 : f32 to vector<1x8xf32>
    %500 = arith.cmpf ogt, %498, %499 : vector<1x8xf32>
    %cst_171 = arith.constant 1.000000e+00 : f32
    %cst_172 = arith.constant 0.000000e+00 : f32
    %501 = vector.broadcast %cst_171 : f32 to vector<1x8xf32>
    %502 = vector.broadcast %cst_172 : f32 to vector<1x8xf32>
    %503 = arith.select %500, %501, %502 : vector<1x8xi1>, vector<1x8xf32>
    %504 = vector.extract_strided_slice %487 {offsets = [3, 0], sizes = [1, 8], strides = [1, 1]} : vector<4x9xf32> to vector<1x8xf32>
    %505 = vector.extract_strided_slice %487 {offsets = [2, 1], sizes = [1, 8], strides = [1, 1]} : vector<4x9xf32> to vector<1x8xf32>
    %506 = arith.maximumf %504, %505 : vector<1x8xf32>
    %507 = vector.extract_strided_slice %489 {offsets = [1, 0], sizes = [1, 8], strides = [1, 1]} : vector<4x9xf32> to vector<1x8xf32>
    %508 = vector.extract_strided_slice %489 {offsets = [0, 1], sizes = [1, 8], strides = [1, 1]} : vector<4x9xf32> to vector<1x8xf32>
    %509 = arith.maximumf %507, %508 : vector<1x8xf32>
    %510 = arith.maximumf %506, %509 : vector<1x8xf32>
    %511 = arith.subf %503, %510 : vector<1x8xf32>
    %cst_173 = arith.constant 0.000000e+00 : f32
    %cst_174 = arith.constant 1.000000e+00 : f32
    %512 = vector.broadcast %cst_173 : f32 to vector<1x8xf32>
    %513 = arith.maximumf %512, %511 : vector<1x8xf32>
    %514 = vector.broadcast %cst_174 : f32 to vector<1x8xf32>
    %515 = arith.minimumf %514, %513 : vector<1x8xf32>
    %516 = vector.extract_strided_slice %487 {offsets = [0, 0], sizes = [1, 9], strides = [1, 1]} : vector<4x9xf32> to vector<1x9xf32>
    %517 = vector.broadcast %6 : vector<16x1xf32> to vector<16x9xf32>
    %518 = vector.broadcast %516 : vector<1x9xf32> to vector<16x9xf32>
    %519 = arith.mulf %517, %518 : vector<16x9xf32>
    %cst_175 = arith.constant 0.000000e+00 : f32
    %520 = vector.broadcast %cst_175 : f32 to vector<16x9xf32>
    %521 = arith.addf %520, %519 : vector<16x9xf32>
    %522 = vector.extract_strided_slice %487 {offsets = [1, 0], sizes = [1, 9], strides = [1, 1]} : vector<4x9xf32> to vector<1x9xf32>
    %523 = vector.broadcast %7 : vector<16x1xf32> to vector<16x9xf32>
    %524 = vector.broadcast %522 : vector<1x9xf32> to vector<16x9xf32>
    %525 = arith.mulf %523, %524 : vector<16x9xf32>
    %526 = arith.addf %521, %525 : vector<16x9xf32>
    %527 = vector.extract_strided_slice %487 {offsets = [2, 0], sizes = [1, 9], strides = [1, 1]} : vector<4x9xf32> to vector<1x9xf32>
    %528 = vector.broadcast %8 : vector<16x1xf32> to vector<16x9xf32>
    %529 = vector.broadcast %527 : vector<1x9xf32> to vector<16x9xf32>
    %530 = arith.mulf %528, %529 : vector<16x9xf32>
    %531 = arith.addf %526, %530 : vector<16x9xf32>
    %532 = vector.extract_strided_slice %487 {offsets = [3, 0], sizes = [1, 9], strides = [1, 1]} : vector<4x9xf32> to vector<1x9xf32>
    %533 = vector.broadcast %9 : vector<16x1xf32> to vector<16x9xf32>
    %534 = vector.broadcast %532 : vector<1x9xf32> to vector<16x9xf32>
    %535 = arith.mulf %533, %534 : vector<16x9xf32>
    %536 = arith.addf %531, %535 : vector<16x9xf32>
    %537 = vector.extract_strided_slice %489 {offsets = [0, 0], sizes = [1, 9], strides = [1, 1]} : vector<4x9xf32> to vector<1x9xf32>
    %538 = vector.broadcast %6 : vector<16x1xf32> to vector<16x9xf32>
    %539 = vector.broadcast %537 : vector<1x9xf32> to vector<16x9xf32>
    %540 = arith.mulf %538, %539 : vector<16x9xf32>
    %cst_176 = arith.constant 0.000000e+00 : f32
    %541 = vector.broadcast %cst_176 : f32 to vector<16x9xf32>
    %542 = arith.addf %541, %540 : vector<16x9xf32>
    %543 = vector.extract_strided_slice %489 {offsets = [1, 0], sizes = [1, 9], strides = [1, 1]} : vector<4x9xf32> to vector<1x9xf32>
    %544 = vector.broadcast %7 : vector<16x1xf32> to vector<16x9xf32>
    %545 = vector.broadcast %543 : vector<1x9xf32> to vector<16x9xf32>
    %546 = arith.mulf %544, %545 : vector<16x9xf32>
    %547 = arith.addf %542, %546 : vector<16x9xf32>
    %548 = vector.extract_strided_slice %489 {offsets = [2, 0], sizes = [1, 9], strides = [1, 1]} : vector<4x9xf32> to vector<1x9xf32>
    %549 = vector.broadcast %8 : vector<16x1xf32> to vector<16x9xf32>
    %550 = vector.broadcast %548 : vector<1x9xf32> to vector<16x9xf32>
    %551 = arith.mulf %549, %550 : vector<16x9xf32>
    %552 = arith.addf %547, %551 : vector<16x9xf32>
    %553 = vector.extract_strided_slice %489 {offsets = [3, 0], sizes = [1, 9], strides = [1, 1]} : vector<4x9xf32> to vector<1x9xf32>
    %554 = vector.broadcast %9 : vector<16x1xf32> to vector<16x9xf32>
    %555 = vector.broadcast %553 : vector<1x9xf32> to vector<16x9xf32>
    %556 = arith.mulf %554, %555 : vector<16x9xf32>
    %557 = arith.addf %552, %556 : vector<16x9xf32>
    %cst_177 = arith.constant 0.000000e+00 : f32
    %558 = vector.broadcast %cst_177 : f32 to vector<8x8xf32>
    %559 = vector.extract_strided_slice %483 {offsets = [0, 0], sizes = [16, 8], strides = [1, 1]} : vector<16x9xf32> to vector<16x8xf32>
    %560 = vector.extract_strided_slice %536 {offsets = [0, 0], sizes = [16, 8], strides = [1, 1]} : vector<16x9xf32> to vector<16x8xf32>
    %561 = vector.broadcast %515 : vector<1x8xf32> to vector<16x8xf32>
    %562 = arith.mulf %561, %560 : vector<16x8xf32>
    %cst_178 = arith.constant 1.000000e+00 : f32
    %563 = vector.broadcast %cst_178 : f32 to vector<16x8xf32>
    %564 = arith.subf %563, %562 : vector<16x8xf32>
    %565 = arith.mulf %559, %564 : vector<16x8xf32>
    %cst_179 = arith.constant dense<0.000000e+00> : vector<8x8xf32>
    %566 = tpu.matmul %2, %565, %cst_179 {dimension_numbers = #tpu.dot_dimension_numbers<[1], [0], [0], [1], [0, 0, 1, 1], [], []>} : vector<8x16xf32>, vector<16x8xf32>, vector<8x8xf32> -> vector<8x8xf32>
    %567 = arith.addf %558, %566 : vector<8x8xf32>
    %568 = vector.extract_strided_slice %483 {offsets = [0, 1], sizes = [16, 8], strides = [1, 1]} : vector<16x9xf32> to vector<16x8xf32>
    %569 = vector.extract_strided_slice %536 {offsets = [0, 1], sizes = [16, 8], strides = [1, 1]} : vector<16x9xf32> to vector<16x8xf32>
    %570 = vector.broadcast %515 : vector<1x8xf32> to vector<16x8xf32>
    %571 = arith.mulf %570, %569 : vector<16x8xf32>
    %cst_180 = arith.constant 1.000000e+00 : f32
    %572 = vector.broadcast %cst_180 : f32 to vector<16x8xf32>
    %573 = arith.subf %572, %571 : vector<16x8xf32>
    %574 = arith.mulf %568, %573 : vector<16x8xf32>
    %cst_181 = arith.constant dense<0.000000e+00> : vector<8x8xf32>
    %575 = tpu.matmul %3, %574, %cst_181 {dimension_numbers = #tpu.dot_dimension_numbers<[1], [0], [0], [1], [0, 0, 1, 1], [], []>} : vector<8x16xf32>, vector<16x8xf32>, vector<8x8xf32> -> vector<8x8xf32>
    %576 = arith.addf %567, %575 : vector<8x8xf32>
    %577 = vector.extract_strided_slice %485 {offsets = [0, 0], sizes = [16, 8], strides = [1, 1]} : vector<16x9xf32> to vector<16x8xf32>
    %578 = vector.extract_strided_slice %557 {offsets = [0, 0], sizes = [16, 8], strides = [1, 1]} : vector<16x9xf32> to vector<16x8xf32>
    %579 = vector.broadcast %515 : vector<1x8xf32> to vector<16x8xf32>
    %580 = arith.mulf %579, %578 : vector<16x8xf32>
    %cst_182 = arith.constant 1.000000e+00 : f32
    %581 = vector.broadcast %cst_182 : f32 to vector<16x8xf32>
    %582 = arith.subf %581, %580 : vector<16x8xf32>
    %583 = arith.mulf %577, %582 : vector<16x8xf32>
    %cst_183 = arith.constant dense<0.000000e+00> : vector<8x8xf32>
    %584 = tpu.matmul %4, %583, %cst_183 {dimension_numbers = #tpu.dot_dimension_numbers<[1], [0], [0], [1], [0, 0, 1, 1], [], []>} : vector<8x16xf32>, vector<16x8xf32>, vector<8x8xf32> -> vector<8x8xf32>
    %585 = arith.addf %576, %584 : vector<8x8xf32>
    %586 = vector.extract_strided_slice %485 {offsets = [0, 1], sizes = [16, 8], strides = [1, 1]} : vector<16x9xf32> to vector<16x8xf32>
    %587 = vector.extract_strided_slice %557 {offsets = [0, 1], sizes = [16, 8], strides = [1, 1]} : vector<16x9xf32> to vector<16x8xf32>
    %588 = vector.broadcast %515 : vector<1x8xf32> to vector<16x8xf32>
    %589 = arith.mulf %588, %587 : vector<16x8xf32>
    %cst_184 = arith.constant 1.000000e+00 : f32
    %590 = vector.broadcast %cst_184 : f32 to vector<16x8xf32>
    %591 = arith.subf %590, %589 : vector<16x8xf32>
    %592 = arith.mulf %586, %591 : vector<16x8xf32>
    %cst_185 = arith.constant dense<0.000000e+00> : vector<8x8xf32>
    %593 = tpu.matmul %5, %592, %cst_185 {dimension_numbers = #tpu.dot_dimension_numbers<[1], [0], [0], [1], [0, 0, 1, 1], [], []>} : vector<8x16xf32>, vector<16x8xf32>, vector<8x8xf32> -> vector<8x8xf32>
    %594 = arith.addf %585, %593 : vector<8x8xf32>
    %595 = vector.broadcast %1 : vector<8x1xf32> to vector<8x8xf32>
    %596 = arith.addf %594, %595 : vector<8x8xf32>
    %c0_186 = arith.constant 0 : index
    %c0_187 = arith.constant 0 : index
    %c4_188 = arith.constant 4 : index
    %c0_189 = arith.constant 0 : index
    %597 = vector.load %arg9[%c0_186, %c0_187, %c4_188, %c0_189] : memref<1x8x8x8xf32, #tpu.memory_space<vmem>>, vector<1x8x1x8xf32>
    %598 = vector.shape_cast %597 : vector<1x8x1x8xf32> to vector<8x8xf32>
    %599 = vector.shape_cast %596 : vector<8x8xf32> to vector<1x8x1x8xf32>
    tpu.vector_store %arg9[%c0_186, %c0_187, %c4_188, %c0_189], %599 {strides = array<i32>} : memref<1x8x8x8xf32, #tpu.memory_space<vmem>>, vector<1x8x1x8xf32>,
    %c0_190 = arith.constant 0 : index
    %c5_191 = arith.constant 5 : index
    %c0_192 = arith.constant 0 : index
    %c0_193 = arith.constant 0 : index
    %600 = vector.load %arg2[%c0_190, %c5_191, %c0_192, %c0_193] : memref<1x8x16x9xf32, #tpu.memory_space<vmem>>, vector<1x1x16x9xf32>
    %601 = vector.shape_cast %600 : vector<1x1x16x9xf32> to vector<16x9xf32>
    %c0_194 = arith.constant 0 : index
    %c6 = arith.constant 6 : index
    %c0_195 = arith.constant 0 : index
    %c0_196 = arith.constant 0 : index
    %602 = vector.load %arg2[%c0_194, %c6, %c0_195, %c0_196] : memref<1x8x16x9xf32, #tpu.memory_space<vmem>>, vector<1x1x16x9xf32>
    %603 = vector.shape_cast %602 : vector<1x1x16x9xf32> to vector<16x9xf32>
    %c0_197 = arith.constant 0 : index
    %c5_198 = arith.constant 5 : index
    %c0_199 = arith.constant 0 : index
    %c0_200 = arith.constant 0 : index
    %604 = vector.load %arg4[%c0_197, %c5_198, %c0_199, %c0_200] : memref<1x8x4x9xf32, #tpu.memory_space<vmem>>, vector<1x1x4x9xf32>
    %605 = vector.shape_cast %604 : vector<1x1x4x9xf32> to vector<4x9xf32>
    %c0_201 = arith.constant 0 : index
    %c6_202 = arith.constant 6 : index
    %c0_203 = arith.constant 0 : index
    %c0_204 = arith.constant 0 : index
    %606 = vector.load %arg4[%c0_201, %c6_202, %c0_203, %c0_204] : memref<1x8x4x9xf32, #tpu.memory_space<vmem>>, vector<1x1x4x9xf32>
    %607 = vector.shape_cast %606 : vector<1x1x4x9xf32> to vector<4x9xf32>
    %608 = vector.extract_strided_slice %605 {offsets = [0, 0], sizes = [4, 8], strides = [1, 1]} : vector<4x9xf32> to vector<4x8xf32>
    %609 = vector.extract_strided_slice %605 {offsets = [0, 1], sizes = [4, 8], strides = [1, 1]} : vector<4x9xf32> to vector<4x8xf32>
    %610 = arith.addf %608, %609 : vector<4x8xf32>
    %611 = vector.extract_strided_slice %607 {offsets = [0, 0], sizes = [4, 8], strides = [1, 1]} : vector<4x9xf32> to vector<4x8xf32>
    %612 = arith.addf %610, %611 : vector<4x8xf32>
    %613 = vector.extract_strided_slice %607 {offsets = [0, 1], sizes = [4, 8], strides = [1, 1]} : vector<4x9xf32> to vector<4x8xf32>
    %614 = arith.addf %612, %613 : vector<4x8xf32>
    %cst_205 = arith.constant dense<0.000000e+00> : vector<8xf32>
    %615 = vector.multi_reduction <add>, %614, %cst_205 [0] : vector<4x8xf32> to vector<8xf32>
    %616 = vector.shape_cast %615 : vector<8xf32> to vector<1x8xf32>
    %cst_206 = arith.constant 0.000000e+00 : f32
    %617 = vector.broadcast %cst_206 : f32 to vector<1x8xf32>
    %618 = arith.cmpf ogt, %616, %617 : vector<1x8xf32>
    %cst_207 = arith.constant 1.000000e+00 : f32
    %cst_208 = arith.constant 0.000000e+00 : f32
    %619 = vector.broadcast %cst_207 : f32 to vector<1x8xf32>
    %620 = vector.broadcast %cst_208 : f32 to vector<1x8xf32>
    %621 = arith.select %618, %619, %620 : vector<1x8xi1>, vector<1x8xf32>
    %622 = vector.extract_strided_slice %605 {offsets = [3, 0], sizes = [1, 8], strides = [1, 1]} : vector<4x9xf32> to vector<1x8xf32>
    %623 = vector.extract_strided_slice %605 {offsets = [2, 1], sizes = [1, 8], strides = [1, 1]} : vector<4x9xf32> to vector<1x8xf32>
    %624 = arith.maximumf %622, %623 : vector<1x8xf32>
    %625 = vector.extract_strided_slice %607 {offsets = [1, 0], sizes = [1, 8], strides = [1, 1]} : vector<4x9xf32> to vector<1x8xf32>
    %626 = vector.extract_strided_slice %607 {offsets = [0, 1], sizes = [1, 8], strides = [1, 1]} : vector<4x9xf32> to vector<1x8xf32>
    %627 = arith.maximumf %625, %626 : vector<1x8xf32>
    %628 = arith.maximumf %624, %627 : vector<1x8xf32>
    %629 = arith.subf %621, %628 : vector<1x8xf32>
    %cst_209 = arith.constant 0.000000e+00 : f32
    %cst_210 = arith.constant 1.000000e+00 : f32
    %630 = vector.broadcast %cst_209 : f32 to vector<1x8xf32>
    %631 = arith.maximumf %630, %629 : vector<1x8xf32>
    %632 = vector.broadcast %cst_210 : f32 to vector<1x8xf32>
    %633 = arith.minimumf %632, %631 : vector<1x8xf32>
    %634 = vector.extract_strided_slice %605 {offsets = [0, 0], sizes = [1, 9], strides = [1, 1]} : vector<4x9xf32> to vector<1x9xf32>
    %635 = vector.broadcast %6 : vector<16x1xf32> to vector<16x9xf32>
    %636 = vector.broadcast %634 : vector<1x9xf32> to vector<16x9xf32>
    %637 = arith.mulf %635, %636 : vector<16x9xf32>
    %cst_211 = arith.constant 0.000000e+00 : f32
    %638 = vector.broadcast %cst_211 : f32 to vector<16x9xf32>
    %639 = arith.addf %638, %637 : vector<16x9xf32>
    %640 = vector.extract_strided_slice %605 {offsets = [1, 0], sizes = [1, 9], strides = [1, 1]} : vector<4x9xf32> to vector<1x9xf32>
    %641 = vector.broadcast %7 : vector<16x1xf32> to vector<16x9xf32>
    %642 = vector.broadcast %640 : vector<1x9xf32> to vector<16x9xf32>
    %643 = arith.mulf %641, %642 : vector<16x9xf32>
    %644 = arith.addf %639, %643 : vector<16x9xf32>
    %645 = vector.extract_strided_slice %605 {offsets = [2, 0], sizes = [1, 9], strides = [1, 1]} : vector<4x9xf32> to vector<1x9xf32>
    %646 = vector.broadcast %8 : vector<16x1xf32> to vector<16x9xf32>
    %647 = vector.broadcast %645 : vector<1x9xf32> to vector<16x9xf32>
    %648 = arith.mulf %646, %647 : vector<16x9xf32>
    %649 = arith.addf %644, %648 : vector<16x9xf32>
    %650 = vector.extract_strided_slice %605 {offsets = [3, 0], sizes = [1, 9], strides = [1, 1]} : vector<4x9xf32> to vector<1x9xf32>
    %651 = vector.broadcast %9 : vector<16x1xf32> to vector<16x9xf32>
    %652 = vector.broadcast %650 : vector<1x9xf32> to vector<16x9xf32>
    %653 = arith.mulf %651, %652 : vector<16x9xf32>
    %654 = arith.addf %649, %653 : vector<16x9xf32>
    %655 = vector.extract_strided_slice %607 {offsets = [0, 0], sizes = [1, 9], strides = [1, 1]} : vector<4x9xf32> to vector<1x9xf32>
    %656 = vector.broadcast %6 : vector<16x1xf32> to vector<16x9xf32>
    %657 = vector.broadcast %655 : vector<1x9xf32> to vector<16x9xf32>
    %658 = arith.mulf %656, %657 : vector<16x9xf32>
    %cst_212 = arith.constant 0.000000e+00 : f32
    %659 = vector.broadcast %cst_212 : f32 to vector<16x9xf32>
    %660 = arith.addf %659, %658 : vector<16x9xf32>
    %661 = vector.extract_strided_slice %607 {offsets = [1, 0], sizes = [1, 9], strides = [1, 1]} : vector<4x9xf32> to vector<1x9xf32>
    %662 = vector.broadcast %7 : vector<16x1xf32> to vector<16x9xf32>
    %663 = vector.broadcast %661 : vector<1x9xf32> to vector<16x9xf32>
    %664 = arith.mulf %662, %663 : vector<16x9xf32>
    %665 = arith.addf %660, %664 : vector<16x9xf32>
    %666 = vector.extract_strided_slice %607 {offsets = [2, 0], sizes = [1, 9], strides = [1, 1]} : vector<4x9xf32> to vector<1x9xf32>
    %667 = vector.broadcast %8 : vector<16x1xf32> to vector<16x9xf32>
    %668 = vector.broadcast %666 : vector<1x9xf32> to vector<16x9xf32>
    %669 = arith.mulf %667, %668 : vector<16x9xf32>
    %670 = arith.addf %665, %669 : vector<16x9xf32>
    %671 = vector.extract_strided_slice %607 {offsets = [3, 0], sizes = [1, 9], strides = [1, 1]} : vector<4x9xf32> to vector<1x9xf32>
    %672 = vector.broadcast %9 : vector<16x1xf32> to vector<16x9xf32>
    %673 = vector.broadcast %671 : vector<1x9xf32> to vector<16x9xf32>
    %674 = arith.mulf %672, %673 : vector<16x9xf32>
    %675 = arith.addf %670, %674 : vector<16x9xf32>
    %cst_213 = arith.constant 0.000000e+00 : f32
    %676 = vector.broadcast %cst_213 : f32 to vector<8x8xf32>
    %677 = vector.extract_strided_slice %601 {offsets = [0, 0], sizes = [16, 8], strides = [1, 1]} : vector<16x9xf32> to vector<16x8xf32>
    %678 = vector.extract_strided_slice %654 {offsets = [0, 0], sizes = [16, 8], strides = [1, 1]} : vector<16x9xf32> to vector<16x8xf32>
    %679 = vector.broadcast %633 : vector<1x8xf32> to vector<16x8xf32>
    %680 = arith.mulf %679, %678 : vector<16x8xf32>
    %cst_214 = arith.constant 1.000000e+00 : f32
    %681 = vector.broadcast %cst_214 : f32 to vector<16x8xf32>
    %682 = arith.subf %681, %680 : vector<16x8xf32>
    %683 = arith.mulf %677, %682 : vector<16x8xf32>
    %cst_215 = arith.constant dense<0.000000e+00> : vector<8x8xf32>
    %684 = tpu.matmul %2, %683, %cst_215 {dimension_numbers = #tpu.dot_dimension_numbers<[1], [0], [0], [1], [0, 0, 1, 1], [], []>} : vector<8x16xf32>, vector<16x8xf32>, vector<8x8xf32> -> vector<8x8xf32>
    %685 = arith.addf %676, %684 : vector<8x8xf32>
    %686 = vector.extract_strided_slice %601 {offsets = [0, 1], sizes = [16, 8], strides = [1, 1]} : vector<16x9xf32> to vector<16x8xf32>
    %687 = vector.extract_strided_slice %654 {offsets = [0, 1], sizes = [16, 8], strides = [1, 1]} : vector<16x9xf32> to vector<16x8xf32>
    %688 = vector.broadcast %633 : vector<1x8xf32> to vector<16x8xf32>
    %689 = arith.mulf %688, %687 : vector<16x8xf32>
    %cst_216 = arith.constant 1.000000e+00 : f32
    %690 = vector.broadcast %cst_216 : f32 to vector<16x8xf32>
    %691 = arith.subf %690, %689 : vector<16x8xf32>
    %692 = arith.mulf %686, %691 : vector<16x8xf32>
    %cst_217 = arith.constant dense<0.000000e+00> : vector<8x8xf32>
    %693 = tpu.matmul %3, %692, %cst_217 {dimension_numbers = #tpu.dot_dimension_numbers<[1], [0], [0], [1], [0, 0, 1, 1], [], []>} : vector<8x16xf32>, vector<16x8xf32>, vector<8x8xf32> -> vector<8x8xf32>
    %694 = arith.addf %685, %693 : vector<8x8xf32>
    %695 = vector.extract_strided_slice %603 {offsets = [0, 0], sizes = [16, 8], strides = [1, 1]} : vector<16x9xf32> to vector<16x8xf32>
    %696 = vector.extract_strided_slice %675 {offsets = [0, 0], sizes = [16, 8], strides = [1, 1]} : vector<16x9xf32> to vector<16x8xf32>
    %697 = vector.broadcast %633 : vector<1x8xf32> to vector<16x8xf32>
    %698 = arith.mulf %697, %696 : vector<16x8xf32>
    %cst_218 = arith.constant 1.000000e+00 : f32
    %699 = vector.broadcast %cst_218 : f32 to vector<16x8xf32>
    %700 = arith.subf %699, %698 : vector<16x8xf32>
    %701 = arith.mulf %695, %700 : vector<16x8xf32>
    %cst_219 = arith.constant dense<0.000000e+00> : vector<8x8xf32>
    %702 = tpu.matmul %4, %701, %cst_219 {dimension_numbers = #tpu.dot_dimension_numbers<[1], [0], [0], [1], [0, 0, 1, 1], [], []>} : vector<8x16xf32>, vector<16x8xf32>, vector<8x8xf32> -> vector<8x8xf32>
    %703 = arith.addf %694, %702 : vector<8x8xf32>
    %704 = vector.extract_strided_slice %603 {offsets = [0, 1], sizes = [16, 8], strides = [1, 1]} : vector<16x9xf32> to vector<16x8xf32>
    %705 = vector.extract_strided_slice %675 {offsets = [0, 1], sizes = [16, 8], strides = [1, 1]} : vector<16x9xf32> to vector<16x8xf32>
    %706 = vector.broadcast %633 : vector<1x8xf32> to vector<16x8xf32>
    %707 = arith.mulf %706, %705 : vector<16x8xf32>
    %cst_220 = arith.constant 1.000000e+00 : f32
    %708 = vector.broadcast %cst_220 : f32 to vector<16x8xf32>
    %709 = arith.subf %708, %707 : vector<16x8xf32>
    %710 = arith.mulf %704, %709 : vector<16x8xf32>
    %cst_221 = arith.constant dense<0.000000e+00> : vector<8x8xf32>
    %711 = tpu.matmul %5, %710, %cst_221 {dimension_numbers = #tpu.dot_dimension_numbers<[1], [0], [0], [1], [0, 0, 1, 1], [], []>} : vector<8x16xf32>, vector<16x8xf32>, vector<8x8xf32> -> vector<8x8xf32>
    %712 = arith.addf %703, %711 : vector<8x8xf32>
    %713 = vector.broadcast %1 : vector<8x1xf32> to vector<8x8xf32>
    %714 = arith.addf %712, %713 : vector<8x8xf32>
    %c0_222 = arith.constant 0 : index
    %c0_223 = arith.constant 0 : index
    %c5_224 = arith.constant 5 : index
    %c0_225 = arith.constant 0 : index
    %715 = vector.load %arg9[%c0_222, %c0_223, %c5_224, %c0_225] : memref<1x8x8x8xf32, #tpu.memory_space<vmem>>, vector<1x8x1x8xf32>
    %716 = vector.shape_cast %715 : vector<1x8x1x8xf32> to vector<8x8xf32>
    %717 = vector.shape_cast %714 : vector<8x8xf32> to vector<1x8x1x8xf32>
    tpu.vector_store %arg9[%c0_222, %c0_223, %c5_224, %c0_225], %717 {strides = array<i32>} : memref<1x8x8x8xf32, #tpu.memory_space<vmem>>, vector<1x8x1x8xf32>,
    %c0_226 = arith.constant 0 : index
    %c6_227 = arith.constant 6 : index
    %c0_228 = arith.constant 0 : index
    %c0_229 = arith.constant 0 : index
    %718 = vector.load %arg2[%c0_226, %c6_227, %c0_228, %c0_229] : memref<1x8x16x9xf32, #tpu.memory_space<vmem>>, vector<1x1x16x9xf32>
    %719 = vector.shape_cast %718 : vector<1x1x16x9xf32> to vector<16x9xf32>
    %c0_230 = arith.constant 0 : index
    %c7 = arith.constant 7 : index
    %c0_231 = arith.constant 0 : index
    %c0_232 = arith.constant 0 : index
    %720 = vector.load %arg2[%c0_230, %c7, %c0_231, %c0_232] : memref<1x8x16x9xf32, #tpu.memory_space<vmem>>, vector<1x1x16x9xf32>
    %721 = vector.shape_cast %720 : vector<1x1x16x9xf32> to vector<16x9xf32>
    %c0_233 = arith.constant 0 : index
    %c6_234 = arith.constant 6 : index
    %c0_235 = arith.constant 0 : index
    %c0_236 = arith.constant 0 : index
    %722 = vector.load %arg4[%c0_233, %c6_234, %c0_235, %c0_236] : memref<1x8x4x9xf32, #tpu.memory_space<vmem>>, vector<1x1x4x9xf32>
    %723 = vector.shape_cast %722 : vector<1x1x4x9xf32> to vector<4x9xf32>
    %c0_237 = arith.constant 0 : index
    %c7_238 = arith.constant 7 : index
    %c0_239 = arith.constant 0 : index
    %c0_240 = arith.constant 0 : index
    %724 = vector.load %arg4[%c0_237, %c7_238, %c0_239, %c0_240] : memref<1x8x4x9xf32, #tpu.memory_space<vmem>>, vector<1x1x4x9xf32>
    %725 = vector.shape_cast %724 : vector<1x1x4x9xf32> to vector<4x9xf32>
    %726 = vector.extract_strided_slice %723 {offsets = [0, 0], sizes = [4, 8], strides = [1, 1]} : vector<4x9xf32> to vector<4x8xf32>
    %727 = vector.extract_strided_slice %723 {offsets = [0, 1], sizes = [4, 8], strides = [1, 1]} : vector<4x9xf32> to vector<4x8xf32>
    %728 = arith.addf %726, %727 : vector<4x8xf32>
    %729 = vector.extract_strided_slice %725 {offsets = [0, 0], sizes = [4, 8], strides = [1, 1]} : vector<4x9xf32> to vector<4x8xf32>
    %730 = arith.addf %728, %729 : vector<4x8xf32>
    %731 = vector.extract_strided_slice %725 {offsets = [0, 1], sizes = [4, 8], strides = [1, 1]} : vector<4x9xf32> to vector<4x8xf32>
    %732 = arith.addf %730, %731 : vector<4x8xf32>
    %cst_241 = arith.constant dense<0.000000e+00> : vector<8xf32>
    %733 = vector.multi_reduction <add>, %732, %cst_241 [0] : vector<4x8xf32> to vector<8xf32>
    %734 = vector.shape_cast %733 : vector<8xf32> to vector<1x8xf32>
    %cst_242 = arith.constant 0.000000e+00 : f32
    %735 = vector.broadcast %cst_242 : f32 to vector<1x8xf32>
    %736 = arith.cmpf ogt, %734, %735 : vector<1x8xf32>
    %cst_243 = arith.constant 1.000000e+00 : f32
    %cst_244 = arith.constant 0.000000e+00 : f32
    %737 = vector.broadcast %cst_243 : f32 to vector<1x8xf32>
    %738 = vector.broadcast %cst_244 : f32 to vector<1x8xf32>
    %739 = arith.select %736, %737, %738 : vector<1x8xi1>, vector<1x8xf32>
    %740 = vector.extract_strided_slice %723 {offsets = [3, 0], sizes = [1, 8], strides = [1, 1]} : vector<4x9xf32> to vector<1x8xf32>
    %741 = vector.extract_strided_slice %723 {offsets = [2, 1], sizes = [1, 8], strides = [1, 1]} : vector<4x9xf32> to vector<1x8xf32>
    %742 = arith.maximumf %740, %741 : vector<1x8xf32>
    %743 = vector.extract_strided_slice %725 {offsets = [1, 0], sizes = [1, 8], strides = [1, 1]} : vector<4x9xf32> to vector<1x8xf32>
    %744 = vector.extract_strided_slice %725 {offsets = [0, 1], sizes = [1, 8], strides = [1, 1]} : vector<4x9xf32> to vector<1x8xf32>
    %745 = arith.maximumf %743, %744 : vector<1x8xf32>
    %746 = arith.maximumf %742, %745 : vector<1x8xf32>
    %747 = arith.subf %739, %746 : vector<1x8xf32>
    %cst_245 = arith.constant 0.000000e+00 : f32
    %cst_246 = arith.constant 1.000000e+00 : f32
    %748 = vector.broadcast %cst_245 : f32 to vector<1x8xf32>
    %749 = arith.maximumf %748, %747 : vector<1x8xf32>
    %750 = vector.broadcast %cst_246 : f32 to vector<1x8xf32>
    %751 = arith.minimumf %750, %749 : vector<1x8xf32>
    %752 = vector.extract_strided_slice %723 {offsets = [0, 0], sizes = [1, 9], strides = [1, 1]} : vector<4x9xf32> to vector<1x9xf32>
    %753 = vector.broadcast %6 : vector<16x1xf32> to vector<16x9xf32>
    %754 = vector.broadcast %752 : vector<1x9xf32> to vector<16x9xf32>
    %755 = arith.mulf %753, %754 : vector<16x9xf32>
    %cst_247 = arith.constant 0.000000e+00 : f32
    %756 = vector.broadcast %cst_247 : f32 to vector<16x9xf32>
    %757 = arith.addf %756, %755 : vector<16x9xf32>
    %758 = vector.extract_strided_slice %723 {offsets = [1, 0], sizes = [1, 9], strides = [1, 1]} : vector<4x9xf32> to vector<1x9xf32>
    %759 = vector.broadcast %7 : vector<16x1xf32> to vector<16x9xf32>
    %760 = vector.broadcast %758 : vector<1x9xf32> to vector<16x9xf32>
    %761 = arith.mulf %759, %760 : vector<16x9xf32>
    %762 = arith.addf %757, %761 : vector<16x9xf32>
    %763 = vector.extract_strided_slice %723 {offsets = [2, 0], sizes = [1, 9], strides = [1, 1]} : vector<4x9xf32> to vector<1x9xf32>
    %764 = vector.broadcast %8 : vector<16x1xf32> to vector<16x9xf32>
    %765 = vector.broadcast %763 : vector<1x9xf32> to vector<16x9xf32>
    %766 = arith.mulf %764, %765 : vector<16x9xf32>
    %767 = arith.addf %762, %766 : vector<16x9xf32>
    %768 = vector.extract_strided_slice %723 {offsets = [3, 0], sizes = [1, 9], strides = [1, 1]} : vector<4x9xf32> to vector<1x9xf32>
    %769 = vector.broadcast %9 : vector<16x1xf32> to vector<16x9xf32>
    %770 = vector.broadcast %768 : vector<1x9xf32> to vector<16x9xf32>
    %771 = arith.mulf %769, %770 : vector<16x9xf32>
    %772 = arith.addf %767, %771 : vector<16x9xf32>
    %773 = vector.extract_strided_slice %725 {offsets = [0, 0], sizes = [1, 9], strides = [1, 1]} : vector<4x9xf32> to vector<1x9xf32>
    %774 = vector.broadcast %6 : vector<16x1xf32> to vector<16x9xf32>
    %775 = vector.broadcast %773 : vector<1x9xf32> to vector<16x9xf32>
    %776 = arith.mulf %774, %775 : vector<16x9xf32>
    %cst_248 = arith.constant 0.000000e+00 : f32
    %777 = vector.broadcast %cst_248 : f32 to vector<16x9xf32>
    %778 = arith.addf %777, %776 : vector<16x9xf32>
    %779 = vector.extract_strided_slice %725 {offsets = [1, 0], sizes = [1, 9], strides = [1, 1]} : vector<4x9xf32> to vector<1x9xf32>
    %780 = vector.broadcast %7 : vector<16x1xf32> to vector<16x9xf32>
    %781 = vector.broadcast %779 : vector<1x9xf32> to vector<16x9xf32>
    %782 = arith.mulf %780, %781 : vector<16x9xf32>
    %783 = arith.addf %778, %782 : vector<16x9xf32>
    %784 = vector.extract_strided_slice %725 {offsets = [2, 0], sizes = [1, 9], strides = [1, 1]} : vector<4x9xf32> to vector<1x9xf32>
    %785 = vector.broadcast %8 : vector<16x1xf32> to vector<16x9xf32>
    %786 = vector.broadcast %784 : vector<1x9xf32> to vector<16x9xf32>
    %787 = arith.mulf %785, %786 : vector<16x9xf32>
    %788 = arith.addf %783, %787 : vector<16x9xf32>
    %789 = vector.extract_strided_slice %725 {offsets = [3, 0], sizes = [1, 9], strides = [1, 1]} : vector<4x9xf32> to vector<1x9xf32>
    %790 = vector.broadcast %9 : vector<16x1xf32> to vector<16x9xf32>
    %791 = vector.broadcast %789 : vector<1x9xf32> to vector<16x9xf32>
    %792 = arith.mulf %790, %791 : vector<16x9xf32>
    %793 = arith.addf %788, %792 : vector<16x9xf32>
    %cst_249 = arith.constant 0.000000e+00 : f32
    %794 = vector.broadcast %cst_249 : f32 to vector<8x8xf32>
    %795 = vector.extract_strided_slice %719 {offsets = [0, 0], sizes = [16, 8], strides = [1, 1]} : vector<16x9xf32> to vector<16x8xf32>
    %796 = vector.extract_strided_slice %772 {offsets = [0, 0], sizes = [16, 8], strides = [1, 1]} : vector<16x9xf32> to vector<16x8xf32>
    %797 = vector.broadcast %751 : vector<1x8xf32> to vector<16x8xf32>
    %798 = arith.mulf %797, %796 : vector<16x8xf32>
    %cst_250 = arith.constant 1.000000e+00 : f32
    %799 = vector.broadcast %cst_250 : f32 to vector<16x8xf32>
    %800 = arith.subf %799, %798 : vector<16x8xf32>
    %801 = arith.mulf %795, %800 : vector<16x8xf32>
    %cst_251 = arith.constant dense<0.000000e+00> : vector<8x8xf32>
    %802 = tpu.matmul %2, %801, %cst_251 {dimension_numbers = #tpu.dot_dimension_numbers<[1], [0], [0], [1], [0, 0, 1, 1], [], []>} : vector<8x16xf32>, vector<16x8xf32>, vector<8x8xf32> -> vector<8x8xf32>
    %803 = arith.addf %794, %802 : vector<8x8xf32>
    %804 = vector.extract_strided_slice %719 {offsets = [0, 1], sizes = [16, 8], strides = [1, 1]} : vector<16x9xf32> to vector<16x8xf32>
    %805 = vector.extract_strided_slice %772 {offsets = [0, 1], sizes = [16, 8], strides = [1, 1]} : vector<16x9xf32> to vector<16x8xf32>
    %806 = vector.broadcast %751 : vector<1x8xf32> to vector<16x8xf32>
    %807 = arith.mulf %806, %805 : vector<16x8xf32>
    %cst_252 = arith.constant 1.000000e+00 : f32
    %808 = vector.broadcast %cst_252 : f32 to vector<16x8xf32>
    %809 = arith.subf %808, %807 : vector<16x8xf32>
    %810 = arith.mulf %804, %809 : vector<16x8xf32>
    %cst_253 = arith.constant dense<0.000000e+00> : vector<8x8xf32>
    %811 = tpu.matmul %3, %810, %cst_253 {dimension_numbers = #tpu.dot_dimension_numbers<[1], [0], [0], [1], [0, 0, 1, 1], [], []>} : vector<8x16xf32>, vector<16x8xf32>, vector<8x8xf32> -> vector<8x8xf32>
    %812 = arith.addf %803, %811 : vector<8x8xf32>
    %813 = vector.extract_strided_slice %721 {offsets = [0, 0], sizes = [16, 8], strides = [1, 1]} : vector<16x9xf32> to vector<16x8xf32>
    %814 = vector.extract_strided_slice %793 {offsets = [0, 0], sizes = [16, 8], strides = [1, 1]} : vector<16x9xf32> to vector<16x8xf32>
    %815 = vector.broadcast %751 : vector<1x8xf32> to vector<16x8xf32>
    %816 = arith.mulf %815, %814 : vector<16x8xf32>
    %cst_254 = arith.constant 1.000000e+00 : f32
    %817 = vector.broadcast %cst_254 : f32 to vector<16x8xf32>
    %818 = arith.subf %817, %816 : vector<16x8xf32>
    %819 = arith.mulf %813, %818 : vector<16x8xf32>
    %cst_255 = arith.constant dense<0.000000e+00> : vector<8x8xf32>
    %820 = tpu.matmul %4, %819, %cst_255 {dimension_numbers = #tpu.dot_dimension_numbers<[1], [0], [0], [1], [0, 0, 1, 1], [], []>} : vector<8x16xf32>, vector<16x8xf32>, vector<8x8xf32> -> vector<8x8xf32>
    %821 = arith.addf %812, %820 : vector<8x8xf32>
    %822 = vector.extract_strided_slice %721 {offsets = [0, 1], sizes = [16, 8], strides = [1, 1]} : vector<16x9xf32> to vector<16x8xf32>
    %823 = vector.extract_strided_slice %793 {offsets = [0, 1], sizes = [16, 8], strides = [1, 1]} : vector<16x9xf32> to vector<16x8xf32>
    %824 = vector.broadcast %751 : vector<1x8xf32> to vector<16x8xf32>
    %825 = arith.mulf %824, %823 : vector<16x8xf32>
    %cst_256 = arith.constant 1.000000e+00 : f32
    %826 = vector.broadcast %cst_256 : f32 to vector<16x8xf32>
    %827 = arith.subf %826, %825 : vector<16x8xf32>
    %828 = arith.mulf %822, %827 : vector<16x8xf32>
    %cst_257 = arith.constant dense<0.000000e+00> : vector<8x8xf32>
    %829 = tpu.matmul %5, %828, %cst_257 {dimension_numbers = #tpu.dot_dimension_numbers<[1], [0], [0], [1], [0, 0, 1, 1], [], []>} : vector<8x16xf32>, vector<16x8xf32>, vector<8x8xf32> -> vector<8x8xf32>
    %830 = arith.addf %821, %829 : vector<8x8xf32>
    %831 = vector.broadcast %1 : vector<8x1xf32> to vector<8x8xf32>
    %832 = arith.addf %830, %831 : vector<8x8xf32>
    %c0_258 = arith.constant 0 : index
    %c0_259 = arith.constant 0 : index
    %c6_260 = arith.constant 6 : index
    %c0_261 = arith.constant 0 : index
    %833 = vector.load %arg9[%c0_258, %c0_259, %c6_260, %c0_261] : memref<1x8x8x8xf32, #tpu.memory_space<vmem>>, vector<1x8x1x8xf32>
    %834 = vector.shape_cast %833 : vector<1x8x1x8xf32> to vector<8x8xf32>
    %835 = vector.shape_cast %832 : vector<8x8xf32> to vector<1x8x1x8xf32>
    tpu.vector_store %arg9[%c0_258, %c0_259, %c6_260, %c0_261], %835 {strides = array<i32>} : memref<1x8x8x8xf32, #tpu.memory_space<vmem>>, vector<1x8x1x8xf32>,
    %c0_262 = arith.constant 0 : index
    %c7_263 = arith.constant 7 : index
    %c0_264 = arith.constant 0 : index
    %c0_265 = arith.constant 0 : index
    %836 = vector.load %arg2[%c0_262, %c7_263, %c0_264, %c0_265] : memref<1x8x16x9xf32, #tpu.memory_space<vmem>>, vector<1x1x16x9xf32>
    %837 = vector.shape_cast %836 : vector<1x1x16x9xf32> to vector<16x9xf32>
    %c0_266 = arith.constant 0 : index
    %c0_267 = arith.constant 0 : index
    %c0_268 = arith.constant 0 : index
    %c0_269 = arith.constant 0 : index
    %838 = vector.load %arg3[%c0_266, %c0_267, %c0_268, %c0_269] : memref<1x1x16x9xf32, #tpu.memory_space<vmem>>, vector<1x1x16x9xf32>
    %839 = vector.shape_cast %838 : vector<1x1x16x9xf32> to vector<16x9xf32>
    %c0_270 = arith.constant 0 : index
    %c7_271 = arith.constant 7 : index
    %c0_272 = arith.constant 0 : index
    %c0_273 = arith.constant 0 : index
    %840 = vector.load %arg4[%c0_270, %c7_271, %c0_272, %c0_273] : memref<1x8x4x9xf32, #tpu.memory_space<vmem>>, vector<1x1x4x9xf32>
    %841 = vector.shape_cast %840 : vector<1x1x4x9xf32> to vector<4x9xf32>
    %c0_274 = arith.constant 0 : index
    %c0_275 = arith.constant 0 : index
    %c0_276 = arith.constant 0 : index
    %c0_277 = arith.constant 0 : index
    %842 = vector.load %arg5[%c0_274, %c0_275, %c0_276, %c0_277] : memref<1x1x4x9xf32, #tpu.memory_space<vmem>>, vector<1x1x4x9xf32>
    %843 = vector.shape_cast %842 : vector<1x1x4x9xf32> to vector<4x9xf32>
    %844 = vector.extract_strided_slice %841 {offsets = [0, 0], sizes = [4, 8], strides = [1, 1]} : vector<4x9xf32> to vector<4x8xf32>
    %845 = vector.extract_strided_slice %841 {offsets = [0, 1], sizes = [4, 8], strides = [1, 1]} : vector<4x9xf32> to vector<4x8xf32>
    %846 = arith.addf %844, %845 : vector<4x8xf32>
    %847 = vector.extract_strided_slice %843 {offsets = [0, 0], sizes = [4, 8], strides = [1, 1]} : vector<4x9xf32> to vector<4x8xf32>
    %848 = arith.addf %846, %847 : vector<4x8xf32>
    %849 = vector.extract_strided_slice %843 {offsets = [0, 1], sizes = [4, 8], strides = [1, 1]} : vector<4x9xf32> to vector<4x8xf32>
    %850 = arith.addf %848, %849 : vector<4x8xf32>
    %cst_278 = arith.constant dense<0.000000e+00> : vector<8xf32>
    %851 = vector.multi_reduction <add>, %850, %cst_278 [0] : vector<4x8xf32> to vector<8xf32>
    %852 = vector.shape_cast %851 : vector<8xf32> to vector<1x8xf32>
    %cst_279 = arith.constant 0.000000e+00 : f32
    %853 = vector.broadcast %cst_279 : f32 to vector<1x8xf32>
    %854 = arith.cmpf ogt, %852, %853 : vector<1x8xf32>
    %cst_280 = arith.constant 1.000000e+00 : f32
    %cst_281 = arith.constant 0.000000e+00 : f32
    %855 = vector.broadcast %cst_280 : f32 to vector<1x8xf32>
    %856 = vector.broadcast %cst_281 : f32 to vector<1x8xf32>
    %857 = arith.select %854, %855, %856 : vector<1x8xi1>, vector<1x8xf32>
    %858 = vector.extract_strided_slice %841 {offsets = [3, 0], sizes = [1, 8], strides = [1, 1]} : vector<4x9xf32> to vector<1x8xf32>
    %859 = vector.extract_strided_slice %841 {offsets = [2, 1], sizes = [1, 8], strides = [1, 1]} : vector<4x9xf32> to vector<1x8xf32>
    %860 = arith.maximumf %858, %859 : vector<1x8xf32>
    %861 = vector.extract_strided_slice %843 {offsets = [1, 0], sizes = [1, 8], strides = [1, 1]} : vector<4x9xf32> to vector<1x8xf32>
    %862 = vector.extract_strided_slice %843 {offsets = [0, 1], sizes = [1, 8], strides = [1, 1]} : vector<4x9xf32> to vector<1x8xf32>
    %863 = arith.maximumf %861, %862 : vector<1x8xf32>
    %864 = arith.maximumf %860, %863 : vector<1x8xf32>
    %865 = arith.subf %857, %864 : vector<1x8xf32>
    %cst_282 = arith.constant 0.000000e+00 : f32
    %cst_283 = arith.constant 1.000000e+00 : f32
    %866 = vector.broadcast %cst_282 : f32 to vector<1x8xf32>
    %867 = arith.maximumf %866, %865 : vector<1x8xf32>
    %868 = vector.broadcast %cst_283 : f32 to vector<1x8xf32>
    %869 = arith.minimumf %868, %867 : vector<1x8xf32>
    %870 = vector.extract_strided_slice %841 {offsets = [0, 0], sizes = [1, 9], strides = [1, 1]} : vector<4x9xf32> to vector<1x9xf32>
    %871 = vector.broadcast %6 : vector<16x1xf32> to vector<16x9xf32>
    %872 = vector.broadcast %870 : vector<1x9xf32> to vector<16x9xf32>
    %873 = arith.mulf %871, %872 : vector<16x9xf32>
    %cst_284 = arith.constant 0.000000e+00 : f32
    %874 = vector.broadcast %cst_284 : f32 to vector<16x9xf32>
    %875 = arith.addf %874, %873 : vector<16x9xf32>
    %876 = vector.extract_strided_slice %841 {offsets = [1, 0], sizes = [1, 9], strides = [1, 1]} : vector<4x9xf32> to vector<1x9xf32>
    %877 = vector.broadcast %7 : vector<16x1xf32> to vector<16x9xf32>
    %878 = vector.broadcast %876 : vector<1x9xf32> to vector<16x9xf32>
    %879 = arith.mulf %877, %878 : vector<16x9xf32>
    %880 = arith.addf %875, %879 : vector<16x9xf32>
    %881 = vector.extract_strided_slice %841 {offsets = [2, 0], sizes = [1, 9], strides = [1, 1]} : vector<4x9xf32> to vector<1x9xf32>
    %882 = vector.broadcast %8 : vector<16x1xf32> to vector<16x9xf32>
    %883 = vector.broadcast %881 : vector<1x9xf32> to vector<16x9xf32>
    %884 = arith.mulf %882, %883 : vector<16x9xf32>
    %885 = arith.addf %880, %884 : vector<16x9xf32>
    %886 = vector.extract_strided_slice %841 {offsets = [3, 0], sizes = [1, 9], strides = [1, 1]} : vector<4x9xf32> to vector<1x9xf32>
    %887 = vector.broadcast %9 : vector<16x1xf32> to vector<16x9xf32>
    %888 = vector.broadcast %886 : vector<1x9xf32> to vector<16x9xf32>
    %889 = arith.mulf %887, %888 : vector<16x9xf32>
    %890 = arith.addf %885, %889 : vector<16x9xf32>
    %891 = vector.extract_strided_slice %843 {offsets = [0, 0], sizes = [1, 9], strides = [1, 1]} : vector<4x9xf32> to vector<1x9xf32>
    %892 = vector.broadcast %6 : vector<16x1xf32> to vector<16x9xf32>
    %893 = vector.broadcast %891 : vector<1x9xf32> to vector<16x9xf32>
    %894 = arith.mulf %892, %893 : vector<16x9xf32>
    %cst_285 = arith.constant 0.000000e+00 : f32
    %895 = vector.broadcast %cst_285 : f32 to vector<16x9xf32>
    %896 = arith.addf %895, %894 : vector<16x9xf32>
    %897 = vector.extract_strided_slice %843 {offsets = [1, 0], sizes = [1, 9], strides = [1, 1]} : vector<4x9xf32> to vector<1x9xf32>
    %898 = vector.broadcast %7 : vector<16x1xf32> to vector<16x9xf32>
    %899 = vector.broadcast %897 : vector<1x9xf32> to vector<16x9xf32>
    %900 = arith.mulf %898, %899 : vector<16x9xf32>
    %901 = arith.addf %896, %900 : vector<16x9xf32>
    %902 = vector.extract_strided_slice %843 {offsets = [2, 0], sizes = [1, 9], strides = [1, 1]} : vector<4x9xf32> to vector<1x9xf32>
    %903 = vector.broadcast %8 : vector<16x1xf32> to vector<16x9xf32>
    %904 = vector.broadcast %902 : vector<1x9xf32> to vector<16x9xf32>
    %905 = arith.mulf %903, %904 : vector<16x9xf32>
    %906 = arith.addf %901, %905 : vector<16x9xf32>
    %907 = vector.extract_strided_slice %843 {offsets = [3, 0], sizes = [1, 9], strides = [1, 1]} : vector<4x9xf32> to vector<1x9xf32>
    %908 = vector.broadcast %9 : vector<16x1xf32> to vector<16x9xf32>
    %909 = vector.broadcast %907 : vector<1x9xf32> to vector<16x9xf32>
    %910 = arith.mulf %908, %909 : vector<16x9xf32>
    %911 = arith.addf %906, %910 : vector<16x9xf32>
    %cst_286 = arith.constant 0.000000e+00 : f32
    %912 = vector.broadcast %cst_286 : f32 to vector<8x8xf32>
    %913 = vector.extract_strided_slice %837 {offsets = [0, 0], sizes = [16, 8], strides = [1, 1]} : vector<16x9xf32> to vector<16x8xf32>
    %914 = vector.extract_strided_slice %890 {offsets = [0, 0], sizes = [16, 8], strides = [1, 1]} : vector<16x9xf32> to vector<16x8xf32>
    %915 = vector.broadcast %869 : vector<1x8xf32> to vector<16x8xf32>
    %916 = arith.mulf %915, %914 : vector<16x8xf32>
    %cst_287 = arith.constant 1.000000e+00 : f32
    %917 = vector.broadcast %cst_287 : f32 to vector<16x8xf32>
    %918 = arith.subf %917, %916 : vector<16x8xf32>
    %919 = arith.mulf %913, %918 : vector<16x8xf32>
    %cst_288 = arith.constant dense<0.000000e+00> : vector<8x8xf32>
    %920 = tpu.matmul %2, %919, %cst_288 {dimension_numbers = #tpu.dot_dimension_numbers<[1], [0], [0], [1], [0, 0, 1, 1], [], []>} : vector<8x16xf32>, vector<16x8xf32>, vector<8x8xf32> -> vector<8x8xf32>
    %921 = arith.addf %912, %920 : vector<8x8xf32>
    %922 = vector.extract_strided_slice %837 {offsets = [0, 1], sizes = [16, 8], strides = [1, 1]} : vector<16x9xf32> to vector<16x8xf32>
    %923 = vector.extract_strided_slice %890 {offsets = [0, 1], sizes = [16, 8], strides = [1, 1]} : vector<16x9xf32> to vector<16x8xf32>
    %924 = vector.broadcast %869 : vector<1x8xf32> to vector<16x8xf32>
    %925 = arith.mulf %924, %923 : vector<16x8xf32>
    %cst_289 = arith.constant 1.000000e+00 : f32
    %926 = vector.broadcast %cst_289 : f32 to vector<16x8xf32>
    %927 = arith.subf %926, %925 : vector<16x8xf32>
    %928 = arith.mulf %922, %927 : vector<16x8xf32>
    %cst_290 = arith.constant dense<0.000000e+00> : vector<8x8xf32>
    %929 = tpu.matmul %3, %928, %cst_290 {dimension_numbers = #tpu.dot_dimension_numbers<[1], [0], [0], [1], [0, 0, 1, 1], [], []>} : vector<8x16xf32>, vector<16x8xf32>, vector<8x8xf32> -> vector<8x8xf32>
    %930 = arith.addf %921, %929 : vector<8x8xf32>
    %931 = vector.extract_strided_slice %839 {offsets = [0, 0], sizes = [16, 8], strides = [1, 1]} : vector<16x9xf32> to vector<16x8xf32>
    %932 = vector.extract_strided_slice %911 {offsets = [0, 0], sizes = [16, 8], strides = [1, 1]} : vector<16x9xf32> to vector<16x8xf32>
    %933 = vector.broadcast %869 : vector<1x8xf32> to vector<16x8xf32>
    %934 = arith.mulf %933, %932 : vector<16x8xf32>
    %cst_291 = arith.constant 1.000000e+00 : f32
    %935 = vector.broadcast %cst_291 : f32 to vector<16x8xf32>
    %936 = arith.subf %935, %934 : vector<16x8xf32>
    %937 = arith.mulf %931, %936 : vector<16x8xf32>
    %cst_292 = arith.constant dense<0.000000e+00> : vector<8x8xf32>
    %938 = tpu.matmul %4, %937, %cst_292 {dimension_numbers = #tpu.dot_dimension_numbers<[1], [0], [0], [1], [0, 0, 1, 1], [], []>} : vector<8x16xf32>, vector<16x8xf32>, vector<8x8xf32> -> vector<8x8xf32>
    %939 = arith.addf %930, %938 : vector<8x8xf32>
    %940 = vector.extract_strided_slice %839 {offsets = [0, 1], sizes = [16, 8], strides = [1, 1]} : vector<16x9xf32> to vector<16x8xf32>
    %941 = vector.extract_strided_slice %911 {offsets = [0, 1], sizes = [16, 8], strides = [1, 1]} : vector<16x9xf32> to vector<16x8xf32>
    %942 = vector.broadcast %869 : vector<1x8xf32> to vector<16x8xf32>
    %943 = arith.mulf %942, %941 : vector<16x8xf32>
    %cst_293 = arith.constant 1.000000e+00 : f32
    %944 = vector.broadcast %cst_293 : f32 to vector<16x8xf32>
    %945 = arith.subf %944, %943 : vector<16x8xf32>
    %946 = arith.mulf %940, %945 : vector<16x8xf32>
    %cst_294 = arith.constant dense<0.000000e+00> : vector<8x8xf32>
    %947 = tpu.matmul %5, %946, %cst_294 {dimension_numbers = #tpu.dot_dimension_numbers<[1], [0], [0], [1], [0, 0, 1, 1], [], []>} : vector<8x16xf32>, vector<16x8xf32>, vector<8x8xf32> -> vector<8x8xf32>
    %948 = arith.addf %939, %947 : vector<8x8xf32>
    %949 = vector.broadcast %1 : vector<8x1xf32> to vector<8x8xf32>
    %950 = arith.addf %948, %949 : vector<8x8xf32>
    %c0_295 = arith.constant 0 : index
    %c0_296 = arith.constant 0 : index
    %c7_297 = arith.constant 7 : index
    %c0_298 = arith.constant 0 : index
    %951 = vector.load %arg9[%c0_295, %c0_296, %c7_297, %c0_298] : memref<1x8x8x8xf32, #tpu.memory_space<vmem>>, vector<1x8x1x8xf32>
    %952 = vector.shape_cast %951 : vector<1x8x1x8xf32> to vector<8x8xf32>
    %953 = vector.shape_cast %950 : vector<8x8xf32> to vector<1x8x1x8xf32>
    tpu.vector_store %arg9[%c0_295, %c0_296, %c7_297, %c0_298], %953 {strides = array<i32>} : memref<1x8x8x8xf32, #tpu.memory_space<vmem>>, vector<1x8x1x8xf32>,
    return
  }
  func.func @transform_0(%arg0: i32, %arg1: i32) -> (i32, i32, i32, i32) {
    %c0_i32 = arith.constant 0 : i32
    %c0_i32_0 = arith.constant 0 : i32
    %c0_i32_1 = arith.constant 0 : i32
    return %arg0, %arg1, %c0_i32, %c0_i32_0 : i32, i32, i32, i32
  }
  func.func @transform_1(%arg0: i32, %arg1: i32) -> (i32, i32, i32, i32) {
    %c1_i32 = arith.constant 1 : i32
    %0 = arith.addi %arg1, %c1_i32 : i32
    %c8_i32 = arith.constant 8 : i32
    %1 = arith.muli %0, %c8_i32 : i32
    %c0_i32 = arith.constant 0 : i32
    %c0_i32_0 = arith.constant 0 : i32
    %c0_i32_1 = arith.constant 0 : i32
    return %arg0, %1, %c0_i32, %c0_i32_0 : i32, i32, i32, i32
  }
  func.func @transform_2(%arg0: i32, %arg1: i32) -> (i32, i32, i32, i32) {
    %c0_i32 = arith.constant 0 : i32
    %c0_i32_0 = arith.constant 0 : i32
    %c0_i32_1 = arith.constant 0 : i32
    return %arg0, %arg1, %c0_i32, %c0_i32_0 : i32, i32, i32, i32
  }
  func.func @transform_3(%arg0: i32, %arg1: i32) -> (i32, i32, i32, i32) {
    %c1_i32 = arith.constant 1 : i32
    %0 = arith.addi %arg1, %c1_i32 : i32
    %c8_i32 = arith.constant 8 : i32
    %1 = arith.muli %0, %c8_i32 : i32
    %c0_i32 = arith.constant 0 : i32
    %c0_i32_0 = arith.constant 0 : i32
    %c0_i32_1 = arith.constant 0 : i32
    return %arg0, %1, %c0_i32, %c0_i32_0 : i32, i32, i32, i32
  }
  func.func @transform_4(%arg0: i32, %arg1: i32) -> (i32, i32) {
    %c0_i32 = arith.constant 0 : i32
    %c0_i32_0 = arith.constant 0 : i32
    %c0_i32_1 = arith.constant 0 : i32
    return %c0_i32, %c0_i32_0 : i32, i32
  }
  func.func @transform_5(%arg0: i32, %arg1: i32) -> (i32, i32) {
    %c0_i32 = arith.constant 0 : i32
    %c0_i32_0 = arith.constant 0 : i32
    %c0_i32_1 = arith.constant 0 : i32
    return %c0_i32, %c0_i32_0 : i32, i32
  }
  func.func @transform_6(%arg0: i32, %arg1: i32) -> (i32, i32) {
    %c0_i32 = arith.constant 0 : i32
    %c0_i32_0 = arith.constant 0 : i32
    %c0_i32_1 = arith.constant 0 : i32
    return %c0_i32, %c0_i32_0 : i32, i32
  }
  func.func @transform_7(%arg0: i32, %arg1: i32) -> (i32, i32, i32, i32) {
    %c0_i32 = arith.constant 0 : i32
    %c0_i32_0 = arith.constant 0 : i32
    %c0_i32_1 = arith.constant 0 : i32
    return %arg0, %c0_i32, %arg1, %c0_i32_0 : i32, i32, i32, i32
  }
}

</mosaic_0001>

<bundles_post_ra>
// kernel: downsample_inout.1
= control target key start
LH: loop header
LB: loop body
LE: loop exit
PB: predicated region body
PF: predicated region fallthrough
CT: control target
= control target key end

     0   :  { %12 = vsyncpa [#allocation3], 0  ;;  %s7562_s0 = inlined_call_operand.vmem [shape: f32[2,9,16,9], index: 0, kind: input, shape index: {}, may-alias: {0,1}]   ;;  %s7563_s1 = inlined_call_operand.vmem [shape: f32[2,9,16,9], index: 1, kind: input, shape index: {}, may-alias: {0,1}]   ;;  %s7564_s2 = inlined_call_operand.vmem [shape: f32[2,9,4,9], index: 2, kind: input, shape index: {}, may-alias: {2,3}]   ;;  %s7565_s3 = inlined_call_operand.vmem [shape: f32[2,9,4,9], index: 3, kind: input, shape index: {}, may-alias: {2,3}]   ;;  %s7566_s4 = inlined_call_operand.vmem [shape: f32[16,4], index: 4, kind: input, shape index: {}]   ;;  %s7567_s5 = inlined_call_operand.vmem [shape: f32[8,64], index: 5, kind: input, shape index: {}]   ;;  %s7568_s6 = inlined_call_operand.vmem [shape: f32[8,1], index: 6, kind: input, shape index: {}]   ;;  %s7569_s7 = inlined_call_operand.hbm [shape: f32[2,8,8,8], index: 7, kind: output, shape index: {}]  }
   0x1   :  { %14 = vsyncpa [#allocation3 + $0x1], 0  ;;  %s5780_s24 = smov 0   ;;  %s5782_s25 = smov 0  }
   0x2   :  { %s5784_s26 = smov 0   ;;  %s5786_s27 = smov 0  }
   0x3   :  { %s5788_s28 = smov 0   ;;  %s5790_s29 = smov 0  }
   0x4 LB: > { %s4968_s30 = sadd.s32 4294967295, %s5722_s29   ;;  %s4969_s8 = sadd.s32 4294967294, %s5722_s29   ;;  %s5722_s29 = sphi %s5790_s29, %s20_s29   ;;  %s5718_s28 = sphi %s5788_s28, %s7792_s28   ;;  %s5714_s27 = sphi %s5786_s27, %s7791_s27   ;;  %s5710_s26 = sphi %s5784_s26, %s7790_s26   ;;  %s5706_s25 = sphi %s5782_s25, %s7789_s25   ;;  %s5702_s24 = sphi %s5780_s24, %s7788_s24  }
   0x5   : > { %s32_s9 = sadd.s32 1, %s5718_s28  ;;  %s224_s10 = sadd.s32 1, %s5710_s26 }
   0x6   : > { %p34_p0 = scmp.ge.s32.totalorder %s32_s9, 2  ;;  %p234_p1 = scmp.ne.s32.totalorder %s5710_s26, %s5706_s25 }
   0x7   : > { %p235_p2 = scmp.eq.s32.totalorder %s4968_s30, 1  ;;  %p240_p3 = scmp.ne.s32.totalorder %s5706_s25, %s5702_s24 }
   0x8   : > { %s7794_s9 = smov (%p34_p0, %s32_s9), 0  ;;  %p241_p5 = scmp.eq.s32.totalorder %s4969_s8, 1 }
   0x9   : > { %p5820_p4 = por %p235_p2, %p234_p1  ;;  %s219_s12 = ssub.s32 %s5718_s28, %s7794_s9 }
   0xa   : > { %p4972_p6 = scmp.ge.s32.totalorder %s5722_s29, 1  ;;  %p222_p7 = scmp.eq.s32.totalorder %s219_s12, 0 }
   0xb   : > { %p5827_p8 = por %p241_p5, %p240_p3  ;;  %p344_p9 = scmp.lt.s32.totalorder %s5722_s29, 3 }
   0xc   : > { %s5833_s14 = scalar_select %p222_p7, %s5710_s26, %s224_s10  }
   0xd   : > { %p345_p10 = pnand %p4972_p6, %p344_p9 }
   0xf   : > { %348 = sbr.rel (%p345_p10) target bundleno = 894 (0x37e), region = 48 }
  0x16   : > { %v486_v0 = vld [vmem:[%s7566_s4] sm:$0xff]  ;;  %v5724_v1 = vmov 1   ;;  %v5725_v2 = vmov 0   ;;  %p426_p11 = scmp.lt.s32.totalorder %s5714_s27, 1  ;;  %v487_v3 = vld [vmem:[%s7566_s4 + $0x8] sm:$0xff]  ;;  %v5726_v4 = vmov 2   ;;  %v544_v39 = vlaneseq }
  0x17   : > { %5555 = vset.pattern.permute.xlu1 %v5724_v1  ;;  %5554 = vset.pattern.permute.xlu0 %v5725_v2  ;;  %v5727_v5 = vmov 3   ;;  %s5728_s30 = smov 127   ;;  %v7570_v32 = vmov 0.0|0.0   ;;  %vm507_vm0 = vcmask 60416   ;;  %vm5733_vm9 = vmmov 0   ;;  %s5735_s17 = smov 96  }
  0x18   : > { %553 = vperm.xlu1 %5555, %v486_v0   ;;  %536 = vperm.xlu0 %5554, %v486_v0   ;;  %s5843_s19 = scalar_select %p426_p11, %s5714_s27, 1  ;;  %v5971_v40 = vshrl.u32 %v544_v39, 7  ;;  %vm675_vm10 = vcmask 130048   ;;  %vm1070_vm11 = vcmask 57344  }
  0x19   : > { %5385 = vmatprep.subr.bf16.mxu1 %v7570_v32  ;;  %5382 = vmatprep.subr.bf16.mxu0 %v7570_v32  ;;  %s5061_s22 = sshll.u32 %s5714_s27, 10 }
  0x1a   : > { %s5480_s20 = smul.u32 36, %s5843_s19  ;;  %7663 = vst [vmem:[#allocation16_spill] sm:$0xff] %v5971_v40  ;;  %v5974_v41 = vsub.s32 0, %v5971_v40  ;;  %v5977_v42 = vsub.s32 1, %v5971_v40  ;;  %v5980_v43 = vsub.s32 2, %v5971_v40  ;;  %v5995_v47 = vsub.s32 3, %v5971_v40  ;;  %s7502_s12 = scalar_lea.hbm %s7569_s7, %s5061_s22 }
  0x1b   : > { %s5478_s16 = smul.u32 144, %s5843_s19 }
  0x1c   : > { %557 = vperm.xlu1 %5555, %v487_v3   ;;  %541 = vperm.xlu0 %5554, %v487_v3   ;;  %s5851_s23 = scalar_lea.vmem %s7564_s2, %s5480_s20  ;;  %s5060_s8 = sadd.s32 32, %s5480_s20  ;;  %7664 = vst [vmem:[#allocation17_spill] sm:$0xff] %v5980_v43  ;;  %7665 = vst [vmem:[#allocation18_spill] sm:$0xff] %v5995_v47 }
  0x1d   : > { %v5854_v6 = vld [vmem:[%s5851_s23] sm:$0xf]  ;;  %v5857_v7 = vld [vmem:[%s5851_s23 + $0x4] sm:$0xf]  ;;  %v5872_v11 = vld [vmem:[%s5851_s23 + $0x8] sm:$0xf]  ;;  %s481_s15 = scalar_lea.vmem %s7565_s3, %s5060_s8  ;;  %s6518_s20 = scalar_lea.vmem %s7562_s0, %s5478_s16 }
  0x1e   : > { %v5860_v8 = vld [vmem:[%s5851_s23 + $0x4] sm:$0xf]  ;;  %v517_v10 = vrot.slane %v5854_v6, 7  ;;  %v1112_v12 = vrot.slane %v5872_v11, 7  ;;  %v5879_v13 = vld [vmem:[%s5851_s23 + $0x8] sm:$0xf]  ;;  %v5984_v44 = vrot.slane %v5854_v6, %v5974_v41  ;;  %v5988_v45 = vrot.slane %v5854_v6, %v5977_v42 }
  0x1f   : > { %v522_v9 = vrot.slane %v5860_v8, 7  ;;  %v1107_v14 = vrot.slane %v5857_v7, 7  ;;  %v5886_v15 = vld [vmem:[%s5851_s23 + $0xc] sm:$0xf]  ;;  %v1641_v18 = vrot.slane %v5879_v13, 7  ;;  %v5992_v46 = vrot.slane %v5854_v6, %v5980_v43  ;;  %s5058_s21 = sadd.s32 128, %s5478_s16 }
  0x20   : > { %5557 = vset.pattern.permute.xlu1 %v5726_v4  ;;  %5556 = vset.pattern.permute.xlu0 %v5726_v4  ;;  %7652 = vst [vmem:[#allocation5_spill] sm:$0xff] %v5886_v15  ;;  %v1646_v16 = vrot.slane %v5886_v15, 7  ;;  %v5893_v17 = vld [vmem:[%s5851_s23 + $0xc] sm:$0xf]  ;;  %v5900_v19 = vld [vmem:[%s5851_s23 + $0x10] sm:$0xf]  ;;  %v5999_v48 = vrot.slane %v5860_v8, %v5974_v41  ;;  %v6003_v49 = vrot.slane %v5857_v7, %v5974_v41 }
  0x21   : > { %573 = vperm.xlu1 %5557, %v487_v3   ;;  %569 = vperm.xlu0 %5556, %v486_v0   ;;  %7653 = vst [vmem:[#allocation6_spill] sm:$0xff] %v5893_v17  ;;  %7654 = vst [vmem:[#allocation7_spill] sm:$0xff] %v5900_v19  ;;  %v2180_v20 = vrot.slane %v5900_v19, 7  ;;  %v5907_v21 = vld [vmem:[%s5851_s23 + $0x10] sm:$0xf]  ;;  %v2175_v22 = vrot.slane %v5893_v17, 7  ;;  %v6007_v50 = vrot.slane %v5860_v8, %v5977_v42 }
  0x22   : > { %7655 = vst [vmem:[#allocation8_spill] sm:$0xff] %v5907_v21  ;;  %v5914_v23 = vld [vmem:[%s5851_s23 + $0x14] sm:$0xf]  ;;  %v2709_v26 = vrot.slane %v5907_v21, 7  ;;  %v5928_v27 = vld [vmem:[%s5851_s23 + $0x18] sm:$0xf]  ;;  %v6011_v51 = vrot.slane %v5860_v8, %v5980_v43  ;;  %v6015_v52 = vrot.slane %v5857_v7, %v5977_v42  ;;  %v6019_v53 = vrot.slane %v5857_v7, %v5980_v43 }
  0x23   : > { %7656 = vst [vmem:[#allocation9_spill] sm:$0xff] %v5914_v23  ;;  %v2714_v24 = vrot.slane %v5914_v23, 7  ;;  %v5921_v25 = vld [vmem:[%s5851_s23 + $0x14] sm:$0xf]  ;;  %7658 = vst [vmem:[#allocation11_spill] sm:$0xff] %v5928_v27  ;;  %v3248_v28 = vrot.slane %v5928_v27, 7  ;;  %v6023_v54 = vrot.slane %v5872_v11, %v5974_v41  ;;  %v6027_v55 = vrot.slane %v5872_v11, %v5977_v42 }
  0x24   : > { %7657 = vst [vmem:[#allocation10_spill] sm:$0xff] %v5921_v25  ;;  %v5935_v29 = vld [vmem:[%s5851_s23 + $0x18] sm:$0xf]  ;;  %v3243_v30 = vrot.slane %v5921_v25, 7  ;;  %v5942_v31 = vld [vmem:[%s5851_s23 + $0x1c] sm:$0xf]  ;;  %v6031_v56 = vrot.slane %v5872_v11, %v5980_v43  ;;  %v6035_v57 = vrot.slane %v5879_v13, %v5974_v41  ;;  %v6039_v58 = vrot.slane %v5879_v13, %v5977_v42 }
  0x25   : > { %5558 = vset.pattern.permute.xlu1 %v5727_v5  ;;  %5559 = vset.pattern.permute.xlu0 %v5727_v5  ;;  %7659 = vst [vmem:[#allocation12_spill] sm:$0xff] %v5935_v29  ;;  %7660 = vst [vmem:[#allocation13_spill] sm:$0xff] %v5942_v31  ;;  %v3782_v33 = vrot.slane %v5942_v31, 7  ;;  %v5956_v34 = vld [vmem:[%s5851_s23 + $0x1c] sm:$0xf]  ;;  %v3777_v37 = vrot.slane %v5935_v29, 7  ;;  %v6043_v59 = vrot.slane %v5879_v13, %v5980_v43 }
  0x26   : > { %585 = vperm.xlu1 %5558, %v486_v0   ;;  %589 = vperm.xlu0 %5559, %v487_v3   ;;  %7661 = vst [vmem:[#allocation14_spill] sm:$0xff] %v5956_v34  ;;  %v5958_v35 = vld [vmem:[%s481_s15] sm:$0xf]  ;;  %v4309_v38 = vrot.slane %v5956_v34, 7  ;;  %v6047_v60 = vrot.slane %v5886_v15, %v5974_v41  ;;  %v6051_v61 = vrot.slane %v5886_v15, %v5977_v42  ;;  %s5731_s8 = smov 1   ;;  %s5732_s15 = smov 112  }
  0x27   : > { %7662 = vst [vmem:[#allocation15_spill] sm:$0xff] %v5958_v35  ;;  %v4314_v36 = vrot.slane %v5958_v35, 7  ;;  %v6055_v62 = vrot.slane %v5854_v6, %v5995_v47  ;;  %v6059_v63 = vrot.slane %v5860_v8, %v5995_v47  ;;  %v6063_v0 = vrot.slane %v5886_v15, %v5980_v43  ;;  %s5734_s16 = smov 80  }
  0x28   : > { %v6067_v1 = vrot.slane %v5893_v17, %v5974_v41  ;;  %v6075_v3 = vrot.slane %v5872_v11, %v5995_v47  ;;  %v6079_v4 = vrot.slane %v5879_v13, %v5995_v47  ;;  %v6083_v5 = vrot.slane %v5893_v17, %v5977_v42 }
  0x29   : > { %v6147_v39 = vrot.slane %v5921_v25, %v5974_v41  ;;  %v6151_v32 = vrot.slane %v5921_v25, %v5977_v42  ;;  %v6155_v40 = vrot.slane %v5914_v23, %v5995_v47 }
  0x2a   : > { %497 = vrot.lane.b32.xlu1 %v5854_v6, %s5728_s30  ;;  %1088 = vrot.lane.b32.xlu0 %v5857_v7, %s5728_s30 }
  0x2b   : > { %5640 = vset.pattern.permute.xlu1 %v5725_v2  ;;  %5641 = vset.pattern.permute.xlu0 %v5725_v2  ;;  %v6071_v2 = vrot.slane %v5857_v7, %v5995_v47  ;;  %7678 = vst [vmem:[#allocation31_spill] sm:$0xff] %v6147_v39  ;;  %7679 = vst [vmem:[#allocation32_spill] sm:$0xff] %v6151_v32  ;;  %v6171_v39 = vrot.slane %v5921_v25, %v5995_v47 }
  0x2c   : > { %7680 = vst [vmem:[#allocation33_spill] sm:$0xff] %v6155_v40  ;;  %v6175_v32 = vrot.slane %v5928_v27, %v5980_v43  ;;  %v6179_v40 = vrot.slane %v5935_v29, %v5974_v41 }
  0x2d   : > { %7684 = vst [vmem:[#allocation37_spill] sm:$0xff] %v6171_v39  ;;  %v6195_v39 = vrot.slane %v5942_v31, %v5974_v41 }
  0x2e   : > { %503 = vrot.lane.b32.xlu1 %v5860_v8, %s5728_s30  ;;  %523 = vrot.lane.b32.xlu0 %v522_v9, %s5728_s30  ;;  %v6087_v9 = vrot.slane %v5886_v15, %v5995_v47  ;;  %7685 = vst [vmem:[#allocation38_spill] sm:$0xff] %v6175_v32  ;;  %7686 = vst [vmem:[#allocation39_spill] sm:$0xff] %v6179_v40  ;;  %v6199_v32 = vrot.slane %v5942_v31, %v5977_v42 }
  0x2f   : > { %7690 = vst [vmem:[#allocation43_spill] sm:$0xff] %v6195_v39  ;;  %v6219_v39 = vrot.slane %v5956_v34, %v5977_v42 }
  0x30   : > { %7691 = vst [vmem:[#allocation44_spill] sm:$0xff] %v6199_v32  ;;  %v6223_v32 = vrot.slane %v5942_v31, %v5995_v47 }
  0x31   : > { %7695 = vst [vmem:[#allocation48_spill] sm:$0xff] %v6219_v39 }
  0x32   : > { %1094 = vrot.lane.b32.xlu1 %v5872_v11, %s5728_s30  ;;  %518 = vrot.lane.b32.xlu0 %v517_v10, %s5728_s30  ;;  %v6091_v10 = vrot.slane %v5893_v17, %v5980_v43  ;;  %7696 = vst [vmem:[#allocation49_spill] sm:$0xff] %v6223_v32 }
  0x36   : > { %1622 = vrot.lane.b32.xlu1 %v5879_v13, %s5728_s30  ;;  %1113 = vrot.lane.b32.xlu0 %v1112_v12, %s5728_s30  ;;  %v6095_v12 = vrot.slane %v5900_v19, %v5974_v41 }
  0x38   : > { %7666 = vst [vmem:[#allocation19_spill] sm:$0xff] %v6095_v12 }
  0x3a   : > { %1628 = vrot.lane.b32.xlu1 %v5886_v15, %s5728_s30  ;;  %1108 = vrot.lane.b32.xlu0 %v1107_v14, %s5728_s30  ;;  %v6099_v14 = vrot.slane %v5900_v19, %v5977_v42 }
  0x3c   : > { %7667 = vst [vmem:[#allocation20_spill] sm:$0xff] %v6099_v14 }
  0x3e   : > { %2156 = vrot.lane.b32.xlu1 %v5893_v17, %s5728_s30  ;;  %1647 = vrot.lane.b32.xlu0 %v1646_v16, %s5728_s30  ;;  %v6103_v16 = vrot.slane %v5893_v17, %v5995_v47 }
  0x40   : > { %7668 = vst [vmem:[#allocation21_spill] sm:$0xff] %v6103_v16 }
  0x42   : > { %2162 = vrot.lane.b32.xlu1 %v5900_v19, %s5728_s30  ;;  %1642 = vrot.lane.b32.xlu0 %v1641_v18, %s5728_s30  ;;  %v6107_v18 = vrot.slane %v5900_v19, %v5980_v43 }
  0x44   : > { %7669 = vst [vmem:[#allocation22_spill] sm:$0xff] %v6107_v18 }
  0x46   : > { %2690 = vrot.lane.b32.xlu1 %v5907_v21, %s5728_s30  ;;  %2181 = vrot.lane.b32.xlu0 %v2180_v20, %s5728_s30  ;;  %v6111_v20 = vrot.slane %v5907_v21, %v5974_v41 }
  0x48   : > { %7670 = vst [vmem:[#allocation23_spill] sm:$0xff] %v6111_v20 }
  0x4a   : > { %2696 = vrot.lane.b32.xlu1 %v5914_v23, %s5728_s30  ;;  %2176 = vrot.lane.b32.xlu0 %v2175_v22, %s5728_s30  ;;  %v6115_v22 = vrot.slane %v5907_v21, %v5977_v42 }
  0x4c   : > { %7671 = vst [vmem:[#allocation24_spill] sm:$0xff] %v6115_v22 }
  0x4e   : > { %3224 = vrot.lane.b32.xlu1 %v5921_v25, %s5728_s30  ;;  %2715 = vrot.lane.b32.xlu0 %v2714_v24, %s5728_s30  ;;  %v6119_v24 = vrot.slane %v5900_v19, %v5995_v47 }
  0x50   : > { %7672 = vst [vmem:[#allocation25_spill] sm:$0xff] %v6119_v24 }
  0x52   : > { %3230 = vrot.lane.b32.xlu1 %v5928_v27, %s5728_s30  ;;  %2710 = vrot.lane.b32.xlu0 %v2709_v26, %s5728_s30  ;;  %v6123_v26 = vrot.slane %v5907_v21, %v5980_v43 }
  0x54   : > { %7673 = vst [vmem:[#allocation26_spill] sm:$0xff] %v6123_v26 }
  0x56   : > { %3758 = vrot.lane.b32.xlu1 %v5935_v29, %s5728_s30  ;;  %3249 = vrot.lane.b32.xlu0 %v3248_v28, %s5728_s30  ;;  %v6127_v28 = vrot.slane %v5914_v23, %v5974_v41 }
  0x58   : > { %7674 = vst [vmem:[#allocation27_spill] sm:$0xff] %v6127_v28  ;;  %v6163_v28 = vrot.slane %v5928_v27, %v5974_v41 }
  0x5a   : > { %3764 = vrot.lane.b32.xlu1 %v5942_v31, %s5728_s30  ;;  %3244 = vrot.lane.b32.xlu0 %v3243_v30, %s5728_s30  ;;  %v6131_v30 = vrot.slane %v5914_v23, %v5977_v42  ;;  %7682 = vst [vmem:[#allocation35_spill] sm:$0xff] %v6163_v28  ;;  %v6187_v28 = vrot.slane %v5928_v27, %v5995_v47 }
  0x5c   : > { %7675 = vst [vmem:[#allocation28_spill] sm:$0xff] %v6131_v30  ;;  %v6159_v30 = vrot.slane %v5921_v25, %v5980_v43  ;;  %7688 = vst [vmem:[#allocation41_spill] sm:$0xff] %v6187_v28  ;;  %v6211_v28 = vrot.slane %v5942_v31, %v5980_v43 }
  0x5e   : > { %4290 = vrot.lane.b32.xlu1 %v5956_v34, %s5728_s30  ;;  %3783 = vrot.lane.b32.xlu0 %v3782_v33, %s5728_s30  ;;  %7681 = vst [vmem:[#allocation34_spill] sm:$0xff] %v6159_v30  ;;  %v6183_v30 = vrot.slane %v5935_v29, %v5977_v42  ;;  %7693 = vst [vmem:[#allocation46_spill] sm:$0xff] %v6211_v28  ;;  %v6235_v28 = vrot.slane %v5958_v35, %v5977_v42 }
  0x60   : > { %7687 = vst [vmem:[#allocation40_spill] sm:$0xff] %v6183_v30  ;;  %v6207_v30 = vrot.slane %v5935_v29, %v5995_v47  ;;  %7699 = vst [vmem:[#allocation52_spill] sm:$0xff] %v6235_v28 }
  0x62   : > { %4296 = vrot.lane.b32.xlu1 %v5958_v35, %s5728_s30  ;;  %4315 = vrot.lane.b32.xlu0 %v4314_v36, %s5728_s30  ;;  %7692 = vst [vmem:[#allocation45_spill] sm:$0xff] %v6207_v30  ;;  %v6231_v30 = vrot.slane %v5958_v35, %v5974_v41 }
  0x64   : > { %7698 = vst [vmem:[#allocation51_spill] sm:$0xff] %v6231_v30 }
  0x66   : > { %3778 = vrot.lane.b32.xlu1 %v3777_v37, %s5728_s30  ;;  %v6139_v37 = vrot.slane %v5907_v21, %v5995_v47 }
  0x68   : > { %7676 = vst [vmem:[#allocation29_spill] sm:$0xff] %v6139_v37 }
  0x6a   : > { %4310 = vrot.lane.b32.xlu1 %v4309_v38, %s5728_s30  ;;  %v6143_v38 = vrot.slane %v5914_v23, %v5980_v43 }
  0x6c   : > { %7677 = vst [vmem:[#allocation30_spill] sm:$0xff] %v6143_v38  ;;  %v6167_v38 = vrot.slane %v5928_v27, %v5977_v42 }
  0x6e   : > { %7683 = vst [vmem:[#allocation36_spill] sm:$0xff] %v6167_v38  ;;  %v6191_v38 = vrot.slane %v5935_v29, %v5980_v43  ;;  %v6227_v29 = vrot.slane %v5956_v34, %v5980_v43 }
  0x70   : > { %7689 = vst [vmem:[#allocation42_spill] sm:$0xff] %v6191_v38  ;;  %v6215_v38 = vrot.slane %v5956_v34, %v5974_v41  ;;  %7697 = vst [vmem:[#allocation50_spill] sm:$0xff] %v6227_v29 }
  0x72   : > { %7694 = vst [vmem:[#allocation47_spill] sm:$0xff] %v6215_v38 }
  0x97   : > { %v6133_v33 = vpop.permute.xlu1 %553  ;;  %v6135_v36 = vpop.permute.xlu0 %536 }
  0x98   : > { %v548_v38 = vmul.f32 %v5984_v44, %v6135_v36  ;;  %v564_v39 = vmul.f32 %v5988_v45, %v6133_v33  ;;  %v604_v32 = vmul.f32 %v5999_v48, %v6135_v36  ;;  %v612_v29 = vmul.f32 %v6007_v50, %v6133_v33 }
  0x99   : > { %v1128_v41 = vmul.f32 %v6003_v49, %v6135_v36  ;;  %v1136_v30 = vmul.f32 %v6015_v52, %v6133_v33  ;;  %v1160_v42 = vmul.f32 %v6023_v54, %v6135_v36  ;;  %v1168_v28 = vmul.f32 %v6027_v55, %v6133_v33 }
  0x9a   : > { %v1694_v37 = vmul.f32 %v6047_v60, %v6135_v36  ;;  %v566_v26 = vadd.f32 %v564_v39, %v548_v38 }
  0x9b   : > { %v6201_v40 = vpop.permute.xlu1 %557  ;;  %v6203_v25 = vpop.permute.xlu0 %541  ;;  %v1138_v19 = vadd.f32 %v1136_v30, %v1128_v41  ;;  %v1170_v22 = vadd.f32 %v1168_v28, %v1160_v42 }
  0x9c   : > { %v549_v31 = vmul.f32 %v5984_v44, %v6203_v25  ;;  %v565_v27 = vmul.f32 %v5988_v45, %v6201_v40  ;;  %v605_v35 = vmul.f32 %v5999_v48, %v6203_v25  ;;  %v613_v43 = vmul.f32 %v6007_v50, %v6201_v40 }
  0x9d   : > { %v1129_v47 = vmul.f32 %v6003_v49, %v6203_v25  ;;  %v1137_v21 = vmul.f32 %v6015_v52, %v6201_v40  ;;  %v1161_v44 = vmul.f32 %v6023_v54, %v6203_v25  ;;  %v1169_v45 = vmul.f32 %v6027_v55, %v6201_v40 }
  0x9e   : > { %v1662_v48 = vmul.f32 %v6035_v57, %v6135_v36  ;;  %v1670_v50 = vmul.f32 %v6039_v58, %v6133_v33  ;;  %v1702_v49 = vmul.f32 %v6051_v61, %v6133_v33  ;;  %v614_v55 = vadd.f32 %v612_v29, %v604_v32 }
  0x9f   : > { %v1663_v20 = vmul.f32 %v6035_v57, %v6203_v25  ;;  %v1671_v17 = vmul.f32 %v6039_v58, %v6201_v40  ;;  %v567_v24 = vadd.f32 %v565_v27, %v549_v31  ;;  %v615_v18 = vadd.f32 %v613_v43, %v605_v35 }
  0xa0   : > { %v6261_v23 = vpop.permute.xlu1 %573  ;;  %v6263_v34 = vpop.permute.xlu0 %569  ;;  %v1139_v14 = vadd.f32 %v1137_v21, %v1129_v47  ;;  %v1171_v12 = vadd.f32 %v1169_v45, %v1161_v44  ;;  %v1672_v32 = vadd.f32 %v1670_v50, %v1662_v48  ;;  %v1704_v28 = vadd.f32 %v1702_v49, %v1694_v37 }
  0xa1   : > { %v581_v52 = vmul.f32 %v5992_v46, %v6261_v23  ;;  %v580_v54 = vmul.f32 %v5992_v46, %v6263_v34  ;;  %v620_v46 = vmul.f32 %v6011_v51, %v6263_v34  ;;  %v621_v29 = vmul.f32 %v6011_v51, %v6261_v23 }
  0xa2   : > { %v1145_v31 = vmul.f32 %v6019_v53, %v6261_v23  ;;  %v1144_v35 = vmul.f32 %v6019_v53, %v6263_v34  ;;  %v1176_v43 = vmul.f32 %v6031_v56, %v6263_v34  ;;  %v1673_v47 = vadd.f32 %v1671_v17, %v1663_v20 }
  0xa3   : > { %v583_v57 = vadd.f32 %v581_v52, %v567_v24  ;;  %v582_v27 = vadd.f32 %v580_v54, %v566_v26  ;;  %v1177_v38 = vmul.f32 %v6031_v56, %v6261_v23  ;;  %v1695_v53 = vmul.f32 %v6047_v60, %v6203_v25 }
  0xa4   : > { %v1703_v17 = vmul.f32 %v6051_v61, %v6201_v40  ;;  %v2197_v20 = vmul.f32 %v6067_v1, %v6203_v25  ;;  %v623_v56 = vadd.f32 %v621_v29, %v615_v18  ;;  %v1147_v41 = vadd.f32 %v1145_v31, %v1139_v14 }
  0xa5   : > { %v6289_v15 = vpop.permute.xlu1 %585  ;;  %v6291_v16 = vpop.permute.xlu0 %589  ;;  %v1146_v42 = vadd.f32 %v1144_v35, %v1138_v19  ;;  %v1178_v50 = vadd.f32 %v1176_v43, %v1170_v22  ;;  %v1179_v14 = vadd.f32 %v1177_v38, %v1171_v12  ;;  %v1679_v19 = vmul.f32 %v6043_v59, %v6261_v23 }
  0xa6   : > { %v597_v58 = vmul.f32 %v6055_v62, %v6291_v16  ;;  %v596_v21 = vmul.f32 %v6055_v62, %v6289_v15  ;;  %v628_v26 = vmul.f32 %v6059_v63, %v6289_v15  ;;  %v629_v62 = vmul.f32 %v6059_v63, %v6291_v16 }
  0xa7   : > { %v622_v63 = vadd.f32 %v620_v46, %v614_v55  ;;  %v1153_v60 = vmul.f32 %v6071_v2, %v6291_v16  ;;  %v1152_v61 = vmul.f32 %v6071_v2, %v6289_v15  ;;  %v1184_v18 = vmul.f32 %v6075_v3, %v6289_v15 }
  0xa8   : > { %v6307_v51 = vadd.f32 %v597_v58, %v583_v57  ;;  %v6309_v24 = vadd.f32 %v596_v21, %v582_v27  ;;  %v6335_v48 = vadd.f32 %v629_v62, %v623_v56  ;;  %v1185_v54 = vmul.f32 %v6075_v3, %v6291_v16 }
  0xa9   : > { %v498_v30 = vpop.permute.xlu1 %497  ;;  %v1089_v37 = vpop.permute.xlu0 %1088  ;;  %v6333_v45 = vadd.f32 %v628_v26, %v622_v63  ;;  %v1678_v22 = vmul.f32 %v6043_v59, %v6263_v34  ;;  %v1710_v55 = vmul.f32 %v6063_v0, %v6263_v34  ;;  %v6352_v46 = vadd.f32 %v1153_v60, %v1147_v41 }
  0xaa   : > { %v500_v39 = vadd.f32 %v498_v30, %v5854_v6  ;;  %646 = vrot.lane.b32.xlu1 %v6307_v51, %s5728_s30  ;;  %644 = vrot.lane.b32.xlu0 %v6309_v24, %s5728_s30  ;;  %7701 = vst [vmem:[#allocation54_spill] sm:$0xff] %v6335_v48  ;;  %v1091_v12 = vadd.f32 %v5857_v7, %v1089_v37 }
  0xab   : > { %7700 = vst [vmem:[#allocation53_spill] sm:$0xff] %v6333_v45  ;;  %7702 = vst [vmem:[#allocation55_spill] sm:$0xff] %v6352_v46  ;;  %v6354_v3 = vadd.f32 %v1152_v61, %v1146_v42  ;;  %v1705_v29 = vadd.f32 %v1703_v17, %v1695_v53  ;;  %v1687_v58 = vmul.f32 %v6079_v4, %v6291_v16  ;;  %v7708_v42 = vld [vmem:[#allocation21_spill] sm:$0xff] }
  0xac   : > { %v501_v44 = vadd.f32 %v5860_v8, %v500_v39  ;;  %v1686_v27 = vmul.f32 %v6079_v4, %v6289_v15  ;;  %v1718_v59 = vmul.f32 %v6087_v9, %v6289_v15  ;;  %v6365_v7 = vadd.f32 %v1184_v18, %v1178_v50 }
  0xad   : > { %v504_v49 = vpop.permute.xlu1 %503  ;;  %v524_v52 = vpop.permute.xlu0 %523  ;;  %7703 = vst [vmem:[#allocation56_spill] sm:$0xff] %v6354_v3  ;;  %v6367_v35 = vadd.f32 %v1185_v54, %v1179_v14  ;;  %v1681_v26 = vadd.f32 %v1679_v19, %v1673_v47  ;;  %v1680_v62 = vadd.f32 %v1678_v22, %v1672_v32  ;;  %v1712_v4 = vadd.f32 %v1710_v55, %v1704_v28  ;;  %v7710_v14 = vld [vmem:[#allocation19_spill] sm:$0xff]  ;;  %v7711_v19 = vld [vmem:[#allocation20_spill] sm:$0xff] }
  0xae   : > { %v506_v2 = vadd.f32 %v504_v49, %v501_v44  ;;  %903 = vrot.lane.b32.xlu1 %v6333_v45, %s5728_s30  ;;  %905 = vrot.lane.b32.xlu0 %v6335_v48, %s5728_s30  ;;  %7704 = vst [vmem:[#allocation57_spill] sm:$0xff] %v6365_v7  ;;  %v2205_v30 = vmul.f32 %v6083_v5, %v6201_v40  ;;  %v7743_v48 = vmov 0.0|0.0  }
  0xaf   : > { %7705 = vst [vmem:[#allocation58_spill] sm:$0xff] %v6367_v35  ;;  %v6376_v38 = vadd.f32 %v5872_v11, %v1091_v12  ;;  %v526_v53 = vmax.f32 %v5860_v8, %v524_v52  ;;  %v1711_v47 = vmul.f32 %v6063_v0, %v6261_v23  ;;  %v6381_v17 = vadd.f32 %v1687_v58, %v1681_v26 }
  0xb0   : > { %v508_v57 = vsel %vm507_vm0, %v506_v2, 0.0  ;;  %v6383_v39 = vadd.f32 %v1686_v27, %v1680_v62  ;;  %v6385_v63 = vadd.f32 %v1718_v59, %v1712_v4  ;;  %v1719_v32 = vmul.f32 %v6087_v9, %v6291_v16 }
  0xb1   : > { %v509_v21 = vrot.slane %v508_v57, 4  ;;  %v6363_v31 = vpop.permute.xlu1 %1094  ;;  %v519_v43 = vpop.permute.xlu0 %518  ;;  %7706 = vst [vmem:[#allocation59_spill] sm:$0xff] %v6381_v17  ;;  %v2213_v11 = vmul.f32 %v6091_v10, %v6261_v23  ;;  %v2196_v8 = vmul.f32 %v6067_v1, %v6135_v36  ;;  %v2204_v0 = vmul.f32 %v6083_v5, %v6133_v33  ;;  %v7709_v5 = vld [vmem:[#allocation5_spill] sm:$0xff] }
  0xb2   : > { %1202 = vrot.lane.b32.xlu1 %v6352_v46, %s5728_s30  ;;  %1200 = vrot.lane.b32.xlu0 %v6354_v3, %s5728_s30  ;;  %7707 = vst [vmem:[#allocation60_spill] sm:$0xff] %v6383_v39  ;;  %v2207_v9 = vadd.f32 %v2205_v30, %v2197_v20  ;;  %v2221_v61 = vmul.f32 %v7708_v42, %v6291_v16  ;;  %v528_v50 = vrot.slane %v526_v53, 6 }
  0xb3   : > { %v510_v37 = vadd.f32 %v509_v21, %v508_v57  ;;  %v521_v49 = vmax.f32 %v5854_v6, %v519_v43  ;;  %v2212_v1 = vmul.f32 %v6091_v10, %v6263_v34  ;;  %v1713_v18 = vadd.f32 %v1711_v47, %v1705_v29  ;;  %v7712_v29 = vld [vmem:[#allocation22_spill] sm:$0xff] }
  0xb4   : > { %v2228_v54 = vmul.f32 %v7710_v14, %v6135_v36  ;;  %v2236_v2 = vmul.f32 %v7711_v19, %v6133_v33  ;;  %v2215_v12 = vadd.f32 %v2213_v11, %v2207_v9  ;;  %v2206_v57 = vadd.f32 %v2204_v0, %v2196_v8  ;;  %v7714_v0 = vld [vmem:[#allocation6_spill] sm:$0xff] }
  0xb5   : > { %v511_v28 = vrot.slane %v510_v37, 2  ;;  %v1623_v56 = vpop.permute.xlu1 %1622  ;;  %v6389_v41 = vpop.permute.xlu0 %1113  ;;  %v2220_v6 = vmul.f32 %v7708_v42, %v6289_v15  ;;  %v6420_v10 = vadd.f32 %v1719_v32, %v1713_v18  ;;  %v2244_v27 = vmul.f32 %v7712_v29, %v6263_v34 }
  0xb6   : > { %v1625_v60 = vadd.f32 %v5879_v13, %v1623_v56  ;;  %1447 = vrot.lane.b32.xlu1 %v6365_v7, %s5728_s30  ;;  %1449 = vrot.lane.b32.xlu0 %v6367_v35, %s5728_s30  ;;  %v530_v21 = vmax.f32 %v521_v49, %v528_v50  ;;  %v6424_v43 = vadd.f32 %v2221_v61, %v2215_v12  ;;  %v7632_v11 = vmov 0.0   ;;  %v7715_v49 = vld [vmem:[#allocation23_spill] sm:$0xff] }
  0xb7   : > { %v512_v44 = vadd.f32 %v511_v28, %v510_v37  ;;  %v2214_v26 = vadd.f32 %v2212_v1, %v2206_v57  ;;  %v2238_v4 = vadd.f32 %v2236_v2, %v2228_v54  ;;  %v2229_v30 = vmul.f32 %v7710_v14, %v6203_v25  ;;  %v7713_v28 = vld [vmem:[#allocation25_spill] sm:$0xff]  ;;  %v7717_v14 = vld [vmem:[#allocation7_spill] sm:$0xff] }
  0xb8   : > { %v1626_v52 = vadd.f32 %v7709_v5, %v1625_v60  ;;  %v2237_v37 = vmul.f32 %v7711_v19, %v6201_v40  ;;  %v2252_v56 = vmul.f32 %v7713_v28, %v6289_v15  ;;  %v2245_v42 = vmul.f32 %v7712_v29, %v6261_v23 }
  0xb9   : > { %v513_v20 = vrot.slane %v512_v44, 1  ;;  %v1629_v22 = vpop.permute.xlu1 %1628  ;;  %v6412_v55 = vpop.permute.xlu0 %1108  ;;  %v6431_v32 = vadd.f32 %v2220_v6, %v2214_v26  ;;  %v2246_v9 = vadd.f32 %v2244_v27, %v2238_v4  ;;  %v2731_v1 = vmul.f32 %v7715_v49, %v6203_v25 }
  0xba   : > { %v1631_v58 = vadd.f32 %v1629_v22, %v1626_v52  ;;  %1736 = vrot.lane.b32.xlu1 %v6381_v17, %s5728_s30  ;;  %1734 = vrot.lane.b32.xlu0 %v6383_v39, %s5728_s30  ;;  %v7716_v52 = vld [vmem:[#allocation24_spill] sm:$0xff]  ;;  %v2239_v19 = vadd.f32 %v2237_v37, %v2229_v30  ;;  %v2253_v2 = vmul.f32 %v7713_v28, %v6291_v16 }
  0xbb   : > { %v514_v59 = vadd.f32 %v513_v20, %v512_v44  ;;  %v2739_v18 = vmul.f32 %v7716_v52, %v6201_v40  ;;  %v2730_v20 = vmul.f32 %v7715_v49, %v6135_v36  ;;  %v1097_v22 = vadd.f32 %v6363_v31, %v6376_v38 }
  0xbc   : > { %v1632_v62 = vsel %vm507_vm0, %v1631_v58, 0.0  ;;  %v6454_v6 = vadd.f32 %v2252_v56, %v2246_v9  ;;  %v7718_v58 = vld [vmem:[#allocation26_spill] sm:$0xff] }
  0xbd   : > { %vm515_vm1 = vcmp.gt.f32.partialorder %v514_v59, 0.0  ;;  %v1633_v53 = vrot.slane %v1632_v62, 4  ;;  %v2157_v47 = vpop.permute.xlu1 %2156  ;;  %v1648_v50 = vpop.permute.xlu0 %1647  ;;  %v2747_v29 = vmul.f32 %v7718_v58, %v6261_v23  ;;  %v2247_v59 = vadd.f32 %v2245_v42, %v2239_v19 }
  0xbe   : > { %v516_v8 = vsel %vm515_vm1, 1.0, %v7632_v11  ;;  %v2159_v60 = vadd.f32 %v7714_v0, %v2157_v47  ;;  %1981 = vrot.lane.b32.xlu1 %v6385_v63, %s5728_s30  ;;  %1983 = vrot.lane.b32.xlu0 %v6420_v10, %s5728_s30  ;;  %v2741_v38 = vadd.f32 %v2739_v18, %v2731_v1  ;;  %v2746_v47 = vmul.f32 %v7718_v58, %v6263_v34 }
  0xbf   : > { %v531_v61 = vsub.f32 %v516_v8, %v530_v21  ;;  %v1634_v44 = vadd.f32 %v1633_v53, %v1632_v62  ;;  %v2738_v21 = vmul.f32 %v7716_v52, %v6133_v33  ;;  %v7719_v62 = vld [vmem:[#allocation29_spill] sm:$0xff]  ;;  %v6467_v37 = vadd.f32 %v2253_v2, %v2247_v59 }
  0xc0   : > { %v2160_v54 = vadd.f32 %v7717_v14, %v2159_v60  ;;  %v2755_v4 = vmul.f32 %v7719_v62, %v6291_v16  ;;  %v1650_v8 = vmax.f32 %v7709_v5, %v1648_v50  ;;  %v2749_v42 = vadd.f32 %v2747_v29, %v2741_v38  ;;  %v7721_v5 = vld [vmem:[#allocation18_spill] sm:$0xff]  ;;  %v7723_v2 = vld [vmem:[#allocation9_spill] sm:$0xff]  ;;  %v7725_v29 = vld [vmem:[#allocation28_spill] sm:$0xff] }
  0xc1   : > { %v1635_v12 = vrot.slane %v1634_v44, 2  ;;  %v2163_v57 = vpop.permute.xlu1 %2162  ;;  %v532_v26 = vmax.f32 %v531_v61, 0.0  ;;  %v2740_v53 = vadd.f32 %v2738_v21, %v2730_v20  ;;  %v1643_v9 = vpop.permute.xlu0 %1642  ;;  %v7720_v61 = vld [vmem:[#allocation8_spill] sm:$0xff]  ;;  %v2754_v1 = vmul.f32 %v7719_v62, %v6289_v15  ;;  %v7722_v50 = vld [vmem:[#allocation14_spill] sm:$0xff] }
  0xc2   : > { %v2165_v27 = vadd.f32 %v2163_v57, %v2160_v54  ;;  %2270 = vrot.lane.b32.xlu1 %v6424_v43, %s5728_s30  ;;  %2268 = vrot.lane.b32.xlu0 %v6431_v32, %s5728_s30  ;;  %v6479_v54 = vadd.f32 %v2755_v4, %v2749_v42  ;;  %v6483_v19 = vrot.slane %v7722_v50, %v7721_v5  ;;  %v7724_v57 = vld [vmem:[#allocation27_spill] sm:$0xff]  ;;  %v1098_v59 = vsel %vm507_vm0, %v1097_v22, 0.0 }
  0xc3   : > { %v1636_v31 = vadd.f32 %v1635_v12, %v1634_v44  ;;  %v2748_v49 = vadd.f32 %v2746_v47, %v2740_v53  ;;  %v533_v52 = vmin.f32 %v532_v26, 1.0  ;;  %v2763_v58 = vmul.f32 %v7724_v57, %v6203_v25  ;;  %v7726_v47 = vld [vmem:[#allocation30_spill] sm:$0xff] }
  0xc4   : > { %v2166_v30 = vsel %vm507_vm0, %v2165_v27, 0.0  ;;  %v2771_v27 = vmul.f32 %v7725_v29, %v6201_v40  ;;  %v1645_v38 = vmax.f32 %v5879_v13, %v1643_v9  ;;  %v1652_v4 = vrot.slane %v1650_v8, 6  ;;  %v7728_v13 = vld [vmem:[#allocation33_spill] sm:$0xff] }
  0xc5   : > { %v1637_v28 = vrot.slane %v1636_v31, 1  ;;  %v2167_v56 = vrot.slane %v2166_v30, 4  ;;  %v2691_v60 = vpop.permute.xlu1 %2690  ;;  %v6486_v12 = vadd.f32 %v2754_v1, %v2748_v49  ;;  %v6502_v22 = vrot.slane %v533_v52, %v7721_v5 }
  0xc6   : > { %v2693_v44 = vadd.f32 %v7720_v61, %v2691_v60  ;;  %2515 = vrot.lane.b32.xlu1 %v6454_v6, %s5728_s30  ;;  %2517 = vrot.lane.b32.xlu0 %v6467_v37, %s5728_s30  ;;  %v2773_v53 = vadd.f32 %v2771_v27, %v2763_v58  ;;  %v2787_v60 = vmul.f32 %v7728_v13, %v6291_v16  ;;  %v1099_v1 = vrot.slane %v1098_v59, 4 }
  0xc7   : > { %v2168_v18 = vadd.f32 %v2167_v56, %v2166_v30  ;;  %v1638_v26 = vadd.f32 %v1637_v28, %v1636_v31  ;;  %v2779_v56 = vmul.f32 %v7726_v47, %v6261_v23  ;;  %7727 = vst [vmem:[#allocation21_spill] sm:$0xff] %v6502_v22  ;;  %v2182_v28 = vpop.permute.xlu0 %2181  ;;  %v2762_v8 = vmul.f32 %v7724_v57, %v6135_v36  ;;  %v7729_v57 = vld [vmem:[#allocation10_spill] sm:$0xff] }
  0xc8   : > { %v2694_v20 = vadd.f32 %v7723_v2, %v2693_v44  ;;  %v2770_v44 = vmul.f32 %v7725_v29, %v6133_v33  ;;  %v2778_v49 = vmul.f32 %v7726_v47, %v6263_v34  ;;  %v7731_v47 = vld [vmem:[#allocation17_spill] sm:$0xff] }
  0xc9   : > { %v2169_v21 = vrot.slane %v2168_v18, 2  ;;  %v2697_v62 = vpop.permute.xlu1 %2696  ;;  %v2781_v42 = vadd.f32 %v2779_v56, %v2773_v53  ;;  %vm1639_vm2 = vcmp.gt.f32.partialorder %v1638_v26, 0.0  ;;  %v636_v53 = vmul.f32 %v6502_v22, %v6309_v24  ;;  %v7732_v26 = vld [vmem:[#allocation15_spill] sm:$0xff] }
  0xca   : > { %v2699_v30 = vadd.f32 %v2697_v62, %v2694_v20  ;;  %2804 = vrot.lane.b32.xlu1 %v6479_v54, %s5728_s30  ;;  %2802 = vrot.lane.b32.xlu0 %v6486_v12, %s5728_s30  ;;  %v2772_v29 = vadd.f32 %v2770_v44, %v2762_v8  ;;  %v6530_v56 = vrot.slane %v7732_v26, %v7731_v47  ;;  %v7734_v8 = vld [vmem:[#allocation11_spill] sm:$0xff]  ;;  %v6544_v44 = vld [vmem:[%s6518_s20 + $0x8] sm:$0xff] }
  0xcb   : > { %v2170_v31 = vadd.f32 %v2169_v21, %v2168_v18  ;;  %v2184_v18 = vmax.f32 %v7717_v14, %v2182_v28  ;;  %v6522_v27 = vadd.f32 %v2787_v60, %v2781_v42  ;;  %v2786_v21 = vmul.f32 %v7728_v13, %v6289_v15  ;;  %v6536_v60 = vld [vmem:[%s6518_s20] sm:$0xff]  ;;  %v2177_v42 = vpop.permute.xlu0 %2176  ;;  %7735 = vst [vmem:[#allocation20_spill] sm:$0xff] %v6544_v44 }
  0xcc   : > { %v2700_v9 = vsel %vm507_vm0, %v2699_v30, 0.0  ;;  %v1654_v30 = vmax.f32 %v1645_v38, %v1652_v4  ;;  %v1640_v14 = vsel %vm1639_vm2, 1.0, %v7632_v11  ;;  %v2780_v28 = vadd.f32 %v2778_v49, %v2772_v29  ;;  %7733 = vst [vmem:[#allocation19_spill] sm:$0xff] %v6536_v60 }
  0xcd   : > { %v2701_v52 = vrot.slane %v2700_v9, 4  ;;  %v3225_v20 = vpop.permute.xlu1 %3224  ;;  %7730 = vst [vmem:[#allocation5_spill] sm:$0xff] %v6522_v27  ;;  %v2171_v62 = vrot.slane %v2170_v31, 1  ;;  %v637_v13 = vmul.f32 %v6502_v22, %v6307_v51  ;;  %v6541_v4 = vadd.f32 %v1099_v1, %v1098_v59 }
  0xce   : > { %v3227_v58 = vadd.f32 %v7729_v57, %v3225_v20  ;;  %3051 = vrot.lane.b32.xlu1 %v6522_v27, %s5728_s30  ;;  %v638_v20 = vsub.f32 1.0, %v636_v53  ;;  %v6548_v11 = vrot.slane %v7732_v26, %v7721_v5  ;;  %v2186_v49 = vrot.slane %v2184_v18, 6  ;;  %v7738_v18 = vld [vmem:[#allocation32_spill] sm:$0xff]  ;;  %v7739_v53 = vld [vmem:[#allocation34_spill] sm:$0xff] }
  0xcf   : > { %v2702_v24 = vadd.f32 %v2701_v52, %v2700_v9  ;;  %v6550_v29 = vadd.f32 %v2786_v21, %v2780_v28  ;;  %v639_v39 = vsub.f32 1.0, %v637_v13  ;;  %v1655_v51 = vsub.f32 %v1640_v14, %v1654_v30  ;;  %v7737_v9 = vld [vmem:[#allocation31_spill] sm:$0xff]  ;;  %v7740_v14 = vld [vmem:[#allocation37_spill] sm:$0xff] }
  0xd0   : > { %v3228_v38 = vadd.f32 %v7734_v8, %v3227_v58  ;;  %v2172_v7 = vadd.f32 %v2171_v62, %v2170_v31  ;;  %v640_v59 = vmul.f32 %v638_v20, %v6536_v60  ;;  %v3265_v1 = vmul.f32 %v7737_v9, %v6203_v25  ;;  %v7751_v60 = vld [vmem:[#allocation39_spill] sm:$0xff] }
  0xd1   : > { %v3231_v47 = vpop.permute.xlu1 %3230  ;;  %7736 = vst [vmem:[#allocation22_spill] sm:$0xff] %v6550_v29  ;;  %3049 = vrot.lane.b32.xlu0 %v6550_v29, %s5728_s30  ;;  %v641_v52 = vmul.f32 %v639_v39, %v6544_v44  ;;  %v3273_v21 = vmul.f32 %v7738_v18, %v6201_v40  ;;  %v3281_v28 = vmul.f32 %v7739_v53, %v6261_v23  ;;  %v2703_v30 = vrot.slane %v2702_v24, 2  ;;  %v7752_v44 = vld [vmem:[#allocation40_spill] sm:$0xff]  ;;  %v7754_v29 = vld [vmem:[#allocation45_spill] sm:$0xff] }
  0xd2   : > { %v3233_v17 = vadd.f32 %v3231_v47, %v3228_v38  ;;  %v2179_v31 = vmax.f32 %v7714_v0, %v2177_v42  ;;  %v3289_v13 = vmul.f32 %v7740_v14, %v6291_v16  ;;  %v3264_v39 = vmul.f32 %v7737_v9, %v6135_v36  ;;  %v2716_v42 = vpop.permute.xlu0 %2715 }
  0xd3   : > { %v5386_v20 = vpack.c.bf16 %v641_v52, %v640_v59  ;;  %v3275_v47 = vadd.f32 %v3273_v21, %v3265_v1  ;;  %v6571_v3 = vmax.f32 %v1655_v51, 0.0  ;;  %vm2173_vm3 = vcmp.gt.f32.partialorder %v2172_v7, 0.0  ;;  %v7742_v51 = vld [vmem:[#allocation36_spill] sm:$0xff] }
  0xd4   : > { %v3234_v58 = vsel %vm507_vm0, %v3233_v17, 0.0  ;;  %v3272_v17 = vmul.f32 %v7738_v18, %v6133_v33  ;;  %v3280_v0 = vmul.f32 %v7739_v53, %v6263_v34  ;;  %v3288_v1 = vmul.f32 %v7740_v14, %v6289_v15  ;;  %v7741_v18 = vld [vmem:[#allocation35_spill] sm:$0xff] }
  0xd5   : > { %v3235_v62 = vrot.slane %v3234_v58, 4  ;;  %v3759_v38 = vpop.permute.xlu1 %3758  ;;  %5387 = vmatpush3.bf16.msra.mxu1 %v5386_v20  ;;  %v3283_v45 = vadd.f32 %v3281_v28, %v3275_v47  ;;  %v2704_v9 = vadd.f32 %v2703_v30, %v2702_v24  ;;  %v6577_v52 = vmax.f32 %v2179_v31, %v2186_v49  ;;  %v7748_v30 = vld [vmem:[#allocation41_spill] sm:$0xff] }
  0xd6   : > { %v3274_v59 = vadd.f32 %v3272_v17, %v3264_v39  ;;  %v3297_v21 = vmul.f32 %v7741_v18, %v6203_v25  ;;  %v3305_v35 = vmul.f32 %v7742_v51, %v6201_v40  ;;  %5391 = vmatprep.subr.bf16.mxu1 %v7743_v48  ;;  %v7747_v14 = vmov 0.0  }
  0xd7   : > { %v3236_v46 = vadd.f32 %v3235_v62, %v3234_v58  ;;  %v6584_v53 = vadd.f32 %v3289_v13, %v3283_v45  ;;  %v7745_v58 = vld [vmem:[#allocation12_spill] sm:$0xff]  ;;  %v7746_v62 = vld [vmem:[#allocation38_spill] sm:$0xff]  ;;  %v2174_v24 = vsel %vm2173_vm3, 1.0, %v7747_v14  ;;  %v3321_v31 = vmul.f32 %v7748_v30, %v6291_v16  ;;  %5162 = vmatprep.mubr.msk.f32.mxu0 %vm5733_vm9, %v7747_v14  ;;  %5169 = vmatprep.mubr.msk.f32.mxu1 %vm5733_vm9, %v7747_v14 }
  0xd8   : > { %v3282_v20 = vadd.f32 %v3280_v0, %v3274_v59  ;;  %v3761_v28 = vadd.f32 %v7745_v58, %v3759_v38  ;;  %v3313_v47 = vmul.f32 %v7746_v62, %v6261_v23  ;;  %v3307_v49 = vadd.f32 %v3305_v35, %v3297_v21 }
  0xd9   : > { %7744 = vst [vmem:[#allocation25_spill] sm:$0xff] %v6584_v53  ;;  %v3296_v39 = vmul.f32 %v7741_v18, %v6135_v36  ;;  %v3765_v17 = vpop.permute.xlu1 %3764  ;;  %v3237_v48 = vrot.slane %v3236_v46, 2  ;;  %3338 = vrot.lane.b32.xlu1 %v6584_v53, %s5728_s30  ;;  %v3304_v13 = vmul.f32 %v7742_v51, %v6133_v33  ;;  %v3312_v7 = vmul.f32 %v7746_v62, %v6263_v34  ;;  %v2711_v18 = vpop.permute.xlu0 %2710 }
  0xda   : > { %v6597_v45 = vadd.f32 %v3288_v1, %v3282_v20  ;;  %v2705_v38 = vrot.slane %v2704_v9, 1  ;;  %v3315_v0 = vadd.f32 %v3313_v47, %v3307_v49  ;;  %v3320_v59 = vmul.f32 %v7748_v30, %v6289_v15  ;;  %v7750_v1 = vld [vmem:[#allocation13_spill] sm:$0xff]  ;;  %v7753_v30 = vld [vmem:[#allocation42_spill] sm:$0xff] }
  0xdb   : > { %v3306_v21 = vadd.f32 %v3304_v13, %v3296_v39  ;;  %v3762_v20 = vadd.f32 %v7750_v1, %v3761_v28  ;;  %v3799_v51 = vmul.f32 %v7751_v60, %v6203_v25  ;;  %v3807_v62 = vmul.f32 %v7752_v44, %v6201_v40 }
  0xdc   : > { %7749 = vst [vmem:[#allocation6_spill] sm:$0xff] %v6597_v45  ;;  %3336 = vrot.lane.b32.xlu0 %v6597_v45, %s5728_s30  ;;  %v2189_v35 = vsub.f32 %v2174_v24, %v6577_v52  ;;  %v2718_v47 = vmax.f32 %v7723_v2, %v2716_v42  ;;  %v6615_v49 = vadd.f32 %v3321_v31, %v3315_v0 }
  0xdd   : > { %v3815_v22 = vmul.f32 %v7753_v30, %v6261_v23  ;;  %v3238_v53 = vadd.f32 %v3237_v48, %v3236_v46  ;;  %v3314_v45 = vadd.f32 %v3312_v7, %v3306_v21  ;;  %v3767_v39 = vadd.f32 %v3765_v17, %v3762_v20  ;;  %v4291_v42 = vpop.permute.xlu1 %4290  ;;  %v3250_v0 = vpop.permute.xlu0 %3249 }
  0xde   : > { %v3809_v13 = vadd.f32 %v3807_v62, %v3799_v51  ;;  %3585 = vrot.lane.b32.xlu1 %v6615_v49, %s5728_s30  ;;  %v2706_v28 = vadd.f32 %v2705_v38, %v2704_v9  ;;  %v3823_v27 = vmul.f32 %v7754_v29, %v6291_v16  ;;  %v3798_v52 = vmul.f32 %v7751_v60, %v6135_v36  ;;  %v7756_v62 = vld [vmem:[#allocation44_spill] sm:$0xff] }
  0xdf   : > { %v3806_v2 = vmul.f32 %v7752_v44, %v6133_v33  ;;  %v6627_v24 = vadd.f32 %v3320_v59, %v3314_v45  ;;  %v3768_v48 = vsel %vm507_vm0, %v3767_v39, 0.0  ;;  %v3814_v31 = vmul.f32 %v7753_v30, %v6263_v34 }
  0xe0   : > { %v3817_v46 = vadd.f32 %v3815_v22, %v3809_v13  ;;  %v2720_v17 = vrot.slane %v2718_v47, 6  ;;  %v3769_v9 = vrot.slane %v3768_v48, 4  ;;  %v3822_v38 = vmul.f32 %v7754_v29, %v6289_v15  ;;  %v7755_v22 = vld [vmem:[#allocation43_spill] sm:$0xff] }
  0xe1   : > { %v3808_v7 = vadd.f32 %v3806_v2, %v3798_v52  ;;  %v3239_v60 = vrot.slane %v3238_v53, 1  ;;  %3583 = vrot.lane.b32.xlu0 %v6627_v24, %s5728_s30  ;;  %v2713_v44 = vmax.f32 %v7720_v61, %v2711_v18  ;;  %v3831_v59 = vmul.f32 %v7755_v22, %v6203_v25  ;;  %v7757_v61 = vld [vmem:[#allocation46_spill] sm:$0xff]  ;;  %v7758_v52 = vld [vmem:[#allocation49_spill] sm:$0xff] }
  0xe2   : > { %v6637_v45 = vadd.f32 %v3823_v27, %v3817_v46  ;;  %v3770_v21 = vadd.f32 %v3769_v9, %v3768_v48  ;;  %v4293_v51 = vadd.f32 %v7722_v50, %v4291_v42  ;;  %v3839_v47 = vmul.f32 %v7756_v62, %v6201_v40  ;;  %v4297_v42 = vpop.permute.xlu1 %4296 }
  0xe3   : > { %v3816_v20 = vadd.f32 %v3814_v31, %v3808_v7  ;;  %vm2707_vm4 = vcmp.gt.f32.partialorder %v2706_v28, 0.0  ;;  %v3252_v29 = vmax.f32 %v7734_v8, %v3250_v0  ;;  %v3847_v27 = vmul.f32 %v7757_v61, %v6261_v23 }
  0xe4   : > { %3872 = vrot.lane.b32.xlu1 %v6637_v45, %s5728_s30  ;;  %v3830_v18 = vmul.f32 %v7755_v22, %v6135_v36  ;;  %v3771_v30 = vrot.slane %v3770_v21, 2  ;;  %v3841_v13 = vadd.f32 %v3839_v47, %v3831_v59  ;;  %v3855_v2 = vmul.f32 %v7758_v52, %v6291_v16  ;;  %v7760_v59 = vld [vmem:[#allocation48_spill] sm:$0xff] }
  0xe5   : > { %v6651_v39 = vadd.f32 %v3822_v38, %v3816_v20  ;;  %v6655_v28 = vmax.f32 %v2189_v35, 0.0  ;;  %v6657_v48 = vmax.f32 %v2713_v44, %v2720_v17  ;;  %v3838_v8 = vmul.f32 %v7756_v62, %v6133_v33  ;;  %v3245_v38 = vpop.permute.xlu0 %3244  ;;  %v7759_v44 = vld [vmem:[#allocation47_spill] sm:$0xff] }
  0xe6   : > { %v3846_v46 = vmul.f32 %v7757_v61, %v6263_v34  ;;  %v6664_v31 = vsel %vm2707_vm4, 1.0, %v7747_v14  ;;  %v3772_v9 = vadd.f32 %v3771_v30, %v3770_v21  ;;  %v3849_v7 = vadd.f32 %v3847_v27, %v3841_v13 }
  0xe7   : > { %3870 = vrot.lane.b32.xlu0 %v6651_v39, %s5728_s30  ;;  %v4294_v35 = vadd.f32 %v4293_v51, %v7732_v26  ;;  %v3840_v0 = vadd.f32 %v3838_v8, %v3830_v18  ;;  %v3854_v17 = vmul.f32 %v7758_v52, %v6289_v15  ;;  %v4331_v22 = vmul.f32 %v7759_v44, %v6203_v25  ;;  %v7761_v51 = vld [vmem:[#allocation50_spill] sm:$0xff] }
  0xe8   : > { %v4339_v20 = vmul.f32 %v7760_v59, %v6201_v40  ;;  %v3773_v62 = vrot.slane %v3772_v9, 1  ;;  %v3254_v47 = vrot.slane %v3252_v29, 6  ;;  %v6675_v21 = vadd.f32 %v3855_v2, %v3849_v7  ;;  %v3779_v2 = vpop.permute.xlu1 %3778 }
  0xe9   : > { %v3240_v61 = vadd.f32 %v3239_v60, %v3238_v53  ;;  %v3848_v30 = vadd.f32 %v3846_v46, %v3840_v0  ;;  %v4299_v27 = vadd.f32 %v4297_v42, %v4294_v35  ;;  %v4347_v18 = vmul.f32 %v7761_v51, %v6261_v23  ;;  %v3784_v60 = vpop.permute.xlu0 %3783 }
  0xea   : > { %v4341_v13 = vadd.f32 %v4339_v20, %v4331_v22  ;;  %4119 = vrot.lane.b32.xlu1 %v6675_v21, %s5728_s30  ;;  %v3247_v52 = vmax.f32 %v7729_v57, %v3245_v38  ;;  %v4355_v8 = vmul.f32 %v6483_v19, %v6291_v16  ;;  %v4330_v29 = vmul.f32 %v7759_v44, %v6135_v36 }
  0xeb   : > { %v4338_v53 = vmul.f32 %v7760_v59, %v6133_v33  ;;  %v6688_v42 = vadd.f32 %v3854_v17, %v3848_v30  ;;  %v4300_v46 = vsel %vm507_vm0, %v4299_v27, 0.0  ;;  %v4346_v35 = vmul.f32 %v7761_v51, %v6263_v34 }
  0xec   : > { %v4349_v7 = vadd.f32 %v4347_v18, %v4341_v13  ;;  %vm3241_vm5 = vcmp.gt.f32.partialorder %v3240_v61, 0.0  ;;  %v4301_v57 = vrot.slane %v4300_v46, 4  ;;  %v4354_v0 = vmul.f32 %v6483_v19, %v6289_v15  ;;  %v7762_v13 = vld [vmem:[#allocation51_spill] sm:$0xff]  ;;  %v7763_v18 = vld [vmem:[#allocation52_spill] sm:$0xff] }
  0xed   : > { %v4340_v38 = vadd.f32 %v4338_v53, %v4330_v29  ;;  %4117 = vrot.lane.b32.xlu0 %v6688_v42, %s5728_s30  ;;  %v3786_v17 = vmax.f32 %v7750_v1, %v3784_v60  ;;  %v3774_v22 = vadd.f32 %v3773_v62, %v3772_v9  ;;  %v3781_v59 = vmax.f32 %v7745_v58, %v3779_v2 }
  0xee   : > { %v6697_v44 = vadd.f32 %v4355_v8, %v4349_v7  ;;  %v3256_v20 = vmax.f32 %v3247_v52, %v3254_v47  ;;  %v4302_v30 = vadd.f32 %v4301_v57, %v4300_v46  ;;  %v4363_v51 = vmul.f32 %v7762_v13, %v6203_v25  ;;  %v4316_v25 = vpop.permute.xlu0 %4315  ;;  %v4311_v52 = vpop.permute.xlu1 %4310 }
  0xef   : > { %v4348_v27 = vadd.f32 %v4346_v35, %v4340_v38  ;;  %v3788_v19 = vrot.slane %v3786_v17, 6  ;;  %vm3775_vm6 = vcmp.gt.f32.partialorder %v3774_v22, 0.0  ;;  %v4371_v8 = vmul.f32 %v7763_v18, %v6201_v40 }
  0xf0   : > { %4404 = vrot.lane.b32.xlu1 %v6697_v44, %s5728_s30  ;;  %v4379_v1 = vmul.f32 %v6530_v56, %v6261_v23  ;;  %v3242_v58 = vsel %vm3241_vm5, 1.0, %v7747_v14  ;;  %v4303_v9 = vrot.slane %v4302_v30, 2  ;;  %v3776_v47 = vsel %vm3775_vm6, 1.0, %v7747_v14 }
  0xf1   : > { %v6711_v62 = vadd.f32 %v4354_v0, %v4348_v27  ;;  %v3790_v29 = vmax.f32 %v3781_v59, %v3788_v19  ;;  %v4373_v53 = vadd.f32 %v4371_v8, %v4363_v51  ;;  %v4387_v60 = vmul.f32 %v6548_v11, %v6291_v16 }
  0xf2   : > { %v4362_v40 = vmul.f32 %v7762_v13, %v6135_v36  ;;  %v2723_v23 = vsub.f32 %v6664_v31, %v6657_v48  ;;  %v4304_v61 = vadd.f32 %v4303_v9, %v4302_v30  ;;  %v4370_v2 = vmul.f32 %v7763_v18, %v6133_v33  ;;  %v5642_v13 = vld [vmem:[%s5851_s23 + $0x8] sm:$0xf] }
  0xf3   : > { %4402 = vrot.lane.b32.xlu0 %v6711_v62, %s5728_s30  ;;  %v4378_v46 = vmul.f32 %v6530_v56, %v6263_v34  ;;  %v3257_v7 = vsub.f32 %v3242_v58, %v3256_v20  ;;  %v4381_v35 = vadd.f32 %v4379_v1, %v4373_v53  ;;  %v4318_v16 = vmax.f32 %v7732_v26, %v4316_v25 }
  0xf4   : > { %v4313_v57 = vmax.f32 %v7722_v50, %v4311_v52  ;;  %v4305_v36 = vrot.slane %v4304_v61, 1  ;;  %v3791_v38 = vsub.f32 %v3776_v47, %v3790_v29  ;;  %v4372_v0 = vadd.f32 %v4370_v2, %v4362_v40  ;;  %v6756_v47 = vld [vmem:[%s6518_s20 + $0x38] sm:$0xff]  ;;  %v6761_v52 = vld [vmem:[%s6518_s20 + $0x30] sm:$0xff] }
  0xf5   : > { %v4386_v48 = vmul.f32 %v6548_v11, %v6289_v15  ;;  %v6730_v31 = vadd.f32 %v4387_v60, %v4381_v35  ;;  %v4320_v17 = vrot.slane %v4318_v16, 6  ;;  %v2724_v33 = vmax.f32 %v2723_v23, 0.0  ;;  %v6771_v23 = vld [vmem:[%s5851_s23 + $0x4] sm:$0xf]  ;;  %s451_s23 = scalar_lea.vmem %s7563_s1, %s5058_s21 }
  0xf6   : > { %v4380_v22 = vadd.f32 %v4378_v46, %v4372_v0  ;;  %v4306_v59 = vadd.f32 %v4305_v36, %v4304_v61  ;;  %v7764_v34 = vrot.slane %v6541_v4, 2  ;;  %v7765_v50 = vmin.f32 %v6571_v3, 1.0 }
  0xf7   : > { %v2191_v20 = vmin.f32 %v6655_v28, 1.0  ;;  %4651 = vrot.lane.b32.xlu1 %v6730_v31, %s5728_s30  ;;  %v4322_v15 = vmax.f32 %v4313_v57, %v4320_v17  ;;  %v3258_v11 = vmax.f32 %v3257_v7, 0.0  ;;  %v3792_v30 = vmax.f32 %v3791_v38, 0.0  ;;  %v6801_v17 = vld [vmem:[%s6518_s20 + $0x48] sm:$0xff] }
  0xf8   : > { %v1102_v56 = vadd.f32 %v7764_v34, %v6541_v4  ;;  %v6738_v26 = vrot.slane %v7765_v50, %v7721_v5  ;;  %v6743_v27 = vadd.f32 %v4386_v48, %v4380_v22  ;;  %vm4307_vm7 = vcmp.gt.f32.partialorder %v4306_v59, 0.0  ;;  %v7766_v34 = vld [vmem:[#allocation5_spill] sm:$0xff] }
  0xf9   : > { %v4308_v4 = vsel %vm4307_vm7, 1.0, %v7747_v14  ;;  %v1116_v3 = vmax.f32 %v5642_v13, %v6389_v41  ;;  %v2725_v51 = vmin.f32 %v2724_v33, 1.0  ;;  %v6751_v18 = vrot.slane %v2191_v20, %v7721_v5  ;;  %v6804_v33 = vld [vmem:[%s6518_s20 + $0x40] sm:$0xff] }
  0xfa   : > { %4649 = vrot.lane.b32.xlu0 %v6743_v27, %s5728_s30  ;;  %v4323_v28 = vsub.f32 %v4308_v4, %v4322_v15  ;;  %v1103_v19 = vrot.slane %v1102_v56, 1  ;;  %v1903_v8 = vmul.f32 %v6738_v26, %v6420_v10  ;;  %v3259_v1 = vmin.f32 %v3258_v11, 1.0  ;;  %v6819_v11 = vld [vmem:[%s6518_s20 + $0x58] sm:$0xff] }
  0xfb   : > { %v3793_v58 = vmin.f32 %v3792_v30, 1.0  ;;  %v1902_v41 = vmul.f32 %v6738_v26, %v6385_v63  ;;  %v6763_v29 = vrot.slane %v1116_v3, 6  ;;  %v6766_v53 = vrot.slane %v2725_v51, %v7721_v5  ;;  %v7767_v30 = vld [vmem:[#allocation22_spill] sm:$0xff]  ;;  %v6830_v3 = vld [vmem:[%s6518_s20 + $0x50] sm:$0xff]  ;;  %v7768_v51 = vld [vmem:[#allocation25_spill] sm:$0xff] }
  0xfc   : > { %v4324_v9 = vmax.f32 %v4323_v28, 0.0  ;;  %v1905_v25 = vsub.f32 1.0, %v1903_v8  ;;  %v6768_v10 = vadd.f32 %v1103_v19, %v1102_v56  ;;  %v1111_v61 = vmax.f32 %v6771_v23, %v6412_v55 }
  0xfd   : > { %v1904_v40 = vsub.f32 1.0, %v1902_v41  ;;  %v2261_v2 = vmul.f32 %v6751_v18, %v6424_v43  ;;  %v6781_v46 = vrot.slane %v3259_v1, %v7721_v5  ;;  %v6784_v7 = vrot.slane %v3793_v58, %v7721_v5 }
  0xfe   : > { %v4325_v60 = vmin.f32 %v4324_v9, 1.0  ;;  %v6776_v63 = vmul.f32 %v6756_v47, %v1905_v25  ;;  %v2260_v16 = vmul.f32 %v6751_v18, %v6431_v32  ;;  %v2437_v43 = vmul.f32 %v6751_v18, %v6467_v37 }
  0xff   : > { %v6787_v35 = vmul.f32 %v6761_v52, %v1904_v40  ;;  %v2263_v36 = vsub.f32 1.0, %v2261_v2  ;;  %v2436_v38 = vmul.f32 %v6751_v18, %v6454_v6  ;;  %v2795_v32 = vmul.f32 %v6766_v53, %v6479_v54 }
 0x100   : > { %v6792_v57 = vrot.slane %v4325_v60, %v7721_v5  ;;  %v2262_v48 = vsub.f32 1.0, %v2260_v16  ;;  %v2794_v22 = vmul.f32 %v6766_v53, %v6486_v12  ;;  %v2439_v59 = vsub.f32 1.0, %v2437_v43  ;;  %v7769_v60 = vld [vmem:[#allocation6_spill] sm:$0xff] }
 0x101   : > { %v5413_v0 = vpack.c.bf16 %v6776_v63, %v6787_v35  ;;  %v6811_v37 = vmul.f32 %v6756_v47, %v2263_v36  ;;  %v2438_v6 = vsub.f32 1.0, %v2436_v38  ;;  %v2971_v56 = vmul.f32 %v6766_v53, %v7766_v34 }
 0x102   : > { %v6816_v50 = vmul.f32 %v6761_v52, %v2262_v48  ;;  %v2797_v20 = vsub.f32 1.0, %v2795_v32  ;;  %v2796_v15 = vsub.f32 1.0, %v2794_v22  ;;  %v2970_v54 = vmul.f32 %v6766_v53, %v7767_v30  ;;  %v6863_v32 = vld [vmem:[%s6518_s20 + $0x68] sm:$0xff]  ;;  %v6866_v22 = vld [vmem:[%s6518_s20 + $0x60] sm:$0xff] }
 0x103   : > { %v6824_v12 = vmul.f32 %v6801_v17, %v2439_v59  ;;  %v6827_v4 = vmul.f32 %v6804_v33, %v2438_v6  ;;  %v2973_v13 = vsub.f32 1.0, %v2971_v56  ;;  %v3329_v28 = vmul.f32 %v6781_v46, %v7768_v51 }
 0x104   : > { %vm1105_vm8 = vcmp.gt.f32.partialorder %v6768_v10, 0.0  ;;  %v5422_v19 = vpack.c.bf16 %v6811_v37, %v6816_v50  ;;  %v6838_v8 = vmul.f32 %v6801_v17, %v2797_v20  ;;  %v6841_v1 = vmul.f32 %v6804_v33, %v2796_v15 }
 0x105   : > { %v2972_v58 = vsub.f32 1.0, %v2970_v54  ;;  %v5425_v9 = vpack.c.bf16 %v6824_v12, %v6827_v4  ;;  %v6846_v41 = vmul.f32 %v6819_v11, %v2973_v13  ;;  %v3331_v25 = vsub.f32 1.0, %v3329_v28  ;;  %v6882_v54 = vld [vmem:[%s6518_s20 + $0x78] sm:$0xff] }
 0x106   : > { %v3328_v40 = vmul.f32 %v6781_v46, %v7769_v60  ;;  %v5434_v2 = vpack.c.bf16 %v6838_v8, %v6841_v1  ;;  %v3505_v36 = vmul.f32 %v6781_v46, %v6615_v49  ;;  %v3504_v43 = vmul.f32 %v6781_v46, %v6627_v24 }
 0x107   : > { %v6853_v16 = vmul.f32 %v6830_v3, %v2972_v58  ;;  %v6860_v38 = vmul.f32 %v6819_v11, %v3331_v25  ;;  %v3863_v59 = vmul.f32 %v6784_v7, %v6637_v45  ;;  %v3862_v6 = vmul.f32 %v6784_v7, %v6651_v39 }
 0x108   : > { %v3330_v48 = vsub.f32 1.0, %v3328_v40  ;;  %v3507_v34 = vsub.f32 1.0, %v3505_v36  ;;  %v3506_v24 = vsub.f32 1.0, %v3504_v43  ;;  %v4039_v56 = vmul.f32 %v6784_v7, %v6675_v21  ;;  %v6893_v21 = vld [vmem:[%s6518_s20 + $0x70] sm:$0xff] }
 0x109   : > { %v5437_v49 = vpack.c.bf16 %v6846_v41, %v6853_v16  ;;  %v3865_v15 = vsub.f32 1.0, %v3863_v59  ;;  %v3864_v30 = vsub.f32 1.0, %v3862_v6  ;;  %v4038_v45 = vmul.f32 %v6784_v7, %v6688_v42 }
 0x10a   : > { %v6879_v20 = vmul.f32 %v6830_v3, %v3330_v48  ;;  %v6887_v39 = vmul.f32 %v6863_v32, %v3507_v34  ;;  %v6890_v13 = vmul.f32 %v6866_v22, %v3506_v24  ;;  %v4041_v51 = vsub.f32 1.0, %v4039_v56 }
 0x10b   : > { %v4395_v28 = vmul.f32 %v6792_v57, %v6697_v44  ;;  %v6900_v25 = vmul.f32 %v6863_v32, %v3865_v15  ;;  %v6903_v42 = vmul.f32 %v6866_v22, %v3864_v30  ;;  %v4040_v60 = vsub.f32 1.0, %v4038_v45  ;;  %v6931_v15 = vld [vmem:[%s451_s23] sm:$0xff]  ;;  %v6933_v30 = vld [vmem:[%s451_s23 + $0x8] sm:$0xff] }
 0x10c   : > { %v5446_v58 = vpack.c.bf16 %v6860_v38, %v6879_v20  ;;  %v6911_v36 = vmul.f32 %v6882_v54, %v4041_v51  ;;  %v4394_v43 = vmul.f32 %v6792_v57, %v6711_v62  ;;  %v4570_v6 = vmul.f32 %v6792_v57, %v6743_v27 }
 0x10d   : > { %v4397_v44 = vsub.f32 1.0, %v4395_v28  ;;  %v6918_v59 = vmul.f32 %v6893_v21, %v4040_v60  ;;  %v4571_v34 = vmul.f32 %v6792_v57, %v6730_v31  ;;  %v1120_v24 = vmax.f32 %v1111_v61, %v6763_v29 }
 0x10e   : > { %v4396_v62 = vsub.f32 1.0, %v4394_v43  ;;  %v1106_v27 = vsel %vm1105_vm8, 1.0, %v7747_v14  ;;  %v4572_v45 = vsub.f32 1.0, %v4570_v6  ;;  %v7770_v6 = vld [vmem:[#allocation21_spill] sm:$0xff] }
 0x10f   : > { %v6929_v56 = vmul.f32 %v6882_v54, %v4397_v44  ;;  %v4573_v51 = vsub.f32 1.0, %v4571_v34  ;;  %v1121_v61 = vsub.f32 %v1106_v27, %v1120_v24 }
 0x110   : > { %v6941_v55 = vmul.f32 %v6893_v21, %v4396_v62  ;;  %v6944_v29 = vmul.f32 %v4572_v45, %v6931_v15 }
 0x111   : > { %v6947_v23 = vmul.f32 %v4573_v51, %v6933_v30  ;;  %v1122_v60 = vmax.f32 %v1121_v61, 0.0 }
 0x113   : > { %v1123_v31 = vmin.f32 %v1122_v60, 1.0 }
 0x115   : > { %v6960_v61 = vrot.slane %v1123_v31, %v7721_v5 }
 0x11c   : > { %v647_v44 = vpop.permute.xlu1 %646  ;;  %v645_v43 = vpop.permute.xlu0 %644 }
 0x11d   : > { %v651_v34 = vmul.f32 %v647_v44, %v7770_v6  ;;  %v650_v62 = vmul.f32 %v645_v43, %v7770_v6 }
 0x11f   : > { %v653_v45 = vsub.f32 1.0, %v651_v34  ;;  %v652_v48 = vsub.f32 1.0, %v650_v62 }
 0x120   : > { %v904_v40 = vpop.permute.xlu1 %903  ;;  %v906_v51 = vpop.permute.xlu0 %905 }
 0x121   : > { %v909_v24 = vmul.f32 %v904_v40, %v7770_v6  ;;  %v910_v27 = vmul.f32 %v906_v51, %v7770_v6  ;;  %658 = vrot.lane.b32.xlu1 %v653_v45, %s5731_s8  ;;  %656 = vrot.lane.b32.xlu0 %v652_v48, %s5731_s8 }
 0x123   : > { %v911_v44 = vsub.f32 1.0, %v909_v24  ;;  %v912_v10 = vsub.f32 1.0, %v910_v27 }
 0x124   : > { %v1203_v43 = vpop.permute.xlu1 %1202  ;;  %v1201_v60 = vpop.permute.xlu0 %1200 }
 0x125   : > { %v1207_v34 = vmul.f32 %v1203_v43, %v6960_v61  ;;  %v1206_v62 = vmul.f32 %v1201_v60, %v6960_v61  ;;  %915 = vrot.lane.b32.xlu0 %v911_v44, %s5731_s8  ;;  %917 = vrot.lane.b32.xlu1 %v912_v10, %s5731_s8 }
 0x127   : > { %v1209_v40 = vsub.f32 1.0, %v1207_v34  ;;  %v1208_v51 = vsub.f32 1.0, %v1206_v62 }
 0x128   : > { %v1448_v45 = vpop.permute.xlu1 %1447  ;;  %v1450_v28 = vpop.permute.xlu0 %1449 }
 0x129   : > { %v1453_v48 = vmul.f32 %v1448_v45, %v6960_v61  ;;  %v1454_v5 = vmul.f32 %v1450_v28, %v6960_v61  ;;  %1214 = vrot.lane.b32.xlu1 %v1209_v40, %s5731_s8  ;;  %1212 = vrot.lane.b32.xlu0 %v1208_v51, %s5731_s8 }
 0x12b   : > { %v1455_v31 = vsub.f32 1.0, %v1453_v48  ;;  %v1456_v24 = vsub.f32 1.0, %v1454_v5 }
 0x12c   : > { %v1737_v27 = vpop.permute.xlu1 %1736  ;;  %v1735_v43 = vpop.permute.xlu0 %1734 }
 0x12d   : > { %v1741_v44 = vmul.f32 %v1737_v27, %v6738_v26  ;;  %v1740_v10 = vmul.f32 %v1735_v43, %v6738_v26  ;;  %1459 = vrot.lane.b32.xlu0 %v1455_v31, %s5731_s8  ;;  %1461 = vrot.lane.b32.xlu1 %v1456_v24, %s5731_s8 }
 0x12f   : > { %v1743_v60 = vsub.f32 1.0, %v1741_v44  ;;  %v1742_v34 = vsub.f32 1.0, %v1740_v10 }
 0x130   : > { %v1982_v62 = vpop.permute.xlu1 %1981  ;;  %v1984_v28 = vpop.permute.xlu0 %1983 }
 0x131   : > { %v1987_v40 = vmul.f32 %v1982_v62, %v6738_v26  ;;  %v1988_v51 = vmul.f32 %v1984_v28, %v6738_v26  ;;  %1748 = vrot.lane.b32.xlu1 %v1743_v60, %s5731_s8  ;;  %1746 = vrot.lane.b32.xlu0 %v1742_v34, %s5731_s8 }
 0x133   : > { %v1989_v45 = vsub.f32 1.0, %v1987_v40  ;;  %v1990_v48 = vsub.f32 1.0, %v1988_v51 }
 0x134   : > { %v2271_v5 = vpop.permute.xlu1 %2270  ;;  %v2269_v27 = vpop.permute.xlu0 %2268 }
 0x135   : > { %v2275_v31 = vmul.f32 %v2271_v5, %v6751_v18  ;;  %v2274_v24 = vmul.f32 %v2269_v27, %v6751_v18  ;;  %1993 = vrot.lane.b32.xlu0 %v1989_v45, %s5731_s8  ;;  %1995 = vrot.lane.b32.xlu1 %v1990_v48, %s5731_s8 }
 0x137   : > { %v2277_v43 = vsub.f32 1.0, %v2275_v31  ;;  %v2276_v44 = vsub.f32 1.0, %v2274_v24 }
 0x138   : > { %v2516_v10 = vpop.permute.xlu1 %2515  ;;  %v2518_v62 = vpop.permute.xlu0 %2517 }
 0x139   : > { %v2521_v60 = vmul.f32 %v2516_v10, %v6751_v18  ;;  %v2522_v34 = vmul.f32 %v2518_v62, %v6751_v18  ;;  %2282 = vrot.lane.b32.xlu1 %v2277_v43, %s5731_s8  ;;  %2280 = vrot.lane.b32.xlu0 %v2276_v44, %s5731_s8 }
 0x13b   : > { %v2523_v28 = vsub.f32 1.0, %v2521_v60  ;;  %v2524_v40 = vsub.f32 1.0, %v2522_v34 }
 0x13c   : > { %v2805_v51 = vpop.permute.xlu1 %2804  ;;  %v2803_v5 = vpop.permute.xlu0 %2802 }
 0x13d   : > { %v2809_v45 = vmul.f32 %v2805_v51, %v6766_v53  ;;  %v2808_v48 = vmul.f32 %v2803_v5, %v6766_v53  ;;  %2527 = vrot.lane.b32.xlu0 %v2523_v28, %s5731_s8  ;;  %2529 = vrot.lane.b32.xlu1 %v2524_v40, %s5731_s8 }
 0x13f   : > { %v2811_v27 = vsub.f32 1.0, %v2809_v45  ;;  %v2810_v31 = vsub.f32 1.0, %v2808_v48 }
 0x140   : > { %v3052_v18 = vpop.permute.xlu1 %3051 }
 0x141   : > { %2816 = vrot.lane.b32.xlu1 %v2811_v27, %s5731_s8  ;;  %2814 = vrot.lane.b32.xlu0 %v2810_v31, %s5731_s8  ;;  %v3056_v24 = vmul.f32 %v3052_v18, %v6766_v53 }
 0x143   : > { %v3058_v43 = vsub.f32 1.0, %v3056_v24  ;;  %v3050_v44 = vpop.permute.xlu0 %3049 }
 0x144   : > { %v3055_v10 = vmul.f32 %v3050_v44, %v6766_v53 }
 0x145   : > { %3063 = vrot.lane.b32.xlu1 %v3058_v43, %s5731_s8 }
 0x146   : > { %v3057_v62 = vsub.f32 1.0, %v3055_v10 }
 0x148   : > { %3061 = vrot.lane.b32.xlu0 %v3057_v62, %s5731_s8 }
 0x14b   : > { %v3339_v60 = vpop.permute.xlu1 %3338 }
 0x14c   : > { %v3343_v34 = vmul.f32 %v3339_v60, %v6781_v46 }
 0x14e   : > { %v3337_v28 = vpop.permute.xlu0 %3336  ;;  %v3345_v40 = vsub.f32 1.0, %v3343_v34 }
 0x14f   : > { %v3342_v51 = vmul.f32 %v3337_v28, %v6781_v46 }
 0x150   : > { %v3586_v45 = vpop.permute.xlu1 %3585  ;;  %3350 = vrot.lane.b32.xlu1 %v3345_v40, %s5731_s8 }
 0x151   : > { %v3344_v5 = vsub.f32 1.0, %v3342_v51  ;;  %v3590_v48 = vmul.f32 %v3586_v45, %v6781_v46 }
 0x153   : > { %3348 = vrot.lane.b32.xlu0 %v3344_v5, %s5731_s8  ;;  %v3592_v53 = vsub.f32 1.0, %v3590_v48  ;;  %v3584_v27 = vpop.permute.xlu0 %3583 }
 0x154   : > { %v3589_v31 = vmul.f32 %v3584_v27, %v6781_v46 }
 0x155   : > { %3597 = vrot.lane.b32.xlu1 %v3592_v53, %s5731_s8 }
 0x156   : > { %v3873_v18 = vpop.permute.xlu1 %3872  ;;  %v3591_v24 = vsub.f32 1.0, %v3589_v31 }
 0x157   : > { %v3877_v43 = vmul.f32 %v3873_v18, %v6784_v7 }
 0x158   : > { %3595 = vrot.lane.b32.xlu0 %v3591_v24, %s5731_s8 }
 0x159   : > { %v3879_v44 = vsub.f32 1.0, %v3877_v43  ;;  %v3871_v10 = vpop.permute.xlu0 %3870 }
 0x15a   : > { %v3876_v62 = vmul.f32 %v3871_v10, %v6784_v7 }
 0x15b   : > { %3884 = vrot.lane.b32.xlu1 %v3879_v44, %s5731_s8  ;;  %v7021_v44 = vld [vmem:[%s7567_s5] sm:$0xff] }
 0x15c   : > { %v3878_v60 = vsub.f32 1.0, %v3876_v62  ;;  %v4120_v34 = vpop.permute.xlu1 %4119  ;;  %5170 = vmatmul.mubr.msk.f32.vlgmr.msra.gmra.mrb[0].mxu1 %vm675_vm10, %v7021_v44 }
 0x15d   : > { %v4124_v28 = vmul.f32 %v4120_v34, %v6784_v7  ;;  %v7771_v34 = vld [vmem:[#allocation20_spill] sm:$0xff]  ;;  %5183 = vmatprep.mubr.msk.f32.mxu1 %vm5733_vm9, %v7747_v14 }
 0x15e   : > { %3882 = vrot.lane.b32.xlu0 %v3878_v60, %s5731_s8 }
 0x15f   : > { %v4126_v46 = vsub.f32 1.0, %v4124_v28  ;;  %v4118_v40 = vpop.permute.xlu0 %4117 }
 0x160   : > { %v4123_v51 = vmul.f32 %v4118_v40, %v6784_v7 }
 0x161   : > { %4131 = vrot.lane.b32.xlu1 %v4126_v46, %s5731_s8  ;;  %v7772_v46 = vld [vmem:[#allocation19_spill] sm:$0xff] }
 0x162   : > { %v4405_v5 = vpop.permute.xlu1 %4404  ;;  %v4125_v45 = vsub.f32 1.0, %v4123_v51 }
 0x163   : > { %v4409_v48 = vmul.f32 %v4405_v5, %v6792_v57 }
 0x164   : > { %4129 = vrot.lane.b32.xlu0 %v4125_v45, %s5731_s8 }
 0x165   : > { %v4411_v53 = vsub.f32 1.0, %v4409_v48  ;;  %v4403_v27 = vpop.permute.xlu0 %4402 }
 0x166   : > { %v4408_v31 = vmul.f32 %v4403_v27, %v6792_v57  ;;  %v7040_v27 = vld [vmem:[%s6518_s20 + $0x10] sm:$0xff] }
 0x167   : > { %4416 = vrot.lane.b32.xlu1 %v4411_v53, %s5731_s8  ;;  %v7037_v53 = vld [vmem:[%s6518_s20 + $0x18] sm:$0xff] }
 0x168   : > { %v4410_v18 = vsub.f32 1.0, %v4408_v31 }
 0x169   : > { %v4652_v10 = vpop.permute.xlu1 %4651 }
 0x16a   : > { %4414 = vrot.lane.b32.xlu0 %v4410_v18, %s5731_s8  ;;  %v4656_v51 = vmul.f32 %v4652_v10, %v6792_v57 }
 0x16c   : > { %v4650_v24 = vpop.permute.xlu0 %4649  ;;  %v4658_v31 = vsub.f32 1.0, %v4656_v51 }
 0x16d   : > { %v4655_v7 = vmul.f32 %v4650_v24, %v6792_v57 }
 0x16f   : > { %v4657_v43 = vsub.f32 1.0, %v4655_v7 }
 0x171   : > { %4661 = vrot.lane.b32.xlu1 %v4657_v43, %s5731_s8 }
 0x175   : > { %665 = vrot.lane.b32.xlu1 %v7021_v44, %s5732_s15 }
 0x193   : > { %v659_v62 = vpop.permute.xlu1 %658  ;;  %v657_v60 = vpop.permute.xlu0 %656 }
 0x194   : > { %v663_v28 = vmul.f32 %v659_v62, %v7771_v34  ;;  %v662_v40 = vmul.f32 %v657_v60, %v7772_v46  ;;  %v7050_v46 = vld [vmem:[%s6518_s20 + $0x28] sm:$0xff] }
 0x196   : > { %v5560_v5 = vpack.i.bf16 %v663_v28, %v662_v40  ;;  %v7053_v40 = vld [vmem:[%s6518_s20 + $0x20] sm:$0xff] }
 0x197   : > { %v918_v45 = vpop.permute.xlu1 %917  ;;  %v916_v48 = vpop.permute.xlu0 %915 }
 0x198   : > { %5561 = vrot.lane.b32.xlu0 %v5560_v5, %s5728_s30  ;;  %v922_v57 = vmul.f32 %v7037_v53, %v918_v45  ;;  %v921_v18 = vmul.f32 %v7040_v27, %v916_v48 }
 0x19a   : > { %v5565_v62 = vpack.i.bf16 %v922_v57, %v921_v18 }
 0x19b   : > { %v1215_v24 = vpop.permute.xlu1 %1214  ;;  %v1213_v7 = vpop.permute.xlu0 %1212 }
 0x19c   : > { %v1219_v43 = vmul.f32 %v7037_v53, %v1215_v24  ;;  %v1218_v10 = vmul.f32 %v7040_v27, %v1213_v7  ;;  %4663 = vrot.lane.b32.xlu0 %v4658_v31, %s5731_s8 }
 0x19e   : > { %v5570_v60 = vpack.i.bf16 %v1219_v43, %v1218_v10 }
 0x19f   : > { %v1462_v34 = vpop.permute.xlu1 %1461  ;;  %v1460_v28 = vpop.permute.xlu0 %1459 }
 0x1a0   : > { %5571 = vrot.lane.b32.xlu1 %v5570_v60, %s5728_s30  ;;  %5566 = vrot.lane.b32.xlu0 %v5565_v62, %s5728_s30  ;;  %v1466_v51 = vmul.f32 %v7050_v46, %v1462_v34  ;;  %v1465_v5 = vmul.f32 %v7053_v40, %v1460_v28 }
 0x1a2   : > { %v5575_v18 = vpack.i.bf16 %v1466_v51, %v1465_v5 }
 0x1a3   : > { %v1749_v45 = vpop.permute.xlu1 %1748  ;;  %v1747_v48 = vpop.permute.xlu0 %1746 }
 0x1a4   : > { %v1753_v31 = vmul.f32 %v7050_v46, %v1749_v45  ;;  %v1752_v57 = vmul.f32 %v7053_v40, %v1747_v48  ;;  %923 = vrot.lane.b32.xlu1 %v7021_v44, %s5734_s16  ;;  %826 = vrot.lane.b32.xlu0 %v7021_v44, %s5735_s17  ;;  %s5737_s16 = smov [#allocation2]  }
 0x1a5   : > { %s5648_s17 = sshll.u32 %s5737_s16, 4  ;;  %s5649_s17 = int_to_ptr.vmem [resolvable:$false] %s5648_s17 }
 0x1a6   : > { %v5580_v24 = vpack.i.bf16 %v1753_v31, %v1752_v57  ;;  %s5650_s18 = scalar_lea.vmem %s5649_s17, 2048 }
 0x1a7   : > { %v1996_v7 = vpop.permute.xlu1 %1995  ;;  %v1994_v43 = vpop.permute.xlu0 %1993 }
 0x1a8   : > { %v2000_v10 = vmul.f32 %v6756_v47, %v1996_v7  ;;  %v1999_v62 = vmul.f32 %v6761_v52, %v1994_v43  ;;  %5581 = vrot.lane.b32.xlu1 %v5580_v24, %s5728_s30  ;;  %5576 = vrot.lane.b32.xlu0 %v5575_v18, %s5728_s30 }
 0x1aa   : > { %v5585_v60 = vpack.i.bf16 %v2000_v10, %v1999_v62 }
 0x1ab   : > { %v2283_v34 = vpop.permute.xlu1 %2282  ;;  %v2281_v28 = vpop.permute.xlu0 %2280 }
 0x1ac   : > { %v2287_v45 = vmul.f32 %v6756_v47, %v2283_v34  ;;  %v2286_v48 = vmul.f32 %v6761_v52, %v2281_v28  ;;  %5586 = vrot.lane.b32.xlu0 %v5585_v60, %s5728_s30 }
 0x1ae   : > { %v5590_v51 = vpack.i.bf16 %v2287_v45, %v2286_v48 }
 0x1af   : > { %v2530_v5 = vpop.permute.xlu1 %2529  ;;  %v2528_v31 = vpop.permute.xlu0 %2527 }
 0x1b0   : > { %v2534_v57 = vmul.f32 %v6801_v17, %v2530_v5  ;;  %v2533_v7 = vmul.f32 %v6804_v33, %v2528_v31  ;;  %5591 = vrot.lane.b32.xlu1 %v5590_v51, %s5728_s30 }
 0x1b2   : > { %v5595_v24 = vpack.i.bf16 %v2534_v57, %v2533_v7 }
 0x1b3   : > { %v2817_v18 = vpop.permute.xlu1 %2816  ;;  %v2815_v43 = vpop.permute.xlu0 %2814 }
 0x1b4   : > { %v2821_v10 = vmul.f32 %v6801_v17, %v2817_v18  ;;  %v2820_v47 = vmul.f32 %v6804_v33, %v2815_v43  ;;  %5596 = vrot.lane.b32.xlu0 %v5595_v24, %s5728_s30 }
 0x1b6   : > { %v5600_v52 = vpack.i.bf16 %v2821_v10, %v2820_v47 }
 0x1b7   : > { %v3064_v62 = vpop.permute.xlu1 %3063 }
 0x1b8   : > { %5601 = vrot.lane.b32.xlu1 %v5600_v52, %s5728_s30  ;;  %v3068_v60 = vmul.f32 %v6819_v11, %v3064_v62 }
 0x1ba   : > { %v3062_v34 = vpop.permute.xlu0 %3061 }
 0x1bb   : > { %v3067_v28 = vmul.f32 %v6830_v3, %v3062_v34 }
 0x1bd   : > { %v5605_v45 = vpack.i.bf16 %v3068_v60, %v3067_v28 }
 0x1bf   : > { %5606 = vrot.lane.b32.xlu0 %v5605_v45, %s5728_s30 }
 0x1c2   : > { %v3351_v48 = vpop.permute.xlu1 %3350 }
 0x1c3   : > { %v3355_v51 = vmul.f32 %v6819_v11, %v3351_v48 }
 0x1c5   : > { %v3349_v17 = vpop.permute.xlu0 %3348 }
 0x1c6   : > { %v3354_v33 = vmul.f32 %v6830_v3, %v3349_v17 }
 0x1c7   : > { %v3598_v31 = vpop.permute.xlu1 %3597 }
 0x1c8   : > { %v5610_v5 = vpack.i.bf16 %v3355_v51, %v3354_v33  ;;  %v3602_v57 = vmul.f32 %v6863_v32, %v3598_v31 }
 0x1ca   : > { %5611 = vrot.lane.b32.xlu1 %v5610_v5, %s5728_s30  ;;  %v3596_v7 = vpop.permute.xlu0 %3595  ;;  %v7774_v5 = vld [vmem:[#allocation53_spill] sm:$0xff] }
 0x1cb   : > { %v3601_v24 = vmul.f32 %v6866_v22, %v3596_v7  ;;  %v820_v31 = vmul.f32 %v7770_v6, %v7774_v5 }
 0x1cd   : > { %v3885_v18 = vpop.permute.xlu1 %3884  ;;  %v5615_v43 = vpack.i.bf16 %v3602_v57, %v3601_v24  ;;  %v822_v24 = vsub.f32 1.0, %v820_v31 }
 0x1ce   : > { %v3889_v10 = vmul.f32 %v6863_v32, %v3885_v18 }
 0x1cf   : > { %5616 = vrot.lane.b32.xlu0 %v5615_v43, %s5728_s30 }
 0x1d0   : > { %v3883_v47 = vpop.permute.xlu0 %3882 }
 0x1d1   : > { %v3888_v11 = vmul.f32 %v6866_v22, %v3883_v47  ;;  %v7773_v22 = vld [vmem:[#allocation54_spill] sm:$0xff] }
 0x1d2   : > { %v821_v33 = vmul.f32 %v7770_v6, %v7773_v22  ;;  %v485_v6 = vld [vmem:[%s7568_s6] sm:$0xff] }
 0x1d3   : > { %v5620_v52 = vpack.i.bf16 %v3889_v10, %v3888_v11  ;;  %v4132_v3 = vpop.permute.xlu1 %4131  ;;  %v7775_v10 = vld [vmem:[#allocation55_spill] sm:$0xff] }
 0x1d4   : > { %v4136_v62 = vmul.f32 %v6882_v54, %v4132_v3  ;;  %v823_v7 = vsub.f32 1.0, %v821_v33  ;;  %v1193_v47 = vmul.f32 %v6960_v61, %v7775_v10  ;;  %v7776_v3 = vld [vmem:[#allocation56_spill] sm:$0xff]  ;;  %v7779_v33 = vmov 0.0|0.0  }
 0x1d5   : > { %5621 = vrot.lane.b32.xlu1 %v5620_v52, %s5728_s30  ;;  %v824_v52 = vmul.f32 %v7040_v27, %v822_v24 }
 0x1d6   : > { %v4130_v60 = vpop.permute.xlu0 %4129  ;;  %v1195_v22 = vsub.f32 1.0, %v1193_v47 }
 0x1d7   : > { %v4135_v34 = vmul.f32 %v6893_v21, %v4130_v60 }
 0x1d9   : > { %v4417_v28 = vpop.permute.xlu1 %4416  ;;  %v5625_v45 = vpack.i.bf16 %v4136_v62, %v4135_v34  ;;  %v1192_v62 = vmul.f32 %v6960_v61, %v7776_v3  ;;  %v7777_v34 = vld [vmem:[#allocation58_spill] sm:$0xff] }
 0x1da   : > { %v4421_v48 = vmul.f32 %v6882_v54, %v4417_v28  ;;  %v1369_v28 = vmul.f32 %v6960_v61, %v7777_v34 }
 0x1db   : > { %5626 = vrot.lane.b32.xlu0 %v5625_v45, %s5728_s30  ;;  %v7778_v45 = vld [vmem:[#allocation57_spill] sm:$0xff]  ;;  %v1194_v31 = vsub.f32 1.0, %v1192_v62 }
 0x1dc   : > { %v4415_v51 = vpop.permute.xlu0 %4414  ;;  %v1371_v24 = vsub.f32 1.0, %v1369_v28 }
 0x1dd   : > { %v4420_v32 = vmul.f32 %v6893_v21, %v4415_v51  ;;  %v825_v21 = vmul.f32 %v7037_v53, %v823_v7 }
 0x1de   : > { %v1373_v34 = vmul.f32 %v7050_v46, %v1371_v24 }
 0x1df   : > { %v5630_v17 = vpack.i.bf16 %v4421_v48, %v4420_v32  ;;  %v1368_v48 = vmul.f32 %v6960_v61, %v7778_v45  ;;  %v5389_v5 = vpack.c.bf16 %v825_v21, %v824_v52  ;;  %v1196_v21 = vmul.f32 %v7040_v27, %v1194_v31  ;;  %v7781_v52 = vld [vmem:[#allocation60_spill] sm:$0xff] }
 0x1e0   : > { %v1726_v62 = vmul.f32 %v6738_v26, %v7781_v52 }
 0x1e1   : > { %5631 = vrot.lane.b32.xlu1 %v5630_v17, %s5728_s30 }
 0x1e2   : > { %v1728_v27 = vsub.f32 1.0, %v1726_v62 }
 0x1e3   : > { %v4662_v57 = vpop.permute.xlu1 %4661 }
 0x1e4   : > { %v4667_v32 = vmul.f32 %v4662_v57, %v6931_v15  ;;  %v7780_v57 = vld [vmem:[#allocation59_spill] sm:$0xff] }
 0x1e5   : > { %1008 = vperm.xlu1 %5640, %v485_v6   ;;  %v1727_v47 = vmul.f32 %v6738_v26, %v7780_v57 }
 0x1e7   : > { %v7099_v11 = vpop.permute.xlu1 %665 }
 0x20a   : > { %v5562_v18 = vpop.permute.xlu0 %5561 }
 0x20b   : > { %v5564_v43 = vunpack.i.h.bf16 %v5562_v18  ;;  %v5563_v54 = vunpack.i.l.bf16 %v5562_v18  ;;  %v1370_v18 = vsub.f32 1.0, %v1368_v48  ;;  %v1729_v48 = vsub.f32 1.0, %v1727_v47 }
 0x20d   : > { %v5383_v60 = vpack.c.bf16 %v5564_v43, %v5563_v54  ;;  %v1372_v28 = vmul.f32 %v7053_v40, %v1370_v18  ;;  %v1731_v24 = vmul.f32 %v7050_v46, %v1729_v48  ;;  %v1730_v18 = vmul.f32 %v7053_v40, %v1728_v27 }
 0x20e   : > { %v4664_v51 = vpop.permute.xlu0 %4663 }
 0x20f   : > { %v4668_v17 = vmul.f32 %v4664_v51, %v6933_v30  ;;  %5384 = vmatpush3.bf16.msra.mxu0 %v5383_v60  ;;  %v1197_v30 = vmul.f32 %v7037_v53, %v1195_v22  ;;  %v5401_v51 = vpack.c.bf16 %v1373_v34, %v1372_v28  ;;  %v5410_v46 = vpack.c.bf16 %v1731_v24, %v1730_v18 }
 0x210   : > { %5388 = vmatprep.subr.bf16.mxu0 %v7779_v33 }
 0x211   : > { %v5635_v7 = vpack.i.bf16 %v4668_v17, %v4667_v32  ;;  %v5398_v26 = vpack.c.bf16 %v1197_v30, %v1196_v21 }
 0x212   : > { %v5572_v43 = vpop.permute.xlu1 %5571  ;;  %v5567_v54 = vpop.permute.xlu0 %5566  ;;  %5163 = vmatmul.mubr.msk.f32.vlgmr.msra.gmra.mrb[0].mxu0 %vm675_vm10, %v7099_v11 }
 0x213   : > { %v5574_v61 = vunpack.i.h.bf16 %v5572_v43  ;;  %v5573_v10 = vunpack.i.l.bf16 %v5572_v43  ;;  %v5569_v3 = vunpack.i.h.bf16 %v5567_v54  ;;  %v5568_v15 = vunpack.i.l.bf16 %v5567_v54  ;;  %5636 = vrot.lane.b32.xlu0 %v5635_v7, %s5728_s30  ;;  %5390 = vmatpush3.bf16.msra.mxu0 %v5389_v5  ;;  %s417_s30 = sand.u32 1, %s5706_s25  }
 0x214   : > { %5176 = vmatprep.mubr.msk.f32.mxu0 %vm5733_vm9, %v7747_v14  ;;  %5394 = vmatprep.subr.bf16.mxu0 %v7779_v33  ;;  %s4973_s21 = sshll.u32 %s417_s30, 6  ;;  %s7516_s27 = scalar_lea.sflag [#allocation3], %s417_s30 }
 0x215   : > { %v5395_v60 = vpack.c.bf16 %v5574_v61, %v5573_v10  ;;  %v5392_v6 = vpack.c.bf16 %v5569_v3, %v5568_v15  ;;  %s7325_s19 = scalar_lea.vmem [#allocation2], %s4973_s21 }
 0x216   : > { %v7129_v53 = vpop.permute.xlu1 %923  ;;  %v7131_v45 = vpop.permute.xlu0 %826  ;;  %s4830_s23 = sshll.u32 %s7325_s19, 4  ;;  %s7504_s23 = int_to_ptr.vmem [resolvable:$true] %s4830_s23 }
 0x217   : > { %5177 = vmatmul.mubr.msk.f32.vlgmr.msra.gmra.mrb[2].mxu0 %vm675_vm10, %v7131_v45  ;;  %5393 = vmatpush3.bf16.msra.mxu1 %v5392_v6  ;;  %s5644_s15 = scalar_lea.vmem %s7504_s23, 1024  ;;  %p5651_p1 = scmp.lt.s32.totalorder %s7504_s23, %s5649_s17 }
 0x218   : > { %5396 = vmatpush3.bf16.msra.mxu0 %v5395_v60  ;;  %5190 = vmatprep.mubr.msk.f32.mxu0 %vm5733_vm9, %v7747_v14  ;;  %p5645_p12 = scmp.ne.s32.totalorder %s7504_s23, %s5644_s15  ;;  %p5652_p2 = scmp.lt.s32.totalorder %s5650_s18, %s5644_s15 }
 0x219   : > { %5397 = vmatprep.subr.bf16.mxu1 %v7779_v33  ;;  %5400 = vmatprep.subr.bf16.mxu0 %v7779_v33 }
 0x21a   : > { %v5582_v32 = vpop.permute.xlu1 %5581  ;;  %v5577_v17 = vpop.permute.xlu0 %5576  ;;  %5184 = vmatmul.mubr.msk.f32.vlgmr.msra.gmra.mrb[2].mxu1 %vm675_vm10, %v7129_v53  ;;  %p5646_p13 = pnand %p5645_p12, %p5820_p4  ;;  %p5653_p3 = por %p5652_p2, %p5651_p1 }
 0x21b   : > { %v5584_v22 = vunpack.i.h.bf16 %v5582_v32  ;;  %v5583_v5 = vunpack.i.l.bf16 %v5582_v32  ;;  %v5579_v31 = vunpack.i.h.bf16 %v5577_v17  ;;  %v5578_v7 = vunpack.i.l.bf16 %v5577_v17  ;;  %5191 = vmatmul.mubr.msk.f32.vlgmr.msra.gmra.mrb[4].mxu0 %vm675_vm10, %v7099_v11  ;;  %5399 = vmatpush3.bf16.msra.mxu1 %v5398_v26 }
 0x21c   : > { %5402 = vmatpush3.bf16.msra.mxu0 %v5401_v51  ;;  %5197 = vmatprep.mubr.msk.f32.mxu1 %vm5733_vm9, %v7747_v14  ;;  %p5647_p0 = pneg %p5646_p13 }
 0x21d   : > { %v5407_v43 = vpack.c.bf16 %v5584_v22, %v5583_v5  ;;  %v5404_v54 = vpack.c.bf16 %v5579_v31, %v5578_v7  ;;  %5204 = vmatprep.mubr.msk.f32.mxu0 %vm5733_vm9, %v7747_v14  ;;  %5403 = vmatprep.subr.bf16.mxu1 %v7779_v33 }
 0x21e   : > { %v5587_v61 = vpop.permute.xlu0 %5586  ;;  %5198 = vmatmul.mubr.msk.f32.vlgmr.msra.gmra.mrb[4].mxu1 %vm675_vm10, %v7021_v44  ;;  %5406 = vmatprep.subr.bf16.mxu0 %v7779_v33  ;;  %p5654_p5 = pnand %p5653_p3, %p5647_p0 }
 0x21f   : > { %5205 = vmatmul.mubr.msk.f32.vlgmr.msra.gmra.mrb[6].mxu0 %vm675_vm10, %v7131_v45  ;;  %5405 = vmatpush3.bf16.msra.mxu1 %v5404_v54  ;;  %v5589_v40 = vunpack.i.h.bf16 %v5587_v61  ;;  %v5588_v10 = vunpack.i.l.bf16 %v5587_v61  ;;  %v7787_v61 = vld [vmem:[#allocation16_spill] sm:$0xff] }
 0x220   : > { %5408 = vmatpush3.bf16.msra.mxu0 %v5407_v43  ;;  %5211 = vmatprep.mubr.msk.f32.mxu1 %vm5733_vm9, %v7747_v14 }
 0x221   : > { %5218 = vmatprep.mubr.msk.f32.mxu0 %vm5733_vm9, %v7747_v14  ;;  %5409 = vmatprep.subr.bf16.mxu1 %v7779_v33  ;;  %v5416_v57 = vpack.c.bf16 %v5589_v40, %v5588_v10 }
 0x222   : > { %v5592_v3 = vpop.permute.xlu1 %5591  ;;  %5212 = vmatmul.mubr.msk.f32.vlgmr.msra.gmra.mrb[6].mxu1 %vm675_vm10, %v7129_v53  ;;  %5412 = vmatprep.subr.bf16.mxu0 %v7779_v33 }
 0x223   : > { %v5594_v15 = vunpack.i.h.bf16 %v5592_v3  ;;  %v5593_v30 = vunpack.i.l.bf16 %v5592_v3  ;;  %5219 = vmatmul.mubr.msk.f32.vlgmr.msra.gmra.mrb[8].mxu0 %vm675_vm10, %v7099_v11  ;;  %5411 = vmatpush3.bf16.msra.mxu1 %v5410_v46 }
 0x224   : > { %5414 = vmatpush3.bf16.msra.mxu0 %v5413_v0  ;;  %5225 = vmatprep.mubr.msk.f32.mxu1 %vm5733_vm9, %v7747_v14 }
 0x225   : > { %v5419_v47 = vpack.c.bf16 %v5594_v15, %v5593_v30  ;;  %5232 = vmatprep.mubr.msk.f32.mxu0 %vm5733_vm9, %v7747_v14  ;;  %5415 = vmatprep.subr.bf16.mxu1 %v7779_v33 }
 0x226   : > { %v5597_v21 = vpop.permute.xlu0 %5596  ;;  %5226 = vmatmul.mubr.msk.f32.vlgmr.msra.gmra.mrb[8].mxu1 %vm675_vm10, %v7021_v44  ;;  %5418 = vmatprep.subr.bf16.mxu0 %v7779_v33 }
 0x227   : > { %5233 = vmatmul.mubr.msk.f32.vlgmr.msra.gmra.mrb[10].mxu0 %vm675_vm10, %v7131_v45  ;;  %5417 = vmatpush3.bf16.msra.mxu1 %v5416_v57  ;;  %v5599_v63 = vunpack.i.h.bf16 %v5597_v21  ;;  %v5598_v35 = vunpack.i.l.bf16 %v5597_v21 }
 0x228   : > { %5420 = vmatpush3.bf16.msra.mxu0 %v5419_v47  ;;  %5239 = vmatprep.mubr.msk.f32.mxu1 %vm5733_vm9, %v7747_v14 }
 0x229   : > { %5246 = vmatprep.mubr.msk.f32.mxu0 %vm5733_vm9, %v7747_v14  ;;  %5421 = vmatprep.subr.bf16.mxu1 %v7779_v33  ;;  %v5428_v60 = vpack.c.bf16 %v5599_v63, %v5598_v35 }
 0x22a   : > { %v5602_v0 = vpop.permute.xlu1 %5601  ;;  %5240 = vmatmul.mubr.msk.f32.vlgmr.msra.gmra.mrb[10].mxu1 %vm675_vm10, %v7129_v53  ;;  %5424 = vmatprep.subr.bf16.mxu0 %v7779_v33 }
 0x22b   : > { %v5604_v52 = vunpack.i.h.bf16 %v5602_v0  ;;  %v5603_v62 = vunpack.i.l.bf16 %v5602_v0  ;;  %5247 = vmatmul.mubr.msk.f32.vlgmr.msra.gmra.mrb[12].mxu0 %vm675_vm10, %v7099_v11  ;;  %5423 = vmatpush3.bf16.msra.mxu1 %v5422_v19 }
 0x22c   : > { %5426 = vmatpush3.bf16.msra.mxu0 %v5425_v9  ;;  %5253 = vmatprep.mubr.msk.f32.mxu1 %vm5733_vm9, %v7747_v14 }
 0x22d   : > { %v5431_v6 = vpack.c.bf16 %v5604_v52, %v5603_v62  ;;  %5260 = vmatprep.mubr.msk.f32.mxu0 %vm5733_vm9, %v7747_v14  ;;  %5427 = vmatprep.subr.bf16.mxu1 %v7779_v33 }
 0x22e   : > { %5254 = vmatmul.mubr.msk.f32.vlgmr.msra.gmra.mrb[12].mxu1 %vm675_vm10, %v7021_v44  ;;  %5430 = vmatprep.subr.bf16.mxu0 %v7779_v33 }
 0x22f   : > { %5261 = vmatmul.mubr.msk.f32.vlgmr.msra.gmra.mrb[14].mxu0 %vm675_vm10, %v7131_v45  ;;  %5429 = vmatpush3.bf16.msra.mxu1 %v5428_v60 }
 0x230   : > { %5432 = vmatpush3.bf16.msra.mxu0 %v5431_v6  ;;  %5267 = vmatprep.mubr.msk.f32.mxu1 %vm5733_vm9, %v7747_v14 }
 0x231   : > { %5274 = vmatprep.mubr.msk.f32.mxu0 %vm5733_vm9, %v7747_v14  ;;  %5433 = vmatprep.subr.bf16.mxu1 %v7779_v33  ;;  %v5607_v37 = vpop.permute.xlu0 %5606 }
 0x232   : > { %5268 = vmatmul.mubr.msk.f32.vlgmr.msra.gmra.mrb[14].mxu1 %vm675_vm10, %v7129_v53  ;;  %5436 = vmatprep.subr.bf16.mxu0 %v7779_v33  ;;  %v5609_v50 = vunpack.i.h.bf16 %v5607_v37  ;;  %v5608_v12 = vunpack.i.l.bf16 %v5607_v37 }
 0x233   : > { %5275 = vmatmul.mubr.msk.f32.vlgmr.msra.gmra.mrb[16].mxu0 %vm675_vm10, %v7099_v11  ;;  %5435 = vmatpush3.bf16.msra.mxu1 %v5434_v2 }
 0x234   : > { %5438 = vmatpush3.bf16.msra.mxu0 %v5437_v49  ;;  %5281 = vmatprep.mubr.msk.f32.mxu1 %vm5733_vm9, %v7747_v14  ;;  %v5440_v4 = vpack.c.bf16 %v5609_v50, %v5608_v12  ;;  %v7782_v49 = vpack.c.bf16 %v6887_v39, %v6890_v13  ;;  %v7783_v39 = vpack.c.bf16 %v6900_v25, %v6903_v42 }
 0x235   : > { %5288 = vmatprep.mubr.msk.f32.mxu0 %vm5733_vm9, %v7747_v14  ;;  %5439 = vmatprep.subr.bf16.mxu1 %v7779_v33  ;;  %v7784_v25 = vpack.c.bf16 %v6911_v36, %v6918_v59  ;;  %v7785_v59 = vpack.c.bf16 %v6929_v56, %v6941_v55  ;;  %v7786_v56 = vpack.c.bf16 %v6947_v23, %v6944_v29  ;;  %v816_v55 = vpop.f32.mrb[0].mxu1  ;;  %v5736_v29 = vmov 1966171168  }
 0x236   : > { %5282 = vmatmul.mubr.msk.f32.vlgmr.msra.gmra.mrb[16].mxu1 %vm675_vm10, %v7021_v44  ;;  %5442 = vmatprep.subr.bf16.mxu0 %v7779_v33  ;;  %v1015_v23 = vunpack.c.l.s4 %v5736_v29 }
 0x237   : > { %5289 = vmatmul.mubr.msk.f32.vlgmr.msra.gmra.mrb[18].mxu0 %vm675_vm10, %v7131_v45  ;;  %5295 = vmatprep.mubr.msk.f32.mxu1 %vm5733_vm9, %v7747_v14 }
 0x238   : > { %5302 = vmatprep.mubr.msk.f32.mxu0 %vm5733_vm9, %v7747_v14  ;;  %5441 = vmatpush3.bf16.msra.mxu1 %v5440_v4  ;;  %v1016_v7 = vunpack.c.0.s8 %v1015_v23 }
 0x239   : > { %5445 = vmatprep.subr.bf16.mxu1 %v7779_v33 }
 0x23a   : > { %v7315_v46 = vsub.s32 %v1016_v7, %v7787_v61 }
 0x23b   : > { %5296 = vmatmul.mubr.msk.f32.vlgmr.msra.gmra.mrb[18].mxu1 %vm675_vm10, %v7129_v53 }
 0x23c   : > { %5447 = vmatpush3.bf16.msra.mxu1 %v5446_v58  ;;  %5309 = vmatprep.mubr.msk.f32.mxu1 %vm5733_vm9, %v7747_v14  ;;  %v5612_v19 = vpop.permute.xlu1 %5611 }
 0x23d   : > { %5451 = vmatprep.subr.bf16.mxu1 %v7779_v33  ;;  %v5614_v8 = vunpack.i.h.bf16 %v5612_v19  ;;  %v5613_v1 = vunpack.i.l.bf16 %v5612_v19 }
 0x23f   : > { %5310 = vmatmul.mubr.msk.f32.vlgmr.msra.gmra.mrb[20].mxu1 %vm675_vm10, %v7021_v44  ;;  %v5443_v9 = vpack.c.bf16 %v5614_v8, %v5613_v1 }
 0x240   : > { %5323 = vmatprep.mubr.msk.f32.mxu1 %vm5733_vm9, %v7747_v14 }
 0x241   : > { %5444 = vmatpush3.bf16.msra.mxu0 %v5443_v9  ;;  %v5617_v41 = vpop.permute.xlu0 %5616 }
 0x242   : > { %5448 = vmatprep.subr.bf16.mxu0 %v7779_v33  ;;  %v5619_v2 = vunpack.i.h.bf16 %v5617_v41  ;;  %v5618_v16 = vunpack.i.l.bf16 %v5617_v41 }
 0x244   : > { %5303 = vmatmul.mubr.msk.f32.vlgmr.msra.gmra.mrb[20].mxu0 %vm675_vm10, %v7099_v11  ;;  %v5452_v38 = vpack.c.bf16 %v5619_v2, %v5618_v16 }
 0x245   : > { %5450 = vmatpush3.bf16.msra.mxu0 %v7782_v49  ;;  %5316 = vmatprep.mubr.msk.f32.mxu0 %vm5733_vm9, %v7747_v14 }
 0x246   : > { %5454 = vmatprep.subr.bf16.mxu0 %v7779_v33  ;;  %5453 = vmatpush3.bf16.msra.mxu1 %v5452_v38 }
 0x247   : > { %v5622_v20 = vpop.permute.xlu1 %5621  ;;  %5457 = vmatprep.subr.bf16.mxu1 %v7779_v33 }
 0x248   : > { %v5624_v58 = vunpack.i.h.bf16 %v5622_v20  ;;  %v5623_v34 = vunpack.i.l.bf16 %v5622_v20  ;;  %5317 = vmatmul.mubr.msk.f32.vlgmr.msra.gmra.mrb[22].mxu0 %vm675_vm10, %v7131_v45 }
 0x249   : > { %5330 = vmatprep.mubr.msk.f32.mxu0 %vm5733_vm9, %v7747_v14  ;;  %5324 = vmatmul.mubr.msk.f32.vlgmr.msra.gmra.mrb[22].mxu1 %vm675_vm10, %v7129_v53 }
 0x24a   : > { %v5455_v28 = vpack.c.bf16 %v5624_v58, %v5623_v34  ;;  %5459 = vmatpush3.bf16.msra.mxu1 %v7783_v39  ;;  %5337 = vmatprep.mubr.msk.f32.mxu1 %vm5733_vm9, %v7747_v14 }
 0x24b   : > { %5463 = vmatprep.subr.bf16.mxu1 %v7779_v33 }
 0x24c   : > { %5456 = vmatpush3.bf16.msra.mxu0 %v5455_v28 }
 0x24d   : > { %5460 = vmatprep.subr.bf16.mxu0 %v7779_v33  ;;  %v5627_v13 = vpop.permute.xlu0 %5626  ;;  %5338 = vmatmul.mubr.msk.f32.vlgmr.msra.gmra.mrb[24].mxu1 %vm675_vm10, %v7021_v44 }
 0x24e   : > { %v5629_v48 = vunpack.i.h.bf16 %v5627_v13  ;;  %v5628_v26 = vunpack.i.l.bf16 %v5627_v13  ;;  %5351 = vmatprep.mubr.msk.f32.mxu1 %vm5733_vm9, %v7747_v14 }
 0x24f   : > { %5331 = vmatmul.mubr.msk.f32.vlgmr.msra.gmra.mrb[24].mxu0 %vm675_vm10, %v7099_v11 }
 0x250   : > { %5462 = vmatpush3.bf16.msra.mxu0 %v7784_v25  ;;  %5344 = vmatprep.mubr.msk.f32.mxu0 %vm5733_vm9, %v7747_v14  ;;  %v5464_v42 = vpack.c.bf16 %v5629_v48, %v5628_v26 }
 0x251   : > { %5466 = vmatprep.subr.bf16.mxu0 %v7779_v33 }
 0x252   : > { %5465 = vmatpush3.bf16.msra.mxu1 %v5464_v42 }
 0x253   : > { %v5632_v27 = vpop.permute.xlu1 %5631  ;;  %5345 = vmatmul.mubr.msk.f32.vlgmr.msra.gmra.mrb[26].mxu0 %vm675_vm10, %v7131_v45  ;;  %5469 = vmatprep.subr.bf16.mxu1 %v7779_v33 }
 0x254   : > { %v5634_v51 = vunpack.i.h.bf16 %v5632_v27  ;;  %v5633_v32 = vunpack.i.l.bf16 %v5632_v27  ;;  %5358 = vmatprep.mubr.msk.f32.mxu0 %vm5733_vm9, %v7747_v14 }
 0x255   : > { %5352 = vmatmul.mubr.msk.f32.vlgmr.msra.gmra.mrb[26].mxu1 %vm675_vm10, %v7129_v53 }
 0x256   : > { %v5467_v36 = vpack.c.bf16 %v5634_v51, %v5633_v32  ;;  %5471 = vmatpush3.bf16.msra.mxu1 %v7785_v59  ;;  %5365 = vmatprep.mubr.msk.f32.mxu1 %vm5733_vm9, %v7747_v14 }
 0x257   : > { %5475 = vmatprep.subr.bf16.mxu1 %v7779_v33 }
 0x258   : > { %5468 = vmatpush3.bf16.msra.mxu0 %v5467_v36 }
 0x259   : > { %5472 = vmatprep.subr.bf16.mxu0 %v7779_v33  ;;  %5366 = vmatmul.mubr.msk.f32.vlgmr.msra.gmra.mrb[28].mxu1 %vm675_vm10, %v7021_v44  ;;  %v5171_v33 = vpop.f32.mrb[1].mxu1 }
 0x25a   : > { %5379 = vmatprep.mubr.msk.f32.mxu1 %vm5733_vm9, %v7747_v14 }
 0x25b   : > { %5359 = vmatmul.mubr.msk.f32.vlgmr.msra.gmra.mrb[28].mxu0 %vm675_vm10, %v7099_v11 }
 0x25c   : > { %5474 = vmatpush3.bf16.msra.mxu0 %v7786_v56  ;;  %5372 = vmatprep.mubr.msk.f32.mxu0 %vm5733_vm9, %v7747_v14 }
 0x25f   : > { %5373 = vmatmul.mubr.msk.f32.vlgmr.msra.gmra.mrb[30].mxu0 %vm675_vm10, %v7131_v45 }
 0x264   : > { %v7311_v54 = vpop.permute.xlu1 %1008 }
 0x285   : > { %v5637_v17 = vpop.permute.xlu0 %5636 }
 0x286   : > { %v5639_v44 = vunpack.i.h.bf16 %v5637_v17  ;;  %v5638_v22 = vunpack.i.l.bf16 %v5637_v17 }
 0x288   : > { %v5476_v11 = vpack.c.bf16 %v5639_v44, %v5638_v22 }
 0x28a   : > { %5477 = vmatpush3.bf16.msra.mxu1 %v5476_v11 }
 0x28d   : > { %5380 = vmatmul.mubr.msk.f32.vlgmr.msra.gmra.mrb[30].mxu1 %vm675_vm10, %v7129_v53 }
 0x2e5   : > { %v744_v5 = vpop.f32.mrb[0].mxu0 }
 0x2e6   : > { %v5164_v31 = vpop.f32.mrb[1].mxu0  ;;  %v817_v14 = vadd.f32 %v816_v55, %v744_v5 }
 0x2ea   : > { %v896_v24 = vpop.f32.mrb[2].mxu0 }
 0x2eb   : > { %v5178_v45 = vpop.f32.mrb[3].mxu0  ;;  %v900_v18 = vadd.f32 %v896_v24, %v817_v14 }
 0x2ed   : > { %v1001_v43 = vpop.f32.mrb[2].mxu1 }
 0x2ee   : > { %v1294_v40 = vpop.f32.mrb[4].mxu0  ;;  %v1005_v10 = vadd.f32 %v1001_v43, %v900_v18  ;;  %v5185_v53 = vpop.f32.mrb[3].mxu1 }
 0x2ef   : > { %v5192_v3 = vpop.f32.mrb[5].mxu0 }
 0x2f0   : > { %v1011_v15 = vadd.f32 %v7311_v54, %v1005_v10 }
 0x2f1   : > { %v1364_v30 = vpop.f32.mrb[4].mxu1 }
 0x2f2   : > { %v1440_v57 = vpop.f32.mrb[6].mxu0  ;;  %v1365_v47 = vadd.f32 %v1364_v30, %v1294_v40  ;;  %v5199_v21 = vpop.f32.mrb[5].mxu1  ;;  %v1013_v63 = vcombine.high %v1011_v15, %v1011_v15  ;;  %v1020_v35 = vrot.slane %v1011_v15, %v7315_v46 }
 0x2f3   : > { %v5206_v0 = vpop.f32.mrb[7].mxu0 }
 0x2f4   : > { %v1444_v52 = vadd.f32 %v1440_v57, %v1365_v47  ;;  %v1027_v62 = vrot.slane %v1013_v63, %v7315_v46  ;;  %v1028_v60 = vcombine.high %v1020_v35, %v1020_v35  ;;  %v1036_v6 = vrot.slane %v1020_v35, %v7315_v46 }
 0x2f5   : > { %v1541_v37 = vpop.f32.mrb[6].mxu1 }
 0x2f6   : > { %v1828_v50 = vpop.f32.mrb[8].mxu0  ;;  %v1545_v12 = vadd.f32 %v1541_v37, %v1444_v52  ;;  %v5213_v4 = vpop.f32.mrb[7].mxu1  ;;  %v1029_v19 = vcombine.high %v1027_v62, %v1027_v62  ;;  %v1043_v8 = vrot.slane %v1027_v62, %v7315_v46  ;;  %v1050_v1 = vrot.slane %v1028_v60, %v7315_v46  ;;  %1071 = vst.msk [vmem:[%s7325_s19] sm:$0x1] %vm1070_vm11, %v1036_v6 }
 0x2f7   : > { %v5220_v9 = vpop.f32.mrb[9].mxu0  ;;  %v1058_v41 = vcombine.high %v1036_v6, %v1036_v6 }
 0x2f8   : > { %v1057_v2 = vrot.slane %v1029_v19, %v7315_v46  ;;  %v1059_v16 = vcombine.high %v1043_v8, %v1043_v8  ;;  %v1060_v38 = vcombine.high %v1050_v1, %v1050_v1  ;;  %1072 = vst.msk [vmem:[%s7325_s19 + $0x8] sm:$0x1] %vm1070_vm11, %v1050_v1  ;;  %1075 = vst.msk [vmem:[%s7325_s19 + $0x20] sm:$0x1] %vm1070_vm11, %v1043_v8 }
 0x2f9   : > { %v1546_v49 = vadd.f32 %v1545_v12, %v7311_v54  ;;  %v1898_v20 = vpop.f32.mrb[8].mxu1  ;;  %1073 = vst.msk [vmem:[%s7325_s19 + $0x10] sm:$0x1] %vm1070_vm11, %v1058_v41 }
 0x2fa   : > { %v1974_v58 = vpop.f32.mrb[10].mxu0  ;;  %v1899_v34 = vadd.f32 %v1898_v20, %v1828_v50  ;;  %v5227_v28 = vpop.f32.mrb[9].mxu1  ;;  %v1061_v39 = vcombine.high %v1057_v2, %v1057_v2  ;;  %1074 = vst.msk [vmem:[%s7325_s19 + $0x18] sm:$0x1] %vm1070_vm11, %v1060_v38  ;;  %1076 = vst.msk [vmem:[%s7325_s19 + $0x28] sm:$0x1] %vm1070_vm11, %v1057_v2 }
 0x2fb   : > { %1077 = vst.msk [vmem:[%s7325_s19 + $0x30] sm:$0x1] %vm1070_vm11, %v1059_v16  ;;  %v1548_v13 = vcombine.high %v1546_v49, %v1546_v49  ;;  %v1555_v48 = vrot.slane %v1546_v49, %v7315_v46  ;;  %v5234_v26 = vpop.f32.mrb[11].mxu0 }
 0x2fc   : > { %v1978_v25 = vadd.f32 %v1974_v58, %v1899_v34  ;;  %1078 = vst.msk [vmem:[%s7325_s19 + $0x38] sm:$0x1] %vm1070_vm11, %v1061_v39 }
 0x2fd   : > { %v1562_v42 = vrot.slane %v1548_v13, %v7315_v46  ;;  %v1563_v27 = vcombine.high %v1555_v48, %v1555_v48  ;;  %v1571_v51 = vrot.slane %v1555_v48, %v7315_v46  ;;  %v2075_v32 = vpop.f32.mrb[10].mxu1 }
 0x2fe   : > { %v2362_v36 = vpop.f32.mrb[12].mxu0  ;;  %v2079_v59 = vadd.f32 %v2075_v32, %v1978_v25  ;;  %v5241_v56 = vpop.f32.mrb[11].mxu1 }
 0x2ff   : > { %v1564_v55 = vcombine.high %v1562_v42, %v1562_v42  ;;  %v1578_v33 = vrot.slane %v1562_v42, %v7315_v46  ;;  %v1585_v17 = vrot.slane %v1563_v27, %v7315_v46  ;;  %1605 = vst.msk [vmem:[%s7325_s19 + $0x1] sm:$0x1] %vm1070_vm11, %v1571_v51  ;;  %v5248_v44 = vpop.f32.mrb[13].mxu0  ;;  %v1593_v22 = vcombine.high %v1571_v51, %v1571_v51 }
 0x300   : > { %v2080_v23 = vadd.f32 %v2079_v59, %v7311_v54 }
 0x301   : > { %v1592_v11 = vrot.slane %v1564_v55, %v7315_v46  ;;  %v1594_v5 = vcombine.high %v1578_v33, %v1578_v33  ;;  %v1595_v29 = vcombine.high %v1585_v17, %v1585_v17  ;;  %1606 = vst.msk [vmem:[%s7325_s19 + $0x9] sm:$0x1] %vm1070_vm11, %v1585_v17  ;;  %1609 = vst.msk [vmem:[%s7325_s19 + $0x21] sm:$0x1] %vm1070_vm11, %v1578_v33  ;;  %v2432_v31 = vpop.f32.mrb[12].mxu1 }
 0x302   : > { %1607 = vst.msk [vmem:[%s7325_s19 + $0x11] sm:$0x1] %vm1070_vm11, %v1593_v22  ;;  %v2508_v14 = vpop.f32.mrb[14].mxu0  ;;  %v2433_v7 = vadd.f32 %v2432_v31, %v2362_v36  ;;  %v5255_v24 = vpop.f32.mrb[13].mxu1  ;;  %v2082_v18 = vcombine.high %v2080_v23, %v2080_v23  ;;  %v2089_v43 = vrot.slane %v2080_v23, %v7315_v46 }
 0x303   : > { %v1596_v45 = vcombine.high %v1592_v11, %v1592_v11  ;;  %1608 = vst.msk [vmem:[%s7325_s19 + $0x19] sm:$0x1] %vm1070_vm11, %v1595_v29  ;;  %1610 = vst.msk [vmem:[%s7325_s19 + $0x29] sm:$0x1] %vm1070_vm11, %v1592_v11  ;;  %v5262_v61 = vpop.f32.mrb[15].mxu0 }
 0x304   : > { %1611 = vst.msk [vmem:[%s7325_s19 + $0x31] sm:$0x1] %vm1070_vm11, %v1594_v5  ;;  %v2512_v40 = vadd.f32 %v2508_v14, %v2433_v7  ;;  %v2096_v10 = vrot.slane %v2082_v18, %v7315_v46  ;;  %v2097_v53 = vcombine.high %v2089_v43, %v2089_v43  ;;  %v2105_v3 = vrot.slane %v2089_v43, %v7315_v46 }
 0x305   : > { %1612 = vst.msk [vmem:[%s7325_s19 + $0x39] sm:$0x1] %vm1070_vm11, %v1596_v45  ;;  %v2609_v15 = vpop.f32.mrb[14].mxu1 }
 0x306   : > { %v2896_v30 = vpop.f32.mrb[16].mxu0  ;;  %v2613_v57 = vadd.f32 %v2609_v15, %v2512_v40  ;;  %v5269_v47 = vpop.f32.mrb[15].mxu1  ;;  %v2098_v21 = vcombine.high %v2096_v10, %v2096_v10  ;;  %v2112_v63 = vrot.slane %v2096_v10, %v7315_v46  ;;  %v2119_v35 = vrot.slane %v2097_v53, %v7315_v46  ;;  %2139 = vst.msk [vmem:[%s7325_s19 + $0x2] sm:$0x1] %vm1070_vm11, %v2105_v3 }
 0x307   : > { %v5276_v0 = vpop.f32.mrb[17].mxu0  ;;  %v2127_v52 = vcombine.high %v2105_v3, %v2105_v3 }
 0x308   : > { %v2126_v62 = vrot.slane %v2098_v21, %v7315_v46  ;;  %v2128_v60 = vcombine.high %v2112_v63, %v2112_v63  ;;  %v2129_v6 = vcombine.high %v2119_v35, %v2119_v35  ;;  %2140 = vst.msk [vmem:[%s7325_s19 + $0xa] sm:$0x1] %vm1070_vm11, %v2119_v35  ;;  %2143 = vst.msk [vmem:[%s7325_s19 + $0x22] sm:$0x1] %vm1070_vm11, %v2112_v63 }
 0x309   : > { %v2614_v37 = vadd.f32 %v2613_v57, %v7311_v54  ;;  %v2966_v50 = vpop.f32.mrb[16].mxu1  ;;  %2141 = vst.msk [vmem:[%s7325_s19 + $0x12] sm:$0x1] %vm1070_vm11, %v2127_v52 }
 0x30a   : > { %v3042_v12 = vpop.f32.mrb[18].mxu0  ;;  %v2967_v4 = vadd.f32 %v2966_v50, %v2896_v30  ;;  %v5283_v19 = vpop.f32.mrb[17].mxu1  ;;  %v2130_v8 = vcombine.high %v2126_v62, %v2126_v62  ;;  %2142 = vst.msk [vmem:[%s7325_s19 + $0x1a] sm:$0x1] %vm1070_vm11, %v2129_v6  ;;  %2144 = vst.msk [vmem:[%s7325_s19 + $0x2a] sm:$0x1] %vm1070_vm11, %v2126_v62 }
 0x30b   : > { %2145 = vst.msk [vmem:[%s7325_s19 + $0x32] sm:$0x1] %vm1070_vm11, %v2128_v60  ;;  %v2616_v1 = vcombine.high %v2614_v37, %v2614_v37  ;;  %v2623_v9 = vrot.slane %v2614_v37, %v7315_v46  ;;  %v5290_v41 = vpop.f32.mrb[19].mxu0 }
 0x30c   : > { %v3046_v2 = vadd.f32 %v3042_v12, %v2967_v4  ;;  %2146 = vst.msk [vmem:[%s7325_s19 + $0x3a] sm:$0x1] %vm1070_vm11, %v2130_v8 }
 0x30d   : > { %v2630_v16 = vrot.slane %v2616_v1, %v7315_v46  ;;  %v2631_v38 = vcombine.high %v2623_v9, %v2623_v9  ;;  %v2639_v49 = vrot.slane %v2623_v9, %v7315_v46 }
 0x30e   : > { %v3143_v39 = vpop.f32.mrb[18].mxu1 }
 0x30f   : > { %v2632_v20 = vcombine.high %v2630_v16, %v2630_v16  ;;  %v2646_v58 = vrot.slane %v2630_v16, %v7315_v46  ;;  %v2653_v34 = vrot.slane %v2631_v38, %v7315_v46  ;;  %v2661_v28 = vcombine.high %v2639_v49, %v2639_v49  ;;  %2673 = vst.msk [vmem:[%s7325_s19 + $0x3] sm:$0x1] %vm1070_vm11, %v2639_v49  ;;  %v5297_v48 = vpop.f32.mrb[19].mxu1 }
 0x310   : > { %v3147_v13 = vadd.f32 %v3143_v39, %v3046_v2 }
 0x311   : > { %v2660_v26 = vrot.slane %v2632_v20, %v7315_v46  ;;  %v2662_v25 = vcombine.high %v2646_v58, %v2646_v58  ;;  %v2663_v42 = vcombine.high %v2653_v34, %v2653_v34  ;;  %2674 = vst.msk [vmem:[%s7325_s19 + $0xb] sm:$0x1] %vm1070_vm11, %v2653_v34  ;;  %2675 = vst.msk [vmem:[%s7325_s19 + $0x13] sm:$0x1] %vm1070_vm11, %v2661_v28 }
 0x312   : > { %2677 = vst.msk [vmem:[%s7325_s19 + $0x23] sm:$0x1] %vm1070_vm11, %v2646_v58  ;;  %v3148_v51 = vadd.f32 %v3147_v13, %v7311_v54  ;;  %v3500_v32 = vpop.f32.mrb[20].mxu1 }
 0x313   : > { %v2664_v27 = vcombine.high %v2660_v26, %v2660_v26  ;;  %2676 = vst.msk [vmem:[%s7325_s19 + $0x1b] sm:$0x1] %vm1070_vm11, %v2663_v42  ;;  %2678 = vst.msk [vmem:[%s7325_s19 + $0x2b] sm:$0x1] %vm1070_vm11, %v2660_v26  ;;  %v5311_v36 = vpop.f32.mrb[21].mxu1 }
 0x314   : > { %2679 = vst.msk [vmem:[%s7325_s19 + $0x33] sm:$0x1] %vm1070_vm11, %v2662_v25  ;;  %v3150_v59 = vcombine.high %v3148_v51, %v3148_v51  ;;  %v3157_v56 = vrot.slane %v3148_v51, %v7315_v46 }
 0x315   : > { %2680 = vst.msk [vmem:[%s7325_s19 + $0x3b] sm:$0x1] %vm1070_vm11, %v2664_v27 }
 0x316   : > { %v3164_v55 = vrot.slane %v3150_v59, %v7315_v46  ;;  %v3165_v33 = vcombine.high %v3157_v56, %v3157_v56  ;;  %v3173_v17 = vrot.slane %v3157_v56, %v7315_v46 }
 0x317   : > { %v3430_v29 = vpop.f32.mrb[20].mxu0 }
 0x318   : > { %v3166_v44 = vcombine.high %v3164_v55, %v3164_v55  ;;  %v3180_v22 = vrot.slane %v3164_v55, %v7315_v46  ;;  %v3187_v11 = vrot.slane %v3165_v33, %v7315_v46  ;;  %v3195_v5 = vcombine.high %v3173_v17, %v3173_v17  ;;  %3207 = vst.msk [vmem:[%s7325_s19 + $0x4] sm:$0x1] %vm1070_vm11, %v3173_v17  ;;  %v5304_v23 = vpop.f32.mrb[21].mxu0 }
 0x319   : > { %v3501_v31 = vadd.f32 %v3500_v32, %v3430_v29 }
 0x31a   : > { %v3194_v14 = vrot.slane %v3166_v44, %v7315_v46  ;;  %v3196_v7 = vcombine.high %v3180_v22, %v3180_v22  ;;  %v3197_v24 = vcombine.high %v3187_v11, %v3187_v11  ;;  %3208 = vst.msk [vmem:[%s7325_s19 + $0xc] sm:$0x1] %vm1070_vm11, %v3187_v11  ;;  %3209 = vst.msk [vmem:[%s7325_s19 + $0x14] sm:$0x1] %vm1070_vm11, %v3195_v5 }
 0x31b   : > { %3211 = vst.msk [vmem:[%s7325_s19 + $0x24] sm:$0x1] %vm1070_vm11, %v3180_v22  ;;  %v3576_v18 = vpop.f32.mrb[22].mxu0 }
 0x31c   : > { %v3198_v45 = vcombine.high %v3194_v14, %v3194_v14  ;;  %3210 = vst.msk [vmem:[%s7325_s19 + $0x1c] sm:$0x1] %vm1070_vm11, %v3197_v24  ;;  %3212 = vst.msk [vmem:[%s7325_s19 + $0x2c] sm:$0x1] %vm1070_vm11, %v3194_v14  ;;  %v5318_v43 = vpop.f32.mrb[23].mxu0  ;;  %v3580_v61 = vadd.f32 %v3576_v18, %v3501_v31  ;;  %v3677_v40 = vpop.f32.mrb[22].mxu1 }
 0x31d   : > { %3213 = vst.msk [vmem:[%s7325_s19 + $0x34] sm:$0x1] %vm1070_vm11, %v3196_v7  ;;  %v5325_v53 = vpop.f32.mrb[23].mxu1 }
 0x31e   : > { %3214 = vst.msk [vmem:[%s7325_s19 + $0x3c] sm:$0x1] %vm1070_vm11, %v3198_v45  ;;  %v3681_v10 = vadd.f32 %v3677_v40, %v3580_v61 }
 0x320   : > { %v3682_v3 = vadd.f32 %v3681_v10, %v7311_v54  ;;  %v4034_v15 = vpop.f32.mrb[24].mxu1 }
 0x321   : > { %v5339_v57 = vpop.f32.mrb[25].mxu1 }
 0x322   : > { %v3964_v30 = vpop.f32.mrb[24].mxu0  ;;  %v3684_v47 = vcombine.high %v3682_v3, %v3682_v3  ;;  %v3691_v21 = vrot.slane %v3682_v3, %v7315_v46 }
 0x323   : > { %v5332_v63 = vpop.f32.mrb[25].mxu0  ;;  %v4035_v35 = vadd.f32 %v4034_v15, %v3964_v30 }
 0x324   : > { %v3698_v0 = vrot.slane %v3684_v47, %v7315_v46  ;;  %v3699_v52 = vcombine.high %v3691_v21, %v3691_v21  ;;  %v3707_v62 = vrot.slane %v3691_v21, %v7315_v46 }
 0x326   : > { %v4110_v60 = vpop.f32.mrb[26].mxu0  ;;  %v3700_v6 = vcombine.high %v3698_v0, %v3698_v0  ;;  %v3714_v37 = vrot.slane %v3698_v0, %v7315_v46  ;;  %v3721_v50 = vrot.slane %v3699_v52, %v7315_v46  ;;  %v3729_v12 = vcombine.high %v3707_v62, %v3707_v62  ;;  %3741 = vst.msk [vmem:[%s7325_s19 + $0x5] sm:$0x1] %vm1070_vm11, %v3707_v62 }
 0x327   : > { %v5346_v4 = vpop.f32.mrb[27].mxu0  ;;  %v4114_v19 = vadd.f32 %v4110_v60, %v4035_v35 }
 0x328   : > { %v3728_v8 = vrot.slane %v3700_v6, %v7315_v46  ;;  %v3730_v1 = vcombine.high %v3714_v37, %v3714_v37  ;;  %v3731_v9 = vcombine.high %v3721_v50, %v3721_v50  ;;  %3742 = vst.msk [vmem:[%s7325_s19 + $0xd] sm:$0x1] %vm1070_vm11, %v3721_v50  ;;  %3743 = vst.msk [vmem:[%s7325_s19 + $0x15] sm:$0x1] %vm1070_vm11, %v3729_v12  ;;  %v4211_v41 = vpop.f32.mrb[26].mxu1 }
 0x329   : > { %3745 = vst.msk [vmem:[%s7325_s19 + $0x25] sm:$0x1] %vm1070_vm11, %v3714_v37  ;;  %v4215_v2 = vadd.f32 %v4211_v41, %v4114_v19  ;;  %v5353_v16 = vpop.f32.mrb[27].mxu1 }
 0x32a   : > { %v3732_v38 = vcombine.high %v3728_v8, %v3728_v8  ;;  %3744 = vst.msk [vmem:[%s7325_s19 + $0x1d] sm:$0x1] %vm1070_vm11, %v3731_v9  ;;  %3746 = vst.msk [vmem:[%s7325_s19 + $0x2d] sm:$0x1] %vm1070_vm11, %v3728_v8 }
 0x32b   : > { %3747 = vst.msk [vmem:[%s7325_s19 + $0x35] sm:$0x1] %vm1070_vm11, %v3730_v1  ;;  %v4216_v49 = vadd.f32 %v4215_v2, %v7311_v54 }
 0x32c   : > { %3748 = vst.msk [vmem:[%s7325_s19 + $0x3d] sm:$0x1] %vm1070_vm11, %v3732_v38  ;;  %v4566_v20 = vpop.f32.mrb[28].mxu1 }
 0x32d   : > { %v4218_v34 = vcombine.high %v4216_v49, %v4216_v49  ;;  %v4225_v28 = vrot.slane %v4216_v49, %v7315_v46  ;;  %v5367_v39 = vpop.f32.mrb[29].mxu1 }
 0x32e   : > { %v4496_v58 = vpop.f32.mrb[28].mxu0 }
 0x32f   : > { %v5360_v13 = vpop.f32.mrb[29].mxu0  ;;  %v4567_v48 = vadd.f32 %v4566_v20, %v4496_v58  ;;  %v4232_v26 = vrot.slane %v4218_v34, %v7315_v46  ;;  %v4233_v25 = vcombine.high %v4225_v28, %v4225_v28  ;;  %v4241_v42 = vrot.slane %v4225_v28, %v7315_v46 }
 0x331   : > { %v4234_v51 = vcombine.high %v4232_v26, %v4232_v26  ;;  %v4248_v32 = vrot.slane %v4232_v26, %v7315_v46  ;;  %v4255_v36 = vrot.slane %v4233_v25, %v7315_v46  ;;  %v4263_v59 = vcombine.high %v4241_v42, %v4241_v42  ;;  %4275 = vst.msk [vmem:[%s7325_s19 + $0x6] sm:$0x1] %vm1070_vm11, %v4241_v42 }
 0x332   : > { %v4642_v27 = vpop.f32.mrb[30].mxu0 }
 0x333   : > { %v4646_v56 = vadd.f32 %v4642_v27, %v4567_v48  ;;  %v5374_v55 = vpop.f32.mrb[31].mxu0  ;;  %v4262_v33 = vrot.slane %v4234_v51, %v7315_v46  ;;  %v4264_v17 = vcombine.high %v4248_v32, %v4248_v32  ;;  %v4265_v44 = vcombine.high %v4255_v36, %v4255_v36  ;;  %4276 = vst.msk [vmem:[%s7325_s19 + $0xe] sm:$0x1] %vm1070_vm11, %v4255_v36 }
 0x334   : > { %4277 = vst.msk [vmem:[%s7325_s19 + $0x16] sm:$0x1] %vm1070_vm11, %v4263_v59  ;;  %4279 = vst.msk [vmem:[%s7325_s19 + $0x26] sm:$0x1] %vm1070_vm11, %v4248_v32 }
 0x335   : > { %v4266_v22 = vcombine.high %v4262_v33, %v4262_v33  ;;  %4278 = vst.msk [vmem:[%s7325_s19 + $0x1e] sm:$0x1] %vm1070_vm11, %v4265_v44  ;;  %4280 = vst.msk [vmem:[%s7325_s19 + $0x2e] sm:$0x1] %vm1070_vm11, %v4262_v33 }
 0x336   : > { %4281 = vst.msk [vmem:[%s7325_s19 + $0x36] sm:$0x1] %vm1070_vm11, %v4264_v17 }
 0x337   : > { %4282 = vst.msk [vmem:[%s7325_s19 + $0x3e] sm:$0x1] %vm1070_vm11, %v4266_v22 }
 0x360   : > { %v4743_v11 = vpop.f32.mrb[30].mxu1 }
 0x361   : > { %v4747_v5 = vadd.f32 %v4743_v11, %v4646_v56  ;;  %v5381_v29 = vpop.f32.mrb[31].mxu1 }
 0x363   : > { %v4748_v23 = vadd.f32 %v4747_v5, %v7311_v54 }
 0x365   : > { %v4750_v31 = vcombine.high %v4748_v23, %v4748_v23  ;;  %v4757_v14 = vrot.slane %v4748_v23, %v7315_v46 }
 0x367   : > { %v4764_v7 = vrot.slane %v4750_v31, %v7315_v46  ;;  %v4765_v24 = vcombine.high %v4757_v14, %v4757_v14  ;;  %v4773_v45 = vrot.slane %v4757_v14, %v7315_v46 }
 0x369   : > { %v4766_v18 = vcombine.high %v4764_v7, %v4764_v7  ;;  %v4780_v43 = vrot.slane %v4764_v7, %v7315_v46  ;;  %v4787_v61 = vrot.slane %v4765_v24, %v7315_v46  ;;  %v4795_v54 = vcombine.high %v4773_v45, %v4773_v45  ;;  %4807 = vst.msk [vmem:[%s7325_s19 + $0x7] sm:$0x1] %vm1070_vm11, %v4773_v45 }
 0x36b   : > { %v4794_v40 = vrot.slane %v4766_v18, %v7315_v46  ;;  %v4796_v10 = vcombine.high %v4780_v43, %v4780_v43  ;;  %v4797_v53 = vcombine.high %v4787_v61, %v4787_v61  ;;  %4808 = vst.msk [vmem:[%s7325_s19 + $0xf] sm:$0x1] %vm1070_vm11, %v4787_v61  ;;  %4809 = vst.msk [vmem:[%s7325_s19 + $0x17] sm:$0x1] %vm1070_vm11, %v4795_v54 }
 0x36c   : > { %4811 = vst.msk [vmem:[%s7325_s19 + $0x27] sm:$0x1] %vm1070_vm11, %v4780_v43 }
 0x36d   : > { %v4798_v46 = vcombine.high %v4794_v40, %v4794_v40  ;;  %4810 = vst.msk [vmem:[%s7325_s19 + $0x1f] sm:$0x1] %vm1070_vm11, %v4797_v53  ;;  %4812 = vst.msk [vmem:[%s7325_s19 + $0x2f] sm:$0x1] %vm1070_vm11, %v4794_v40 }
 0x36e   : > { %4813 = vst.msk [vmem:[%s7325_s19 + $0x37] sm:$0x1] %vm1070_vm11, %v4796_v10 }
 0x36f   : > { %4814 = vst.msk [vmem:[%s7325_s19 + $0x3f] sm:$0x1] %vm1070_vm11, %v4798_v46 }
 0x370   : > { %5657 = shalt.err (!%p5654_p5)
}
 0x371   : > { %s5658_s20 = scalar_lea.hbm %s7502_s12, 1024  ;;  %s5662_s19 = scalar_lea.hbm %s7569_s7, 2048 }
 0x372   : > { %p5659_p6 = scmp.ne.s32.totalorder %s7502_s12, %s5658_s20  ;;  %p5663_p10 = scmp.lt.u32.totalorder %s7502_s12, %s7569_s7 }
 0x373   : > { %p5664_p11 = scmp.lt.u32.totalorder %s5662_s19, %s5658_s20  ;;  %p5666_p13 = scmp.lt.u32.totalorder %s5658_s20, %s7502_s12 }
 0x374   : > { %p5660_p7 = pnand %p5659_p6, %p5820_p4 }
 0x375   : > { %p5665_p12 = por %p5664_p11, %p5663_p10 }
 0x376   : > { %p5661_p9 = pneg %p5660_p7 }
 0x377   : > { %p5667_p0 = por %p5666_p13, %p5665_p12 }
 0x379   : > { %p5668_p1 = pnand %p5667_p0, %p5661_p9 }
 0x37b   : > { %5671 = shalt.err (!%p5668_p1)
}
 0x37c   : > { %s5738_s10 = smov 128   ;;  %s5739_s15 = smov 8  }
 0x37d   : > { %5482 = dma.vmem_to_hbm [thread:$0]  (%p5820_p4), %s7504_s23, 1024, %s7502_s12, %s7516_s27, %s5738_s10, %s5738_s10, %s5739_s15  }
 0x37e PF: > { %p5490_p2 = scmp.ge.s32.totalorder %s5722_s29, 2  ;;  %s4845_s16 = sand.u32 1, %s5702_s24  }
 0x37f   : > { %s4846_s17 = scalar_lea.sflag [#allocation3], %s4845_s16 }
 0x380   : > { %p5485_p3 = pnand %p5490_p2, %p5827_p8 }
 0x382   : > { %5697 = dma.done.wait (!%p5485_p3), %s4846_s17, 1024  }
 0x383   : > { %5699 = vsyncadd (!%p5485_p3), %s4846_s17, 4294966272  ;;  %s20_s29 = sadd.s32 1, %s5722_s29   ;;  %s7788_s24 = smov %s5706_s25 }
 0x384   : > { %p17_p5 = scmp.ge.s32.totalorder %s20_s29, 4   ;;  %s7789_s25 = smov %s5710_s26 }
 0x385   : > { %s7790_s26 = smov %s5833_s14  ;;  %s7791_s27 = smov %s5718_s28 }
 0x386   : > { %s7792_s28 = smov %s7794_s9  ;;  %19 = sbr.rel (!%p17_p5) target bundleno = 4 (0x4), region = 106 }
 0x38d   :  { %4851 = vsyncpa [#allocation3], 1 }
 0x38e   :  { %4853 = vsyncpa [#allocation3 + $0x1], 1 }

</bundles_post_ra>
